<compile_context>
chip_gen: v6e
topology: v6e:2x2x1
jax: 0.10.0
libtpu: 0.0.40
codegen_flags: <defaults>
</compile_context>

<pallas_src>
import jax
import jax.numpy as jnp
from jax import lax
from jax.experimental import pallas as pl
from jax.experimental.pallas import tpu as pltpu

KSIZE = 7
PAD = (KSIZE - 1) // 2


def _make_kernel(Bt, C, H, W):
    HW = H * W

    def kernel(w_ref, x_ref, o_ref, pad_max, pad_mean, att_ref):
        # ---- channel pooling in the lane-dense (Bt, C, HW) layout ----------
        xv = x_ref[...].astype(jnp.float32)            # (Bt, C, HW)
        mx = jnp.max(xv, axis=1)                       # (Bt, HW)
        mn = jnp.sum(xv, axis=1) / jnp.float32(C)      # (Bt, HW)

        # ---- zero-padded 2-D pooled maps in VMEM scratch --------------------
        # (zeroed every step: safe under megacore "parallel" batch axis)
        pad_max[...] = jnp.zeros(pad_max.shape, pad_max.dtype)
        pad_mean[...] = jnp.zeros(pad_mean.shape, pad_mean.dtype)
        for r in range(H):
            pad_max[:, PAD + r, PAD:PAD + W] = mx[:, r * W:(r + 1) * W]
            pad_mean[:, PAD + r, PAD:PAD + W] = mn[:, r * W:(r + 1) * W]

        # ---- 7x7 conv (2 -> 1 channels): outer dx = one lane shift ---------
        acc = jnp.zeros((Bt, H, W), jnp.float32)
        for dx in range(KSIZE):
            col_max = pad_max[:, :, dx:dx + W]         # (Bt, H+6, W)
            col_mean = pad_mean[:, :, dx:dx + W]       # (Bt, H+6, W)
            for dy in range(KSIZE):
                w_max = w_ref[0 * KSIZE * KSIZE + dy * KSIZE + dx]
                w_mean = w_ref[1 * KSIZE * KSIZE + dy * KSIZE + dx]
                acc = acc + w_max * col_max[:, dy:dy + H, :]
                acc = acc + w_mean * col_mean[:, dy:dy + H, :]

        att2d = jax.nn.sigmoid(acc)                    # (Bt, H, W)

        # ---- back to flat layout so the output store is lane-dense ---------
        for r in range(H):
            att_ref[:, r * W:(r + 1) * W] = att2d[:, r, :]
        attf = att_ref[...]                            # (Bt, HW)

        o_ref[...] = (x_ref[...].astype(jnp.float32) *
                      attf[:, None, :]).astype(o_ref.dtype)

    return kernel


def _choose_block_batch(B, per_batch_bytes, target_bytes=2 << 20, min_steps=2):
    """Largest divisor of B whose block fits the VMEM target, keeping >=2 steps."""
    bt = int(max(1, min(B, target_bytes // max(per_batch_bytes, 1))))
    if B >= min_steps:
        bt = min(bt, max(1, B // min_steps))   # >=2 grid steps -> megacore can split
    while B % bt:
        bt -= 1
    return bt


def spatial_attention(x, conv_weight, block_batch=None):
    """x: (B, C, H, W); conv_weight: (1, 2, 7, 7) -> returns (B, C, H, W)."""
    B, C, H, W = x.shape
    HW = H * W
    x_flat = x.reshape(B, C, HW)                        # lane-dense last dim
    w_flat = conv_weight.reshape(-1).astype(jnp.float32)

    per_batch_bytes = C * HW * x.dtype.itemsize
    if block_batch is None:
        block_batch = _choose_block_batch(B, per_batch_bytes)
    Bt = block_batch
    grid = (B // Bt,)

    # Explicit VMEM budget: in/out double buffers + scratch + headroom,
    # clamped to stay within every generation's scoped limit (v7x: 32 MiB).
    blk_bytes = Bt * per_batch_bytes
    scratch_bytes = Bt * (2 * (H + 2 * PAD) * (W + 2 * PAD) + HW) * 4
    vmem_limit = int(min(max(4 * blk_bytes + scratch_bytes + (2 << 20),
                             16 << 20), 32 << 20))

    kernel = _make_kernel(Bt, C, H, W)

    out_flat = pl.pallas_call(
        kernel,
        out_shape=jax.ShapeDtypeStruct((B, C, HW), x.dtype),
        grid_spec=pltpu.PrefetchScalarGridSpec(
            num_scalar_prefetch=0,
            grid=grid,
            in_specs=[
                pl.BlockSpec(memory_space=pltpu.MemorySpace.SMEM),
                pl.BlockSpec((Bt, C, HW), lambda b: (b, 0, 0)),
            ],
            out_specs=pl.BlockSpec((Bt, C, HW), lambda b: (b, 0, 0)),
            scratch_shapes=[
                pltpu.VMEM((Bt, H + 2 * PAD, W + 2 * PAD), jnp.float32),
                pltpu.VMEM((Bt, H + 2 * PAD, W + 2 * PAD), jnp.float32),
                pltpu.VMEM((Bt, HW), jnp.float32),
            ],
        ),
        compiler_params=pltpu.CompilerParams(
            dimension_semantics=("parallel",),
            vmem_limit_bytes=vmem_limit,
        ),
    )(w_flat, x_flat)

    return out_flat.reshape(B, C, H, W)


def _reference(x, conv_weight):
    """Plain-JAX reference matching the PyTorch forward."""
    mx = jnp.max(x, axis=1, keepdims=True)
    mn = jnp.mean(x, axis=1, keepdims=True)
    pool = jnp.concatenate([mx, mn], axis=1)
    out = lax.conv_general_dilated(
        pool, conv_weight, window_strides=(1, 1),
        padding=[(PAD, PAD), (PAD, PAD)],
        dimension_numbers=("NCHW", "OIHW", "NCHW"))
    return jax.nn.sigmoid(out) * x


if __name__ == "__main__":
    key = jax.random.PRNGKey(0)
    kx, kw = jax.random.split(key)

    B, C, H, W = 2, 4, 16, 16
    x = jax.random.normal(kx, (B, C, H, W), dtype=jnp.float32)
    # Deterministic synthetic conv weight (nn.Conv2d(2, 1, 7, bias=False)).
    conv_weight = 0.1 * jax.random.normal(kw, (1, 2, KSIZE, KSIZE),
                                          dtype=jnp.float32)

    out = spatial_attention(x, conv_weight)
    out = jax.block_until_ready(out)

    ref = _reference(x, conv_weight)
    assert out.shape == (B, C, H, W)
    assert jnp.allclose(out, ref, rtol=1e-4, atol=1e-4)

    print("KERNEL_OK")
</pallas_src>

<mosaic_0001>
module attributes {stable_mosaic.version = 11 : i64} {
  func.func @kernel(%arg0: i32, %arg1: memref<98xf32, #tpu.memory_space<smem>>, %arg2: memref<1x4x256xf32, #tpu.memory_space<vmem>>, %arg3: memref<1x4x256xf32, #tpu.memory_space<vmem>>, %arg4: memref<1x22x22xf32, #tpu.memory_space<vmem>>, %arg5: memref<1x22x22xf32, #tpu.memory_space<vmem>>, %arg6: memref<1x256xf32, #tpu.memory_space<vmem>>) attributes {dimension_semantics = [#tpu.dimension_semantics<parallel>], iteration_bounds = array<i64: 2>, scalar_prefetch = 0 : i64, scratch_operands = 3 : i64, tpu.core_type = #tpu.core_type<tc>, window_params = [{transform_indices = @transform_0, window_bounds = array<i64: 98>}, {transform_indices = @transform_1, window_bounds = array<i64: 1, 4, 256>}, {transform_indices = @transform_2, window_bounds = array<i64: 1, 4, 256>}]} {
    %c0 = arith.constant 0 : index
    %c0_0 = arith.constant 0 : index
    %c0_1 = arith.constant 0 : index
    %0 = vector.load %arg2[%c0, %c0_0, %c0_1] : memref<1x4x256xf32, #tpu.memory_space<vmem>>, vector<1x4x256xf32>
    %cst = arith.constant dense<0xFF800000> : vector<1x256xf32>
    %1 = vector.multi_reduction <maximumf>, %0, %cst [1] : vector<1x4x256xf32> to vector<1x256xf32>
    %cst_2 = arith.constant dense<0.000000e+00> : vector<1x256xf32>
    %2 = vector.multi_reduction <add>, %0, %cst_2 [1] : vector<1x4x256xf32> to vector<1x256xf32>
    %cst_3 = arith.constant 4.000000e+00 : f32
    %3 = vector.broadcast %cst_3 : f32 to vector<1x256xf32>
    %4 = arith.divf %2, %3 : vector<1x256xf32>
    %cst_4 = arith.constant 0.000000e+00 : f32
    %5 = vector.broadcast %cst_4 : f32 to vector<1x22x22xf32>
    %c0_5 = arith.constant 0 : index
    %c0_6 = arith.constant 0 : index
    %c0_7 = arith.constant 0 : index
    %6 = vector.load %arg4[%c0_5, %c0_6, %c0_7] : memref<1x22x22xf32, #tpu.memory_space<vmem>>, vector<1x22x22xf32>
    tpu.vector_store %arg4[%c0_5, %c0_6, %c0_7], %5 {strides = array<i32>} : memref<1x22x22xf32, #tpu.memory_space<vmem>>, vector<1x22x22xf32>,
    %cst_8 = arith.constant 0.000000e+00 : f32
    %7 = vector.broadcast %cst_8 : f32 to vector<1x22x22xf32>
    %c0_9 = arith.constant 0 : index
    %c0_10 = arith.constant 0 : index
    %c0_11 = arith.constant 0 : index
    %8 = vector.load %arg5[%c0_9, %c0_10, %c0_11] : memref<1x22x22xf32, #tpu.memory_space<vmem>>, vector<1x22x22xf32>
    tpu.vector_store %arg5[%c0_9, %c0_10, %c0_11], %7 {strides = array<i32>} : memref<1x22x22xf32, #tpu.memory_space<vmem>>, vector<1x22x22xf32>,
    %9 = vector.extract_strided_slice %1 {offsets = [0, 0], sizes = [1, 16], strides = [1, 1]} : vector<1x256xf32> to vector<1x16xf32>
    %c0_12 = arith.constant 0 : index
    %c3 = arith.constant 3 : index
    %c3_13 = arith.constant 3 : index
    %10 = vector.load %arg4[%c0_12, %c3, %c3_13] : memref<1x22x22xf32, #tpu.memory_space<vmem>>, vector<1x1x16xf32>
    %11 = vector.shape_cast %10 : vector<1x1x16xf32> to vector<1x16xf32>
    %12 = vector.shape_cast %9 : vector<1x16xf32> to vector<1x1x16xf32>
    tpu.vector_store %arg4[%c0_12, %c3, %c3_13], %12 {strides = array<i32>} : memref<1x22x22xf32, #tpu.memory_space<vmem>>, vector<1x1x16xf32>,
    %13 = vector.extract_strided_slice %4 {offsets = [0, 0], sizes = [1, 16], strides = [1, 1]} : vector<1x256xf32> to vector<1x16xf32>
    %c0_14 = arith.constant 0 : index
    %c3_15 = arith.constant 3 : index
    %c3_16 = arith.constant 3 : index
    %14 = vector.load %arg5[%c0_14, %c3_15, %c3_16] : memref<1x22x22xf32, #tpu.memory_space<vmem>>, vector<1x1x16xf32>
    %15 = vector.shape_cast %14 : vector<1x1x16xf32> to vector<1x16xf32>
    %16 = vector.shape_cast %13 : vector<1x16xf32> to vector<1x1x16xf32>
    tpu.vector_store %arg5[%c0_14, %c3_15, %c3_16], %16 {strides = array<i32>} : memref<1x22x22xf32, #tpu.memory_space<vmem>>, vector<1x1x16xf32>,
    %17 = vector.extract_strided_slice %1 {offsets = [0, 16], sizes = [1, 16], strides = [1, 1]} : vector<1x256xf32> to vector<1x16xf32>
    %c0_17 = arith.constant 0 : index
    %c4 = arith.constant 4 : index
    %c3_18 = arith.constant 3 : index
    %18 = vector.load %arg4[%c0_17, %c4, %c3_18] : memref<1x22x22xf32, #tpu.memory_space<vmem>>, vector<1x1x16xf32>
    %19 = vector.shape_cast %18 : vector<1x1x16xf32> to vector<1x16xf32>
    %20 = vector.shape_cast %17 : vector<1x16xf32> to vector<1x1x16xf32>
    tpu.vector_store %arg4[%c0_17, %c4, %c3_18], %20 {strides = array<i32>} : memref<1x22x22xf32, #tpu.memory_space<vmem>>, vector<1x1x16xf32>,
    %21 = vector.extract_strided_slice %4 {offsets = [0, 16], sizes = [1, 16], strides = [1, 1]} : vector<1x256xf32> to vector<1x16xf32>
    %c0_19 = arith.constant 0 : index
    %c4_20 = arith.constant 4 : index
    %c3_21 = arith.constant 3 : index
    %22 = vector.load %arg5[%c0_19, %c4_20, %c3_21] : memref<1x22x22xf32, #tpu.memory_space<vmem>>, vector<1x1x16xf32>
    %23 = vector.shape_cast %22 : vector<1x1x16xf32> to vector<1x16xf32>
    %24 = vector.shape_cast %21 : vector<1x16xf32> to vector<1x1x16xf32>
    tpu.vector_store %arg5[%c0_19, %c4_20, %c3_21], %24 {strides = array<i32>} : memref<1x22x22xf32, #tpu.memory_space<vmem>>, vector<1x1x16xf32>,
    %25 = vector.extract_strided_slice %1 {offsets = [0, 32], sizes = [1, 16], strides = [1, 1]} : vector<1x256xf32> to vector<1x16xf32>
    %c0_22 = arith.constant 0 : index
    %c5 = arith.constant 5 : index
    %c3_23 = arith.constant 3 : index
    %26 = vector.load %arg4[%c0_22, %c5, %c3_23] : memref<1x22x22xf32, #tpu.memory_space<vmem>>, vector<1x1x16xf32>
    %27 = vector.shape_cast %26 : vector<1x1x16xf32> to vector<1x16xf32>
    %28 = vector.shape_cast %25 : vector<1x16xf32> to vector<1x1x16xf32>
    tpu.vector_store %arg4[%c0_22, %c5, %c3_23], %28 {strides = array<i32>} : memref<1x22x22xf32, #tpu.memory_space<vmem>>, vector<1x1x16xf32>,
    %29 = vector.extract_strided_slice %4 {offsets = [0, 32], sizes = [1, 16], strides = [1, 1]} : vector<1x256xf32> to vector<1x16xf32>
    %c0_24 = arith.constant 0 : index
    %c5_25 = arith.constant 5 : index
    %c3_26 = arith.constant 3 : index
    %30 = vector.load %arg5[%c0_24, %c5_25, %c3_26] : memref<1x22x22xf32, #tpu.memory_space<vmem>>, vector<1x1x16xf32>
    %31 = vector.shape_cast %30 : vector<1x1x16xf32> to vector<1x16xf32>
    %32 = vector.shape_cast %29 : vector<1x16xf32> to vector<1x1x16xf32>
    tpu.vector_store %arg5[%c0_24, %c5_25, %c3_26], %32 {strides = array<i32>} : memref<1x22x22xf32, #tpu.memory_space<vmem>>, vector<1x1x16xf32>,
    %33 = vector.extract_strided_slice %1 {offsets = [0, 48], sizes = [1, 16], strides = [1, 1]} : vector<1x256xf32> to vector<1x16xf32>
    %c0_27 = arith.constant 0 : index
    %c6 = arith.constant 6 : index
    %c3_28 = arith.constant 3 : index
    %34 = vector.load %arg4[%c0_27, %c6, %c3_28] : memref<1x22x22xf32, #tpu.memory_space<vmem>>, vector<1x1x16xf32>
    %35 = vector.shape_cast %34 : vector<1x1x16xf32> to vector<1x16xf32>
    %36 = vector.shape_cast %33 : vector<1x16xf32> to vector<1x1x16xf32>
    tpu.vector_store %arg4[%c0_27, %c6, %c3_28], %36 {strides = array<i32>} : memref<1x22x22xf32, #tpu.memory_space<vmem>>, vector<1x1x16xf32>,
    %37 = vector.extract_strided_slice %4 {offsets = [0, 48], sizes = [1, 16], strides = [1, 1]} : vector<1x256xf32> to vector<1x16xf32>
    %c0_29 = arith.constant 0 : index
    %c6_30 = arith.constant 6 : index
    %c3_31 = arith.constant 3 : index
    %38 = vector.load %arg5[%c0_29, %c6_30, %c3_31] : memref<1x22x22xf32, #tpu.memory_space<vmem>>, vector<1x1x16xf32>
    %39 = vector.shape_cast %38 : vector<1x1x16xf32> to vector<1x16xf32>
    %40 = vector.shape_cast %37 : vector<1x16xf32> to vector<1x1x16xf32>
    tpu.vector_store %arg5[%c0_29, %c6_30, %c3_31], %40 {strides = array<i32>} : memref<1x22x22xf32, #tpu.memory_space<vmem>>, vector<1x1x16xf32>,
    %41 = vector.extract_strided_slice %1 {offsets = [0, 64], sizes = [1, 16], strides = [1, 1]} : vector<1x256xf32> to vector<1x16xf32>
    %c0_32 = arith.constant 0 : index
    %c7 = arith.constant 7 : index
    %c3_33 = arith.constant 3 : index
    %42 = vector.load %arg4[%c0_32, %c7, %c3_33] : memref<1x22x22xf32, #tpu.memory_space<vmem>>, vector<1x1x16xf32>
    %43 = vector.shape_cast %42 : vector<1x1x16xf32> to vector<1x16xf32>
    %44 = vector.shape_cast %41 : vector<1x16xf32> to vector<1x1x16xf32>
    tpu.vector_store %arg4[%c0_32, %c7, %c3_33], %44 {strides = array<i32>} : memref<1x22x22xf32, #tpu.memory_space<vmem>>, vector<1x1x16xf32>,
    %45 = vector.extract_strided_slice %4 {offsets = [0, 64], sizes = [1, 16], strides = [1, 1]} : vector<1x256xf32> to vector<1x16xf32>
    %c0_34 = arith.constant 0 : index
    %c7_35 = arith.constant 7 : index
    %c3_36 = arith.constant 3 : index
    %46 = vector.load %arg5[%c0_34, %c7_35, %c3_36] : memref<1x22x22xf32, #tpu.memory_space<vmem>>, vector<1x1x16xf32>
    %47 = vector.shape_cast %46 : vector<1x1x16xf32> to vector<1x16xf32>
    %48 = vector.shape_cast %45 : vector<1x16xf32> to vector<1x1x16xf32>
    tpu.vector_store %arg5[%c0_34, %c7_35, %c3_36], %48 {strides = array<i32>} : memref<1x22x22xf32, #tpu.memory_space<vmem>>, vector<1x1x16xf32>,
    %49 = vector.extract_strided_slice %1 {offsets = [0, 80], sizes = [1, 16], strides = [1, 1]} : vector<1x256xf32> to vector<1x16xf32>
    %c0_37 = arith.constant 0 : index
    %c8 = arith.constant 8 : index
    %c3_38 = arith.constant 3 : index
    %50 = vector.load %arg4[%c0_37, %c8, %c3_38] : memref<1x22x22xf32, #tpu.memory_space<vmem>>, vector<1x1x16xf32>
    %51 = vector.shape_cast %50 : vector<1x1x16xf32> to vector<1x16xf32>
    %52 = vector.shape_cast %49 : vector<1x16xf32> to vector<1x1x16xf32>
    tpu.vector_store %arg4[%c0_37, %c8, %c3_38], %52 {strides = array<i32>} : memref<1x22x22xf32, #tpu.memory_space<vmem>>, vector<1x1x16xf32>,
    %53 = vector.extract_strided_slice %4 {offsets = [0, 80], sizes = [1, 16], strides = [1, 1]} : vector<1x256xf32> to vector<1x16xf32>
    %c0_39 = arith.constant 0 : index
    %c8_40 = arith.constant 8 : index
    %c3_41 = arith.constant 3 : index
    %54 = vector.load %arg5[%c0_39, %c8_40, %c3_41] : memref<1x22x22xf32, #tpu.memory_space<vmem>>, vector<1x1x16xf32>
    %55 = vector.shape_cast %54 : vector<1x1x16xf32> to vector<1x16xf32>
    %56 = vector.shape_cast %53 : vector<1x16xf32> to vector<1x1x16xf32>
    tpu.vector_store %arg5[%c0_39, %c8_40, %c3_41], %56 {strides = array<i32>} : memref<1x22x22xf32, #tpu.memory_space<vmem>>, vector<1x1x16xf32>,
    %57 = vector.extract_strided_slice %1 {offsets = [0, 96], sizes = [1, 16], strides = [1, 1]} : vector<1x256xf32> to vector<1x16xf32>
    %c0_42 = arith.constant 0 : index
    %c9 = arith.constant 9 : index
    %c3_43 = arith.constant 3 : index
    %58 = vector.load %arg4[%c0_42, %c9, %c3_43] : memref<1x22x22xf32, #tpu.memory_space<vmem>>, vector<1x1x16xf32>
    %59 = vector.shape_cast %58 : vector<1x1x16xf32> to vector<1x16xf32>
    %60 = vector.shape_cast %57 : vector<1x16xf32> to vector<1x1x16xf32>
    tpu.vector_store %arg4[%c0_42, %c9, %c3_43], %60 {strides = array<i32>} : memref<1x22x22xf32, #tpu.memory_space<vmem>>, vector<1x1x16xf32>,
    %61 = vector.extract_strided_slice %4 {offsets = [0, 96], sizes = [1, 16], strides = [1, 1]} : vector<1x256xf32> to vector<1x16xf32>
    %c0_44 = arith.constant 0 : index
    %c9_45 = arith.constant 9 : index
    %c3_46 = arith.constant 3 : index
    %62 = vector.load %arg5[%c0_44, %c9_45, %c3_46] : memref<1x22x22xf32, #tpu.memory_space<vmem>>, vector<1x1x16xf32>
    %63 = vector.shape_cast %62 : vector<1x1x16xf32> to vector<1x16xf32>
    %64 = vector.shape_cast %61 : vector<1x16xf32> to vector<1x1x16xf32>
    tpu.vector_store %arg5[%c0_44, %c9_45, %c3_46], %64 {strides = array<i32>} : memref<1x22x22xf32, #tpu.memory_space<vmem>>, vector<1x1x16xf32>,
    %65 = vector.extract_strided_slice %1 {offsets = [0, 112], sizes = [1, 16], strides = [1, 1]} : vector<1x256xf32> to vector<1x16xf32>
    %c0_47 = arith.constant 0 : index
    %c10 = arith.constant 10 : index
    %c3_48 = arith.constant 3 : index
    %66 = vector.load %arg4[%c0_47, %c10, %c3_48] : memref<1x22x22xf32, #tpu.memory_space<vmem>>, vector<1x1x16xf32>
    %67 = vector.shape_cast %66 : vector<1x1x16xf32> to vector<1x16xf32>
    %68 = vector.shape_cast %65 : vector<1x16xf32> to vector<1x1x16xf32>
    tpu.vector_store %arg4[%c0_47, %c10, %c3_48], %68 {strides = array<i32>} : memref<1x22x22xf32, #tpu.memory_space<vmem>>, vector<1x1x16xf32>,
    %69 = vector.extract_strided_slice %4 {offsets = [0, 112], sizes = [1, 16], strides = [1, 1]} : vector<1x256xf32> to vector<1x16xf32>
    %c0_49 = arith.constant 0 : index
    %c10_50 = arith.constant 10 : index
    %c3_51 = arith.constant 3 : index
    %70 = vector.load %arg5[%c0_49, %c10_50, %c3_51] : memref<1x22x22xf32, #tpu.memory_space<vmem>>, vector<1x1x16xf32>
    %71 = vector.shape_cast %70 : vector<1x1x16xf32> to vector<1x16xf32>
    %72 = vector.shape_cast %69 : vector<1x16xf32> to vector<1x1x16xf32>
    tpu.vector_store %arg5[%c0_49, %c10_50, %c3_51], %72 {strides = array<i32>} : memref<1x22x22xf32, #tpu.memory_space<vmem>>, vector<1x1x16xf32>,
    %73 = vector.extract_strided_slice %1 {offsets = [0, 128], sizes = [1, 16], strides = [1, 1]} : vector<1x256xf32> to vector<1x16xf32>
    %c0_52 = arith.constant 0 : index
    %c11 = arith.constant 11 : index
    %c3_53 = arith.constant 3 : index
    %74 = vector.load %arg4[%c0_52, %c11, %c3_53] : memref<1x22x22xf32, #tpu.memory_space<vmem>>, vector<1x1x16xf32>
    %75 = vector.shape_cast %74 : vector<1x1x16xf32> to vector<1x16xf32>
    %76 = vector.shape_cast %73 : vector<1x16xf32> to vector<1x1x16xf32>
    tpu.vector_store %arg4[%c0_52, %c11, %c3_53], %76 {strides = array<i32>} : memref<1x22x22xf32, #tpu.memory_space<vmem>>, vector<1x1x16xf32>,
    %77 = vector.extract_strided_slice %4 {offsets = [0, 128], sizes = [1, 16], strides = [1, 1]} : vector<1x256xf32> to vector<1x16xf32>
    %c0_54 = arith.constant 0 : index
    %c11_55 = arith.constant 11 : index
    %c3_56 = arith.constant 3 : index
    %78 = vector.load %arg5[%c0_54, %c11_55, %c3_56] : memref<1x22x22xf32, #tpu.memory_space<vmem>>, vector<1x1x16xf32>
    %79 = vector.shape_cast %78 : vector<1x1x16xf32> to vector<1x16xf32>
    %80 = vector.shape_cast %77 : vector<1x16xf32> to vector<1x1x16xf32>
    tpu.vector_store %arg5[%c0_54, %c11_55, %c3_56], %80 {strides = array<i32>} : memref<1x22x22xf32, #tpu.memory_space<vmem>>, vector<1x1x16xf32>,
    %81 = vector.extract_strided_slice %1 {offsets = [0, 144], sizes = [1, 16], strides = [1, 1]} : vector<1x256xf32> to vector<1x16xf32>
    %c0_57 = arith.constant 0 : index
    %c12 = arith.constant 12 : index
    %c3_58 = arith.constant 3 : index
    %82 = vector.load %arg4[%c0_57, %c12, %c3_58] : memref<1x22x22xf32, #tpu.memory_space<vmem>>, vector<1x1x16xf32>
    %83 = vector.shape_cast %82 : vector<1x1x16xf32> to vector<1x16xf32>
    %84 = vector.shape_cast %81 : vector<1x16xf32> to vector<1x1x16xf32>
    tpu.vector_store %arg4[%c0_57, %c12, %c3_58], %84 {strides = array<i32>} : memref<1x22x22xf32, #tpu.memory_space<vmem>>, vector<1x1x16xf32>,
    %85 = vector.extract_strided_slice %4 {offsets = [0, 144], sizes = [1, 16], strides = [1, 1]} : vector<1x256xf32> to vector<1x16xf32>
    %c0_59 = arith.constant 0 : index
    %c12_60 = arith.constant 12 : index
    %c3_61 = arith.constant 3 : index
    %86 = vector.load %arg5[%c0_59, %c12_60, %c3_61] : memref<1x22x22xf32, #tpu.memory_space<vmem>>, vector<1x1x16xf32>
    %87 = vector.shape_cast %86 : vector<1x1x16xf32> to vector<1x16xf32>
    %88 = vector.shape_cast %85 : vector<1x16xf32> to vector<1x1x16xf32>
    tpu.vector_store %arg5[%c0_59, %c12_60, %c3_61], %88 {strides = array<i32>} : memref<1x22x22xf32, #tpu.memory_space<vmem>>, vector<1x1x16xf32>,
    %89 = vector.extract_strided_slice %1 {offsets = [0, 160], sizes = [1, 16], strides = [1, 1]} : vector<1x256xf32> to vector<1x16xf32>
    %c0_62 = arith.constant 0 : index
    %c13 = arith.constant 13 : index
    %c3_63 = arith.constant 3 : index
    %90 = vector.load %arg4[%c0_62, %c13, %c3_63] : memref<1x22x22xf32, #tpu.memory_space<vmem>>, vector<1x1x16xf32>
    %91 = vector.shape_cast %90 : vector<1x1x16xf32> to vector<1x16xf32>
    %92 = vector.shape_cast %89 : vector<1x16xf32> to vector<1x1x16xf32>
    tpu.vector_store %arg4[%c0_62, %c13, %c3_63], %92 {strides = array<i32>} : memref<1x22x22xf32, #tpu.memory_space<vmem>>, vector<1x1x16xf32>,
    %93 = vector.extract_strided_slice %4 {offsets = [0, 160], sizes = [1, 16], strides = [1, 1]} : vector<1x256xf32> to vector<1x16xf32>
    %c0_64 = arith.constant 0 : index
    %c13_65 = arith.constant 13 : index
    %c3_66 = arith.constant 3 : index
    %94 = vector.load %arg5[%c0_64, %c13_65, %c3_66] : memref<1x22x22xf32, #tpu.memory_space<vmem>>, vector<1x1x16xf32>
    %95 = vector.shape_cast %94 : vector<1x1x16xf32> to vector<1x16xf32>
    %96 = vector.shape_cast %93 : vector<1x16xf32> to vector<1x1x16xf32>
    tpu.vector_store %arg5[%c0_64, %c13_65, %c3_66], %96 {strides = array<i32>} : memref<1x22x22xf32, #tpu.memory_space<vmem>>, vector<1x1x16xf32>,
    %97 = vector.extract_strided_slice %1 {offsets = [0, 176], sizes = [1, 16], strides = [1, 1]} : vector<1x256xf32> to vector<1x16xf32>
    %c0_67 = arith.constant 0 : index
    %c14 = arith.constant 14 : index
    %c3_68 = arith.constant 3 : index
    %98 = vector.load %arg4[%c0_67, %c14, %c3_68] : memref<1x22x22xf32, #tpu.memory_space<vmem>>, vector<1x1x16xf32>
    %99 = vector.shape_cast %98 : vector<1x1x16xf32> to vector<1x16xf32>
    %100 = vector.shape_cast %97 : vector<1x16xf32> to vector<1x1x16xf32>
    tpu.vector_store %arg4[%c0_67, %c14, %c3_68], %100 {strides = array<i32>} : memref<1x22x22xf32, #tpu.memory_space<vmem>>, vector<1x1x16xf32>,
    %101 = vector.extract_strided_slice %4 {offsets = [0, 176], sizes = [1, 16], strides = [1, 1]} : vector<1x256xf32> to vector<1x16xf32>
    %c0_69 = arith.constant 0 : index
    %c14_70 = arith.constant 14 : index
    %c3_71 = arith.constant 3 : index
    %102 = vector.load %arg5[%c0_69, %c14_70, %c3_71] : memref<1x22x22xf32, #tpu.memory_space<vmem>>, vector<1x1x16xf32>
    %103 = vector.shape_cast %102 : vector<1x1x16xf32> to vector<1x16xf32>
    %104 = vector.shape_cast %101 : vector<1x16xf32> to vector<1x1x16xf32>
    tpu.vector_store %arg5[%c0_69, %c14_70, %c3_71], %104 {strides = array<i32>} : memref<1x22x22xf32, #tpu.memory_space<vmem>>, vector<1x1x16xf32>,
    %105 = vector.extract_strided_slice %1 {offsets = [0, 192], sizes = [1, 16], strides = [1, 1]} : vector<1x256xf32> to vector<1x16xf32>
    %c0_72 = arith.constant 0 : index
    %c15 = arith.constant 15 : index
    %c3_73 = arith.constant 3 : index
    %106 = vector.load %arg4[%c0_72, %c15, %c3_73] : memref<1x22x22xf32, #tpu.memory_space<vmem>>, vector<1x1x16xf32>
    %107 = vector.shape_cast %106 : vector<1x1x16xf32> to vector<1x16xf32>
    %108 = vector.shape_cast %105 : vector<1x16xf32> to vector<1x1x16xf32>
    tpu.vector_store %arg4[%c0_72, %c15, %c3_73], %108 {strides = array<i32>} : memref<1x22x22xf32, #tpu.memory_space<vmem>>, vector<1x1x16xf32>,
    %109 = vector.extract_strided_slice %4 {offsets = [0, 192], sizes = [1, 16], strides = [1, 1]} : vector<1x256xf32> to vector<1x16xf32>
    %c0_74 = arith.constant 0 : index
    %c15_75 = arith.constant 15 : index
    %c3_76 = arith.constant 3 : index
    %110 = vector.load %arg5[%c0_74, %c15_75, %c3_76] : memref<1x22x22xf32, #tpu.memory_space<vmem>>, vector<1x1x16xf32>
    %111 = vector.shape_cast %110 : vector<1x1x16xf32> to vector<1x16xf32>
    %112 = vector.shape_cast %109 : vector<1x16xf32> to vector<1x1x16xf32>
    tpu.vector_store %arg5[%c0_74, %c15_75, %c3_76], %112 {strides = array<i32>} : memref<1x22x22xf32, #tpu.memory_space<vmem>>, vector<1x1x16xf32>,
    %113 = vector.extract_strided_slice %1 {offsets = [0, 208], sizes = [1, 16], strides = [1, 1]} : vector<1x256xf32> to vector<1x16xf32>
    %c0_77 = arith.constant 0 : index
    %c16 = arith.constant 16 : index
    %c3_78 = arith.constant 3 : index
    %114 = vector.load %arg4[%c0_77, %c16, %c3_78] : memref<1x22x22xf32, #tpu.memory_space<vmem>>, vector<1x1x16xf32>
    %115 = vector.shape_cast %114 : vector<1x1x16xf32> to vector<1x16xf32>
    %116 = vector.shape_cast %113 : vector<1x16xf32> to vector<1x1x16xf32>
    tpu.vector_store %arg4[%c0_77, %c16, %c3_78], %116 {strides = array<i32>} : memref<1x22x22xf32, #tpu.memory_space<vmem>>, vector<1x1x16xf32>,
    %117 = vector.extract_strided_slice %4 {offsets = [0, 208], sizes = [1, 16], strides = [1, 1]} : vector<1x256xf32> to vector<1x16xf32>
    %c0_79 = arith.constant 0 : index
    %c16_80 = arith.constant 16 : index
    %c3_81 = arith.constant 3 : index
    %118 = vector.load %arg5[%c0_79, %c16_80, %c3_81] : memref<1x22x22xf32, #tpu.memory_space<vmem>>, vector<1x1x16xf32>
    %119 = vector.shape_cast %118 : vector<1x1x16xf32> to vector<1x16xf32>
    %120 = vector.shape_cast %117 : vector<1x16xf32> to vector<1x1x16xf32>
    tpu.vector_store %arg5[%c0_79, %c16_80, %c3_81], %120 {strides = array<i32>} : memref<1x22x22xf32, #tpu.memory_space<vmem>>, vector<1x1x16xf32>,
    %121 = vector.extract_strided_slice %1 {offsets = [0, 224], sizes = [1, 16], strides = [1, 1]} : vector<1x256xf32> to vector<1x16xf32>
    %c0_82 = arith.constant 0 : index
    %c17 = arith.constant 17 : index
    %c3_83 = arith.constant 3 : index
    %122 = vector.load %arg4[%c0_82, %c17, %c3_83] : memref<1x22x22xf32, #tpu.memory_space<vmem>>, vector<1x1x16xf32>
    %123 = vector.shape_cast %122 : vector<1x1x16xf32> to vector<1x16xf32>
    %124 = vector.shape_cast %121 : vector<1x16xf32> to vector<1x1x16xf32>
    tpu.vector_store %arg4[%c0_82, %c17, %c3_83], %124 {strides = array<i32>} : memref<1x22x22xf32, #tpu.memory_space<vmem>>, vector<1x1x16xf32>,
    %125 = vector.extract_strided_slice %4 {offsets = [0, 224], sizes = [1, 16], strides = [1, 1]} : vector<1x256xf32> to vector<1x16xf32>
    %c0_84 = arith.constant 0 : index
    %c17_85 = arith.constant 17 : index
    %c3_86 = arith.constant 3 : index
    %126 = vector.load %arg5[%c0_84, %c17_85, %c3_86] : memref<1x22x22xf32, #tpu.memory_space<vmem>>, vector<1x1x16xf32>
    %127 = vector.shape_cast %126 : vector<1x1x16xf32> to vector<1x16xf32>
    %128 = vector.shape_cast %125 : vector<1x16xf32> to vector<1x1x16xf32>
    tpu.vector_store %arg5[%c0_84, %c17_85, %c3_86], %128 {strides = array<i32>} : memref<1x22x22xf32, #tpu.memory_space<vmem>>, vector<1x1x16xf32>,
    %129 = vector.extract_strided_slice %1 {offsets = [0, 240], sizes = [1, 16], strides = [1, 1]} : vector<1x256xf32> to vector<1x16xf32>
    %c0_87 = arith.constant 0 : index
    %c18 = arith.constant 18 : index
    %c3_88 = arith.constant 3 : index
    %130 = vector.load %arg4[%c0_87, %c18, %c3_88] : memref<1x22x22xf32, #tpu.memory_space<vmem>>, vector<1x1x16xf32>
    %131 = vector.shape_cast %130 : vector<1x1x16xf32> to vector<1x16xf32>
    %132 = vector.shape_cast %129 : vector<1x16xf32> to vector<1x1x16xf32>
    tpu.vector_store %arg4[%c0_87, %c18, %c3_88], %132 {strides = array<i32>} : memref<1x22x22xf32, #tpu.memory_space<vmem>>, vector<1x1x16xf32>,
    %133 = vector.extract_strided_slice %4 {offsets = [0, 240], sizes = [1, 16], strides = [1, 1]} : vector<1x256xf32> to vector<1x16xf32>
    %c0_89 = arith.constant 0 : index
    %c18_90 = arith.constant 18 : index
    %c3_91 = arith.constant 3 : index
    %134 = vector.load %arg5[%c0_89, %c18_90, %c3_91] : memref<1x22x22xf32, #tpu.memory_space<vmem>>, vector<1x1x16xf32>
    %135 = vector.shape_cast %134 : vector<1x1x16xf32> to vector<1x16xf32>
    %136 = vector.shape_cast %133 : vector<1x16xf32> to vector<1x1x16xf32>
    tpu.vector_store %arg5[%c0_89, %c18_90, %c3_91], %136 {strides = array<i32>} : memref<1x22x22xf32, #tpu.memory_space<vmem>>, vector<1x1x16xf32>,
    %cst_92 = arith.constant 0.000000e+00 : f32
    %137 = vector.broadcast %cst_92 : f32 to vector<1x16x16xf32>
    %c0_93 = arith.constant 0 : index
    %c0_94 = arith.constant 0 : index
    %c0_95 = arith.constant 0 : index
    %138 = vector.load %arg4[%c0_93, %c0_94, %c0_95] : memref<1x22x22xf32, #tpu.memory_space<vmem>>, vector<1x22x16xf32>
    %c0_96 = arith.constant 0 : index
    %c0_97 = arith.constant 0 : index
    %c0_98 = arith.constant 0 : index
    %139 = vector.load %arg5[%c0_96, %c0_97, %c0_98] : memref<1x22x22xf32, #tpu.memory_space<vmem>>, vector<1x22x16xf32>
    %c0_99 = arith.constant 0 : index
    %140 = memref.load %arg1[%c0_99] : memref<98xf32, #tpu.memory_space<smem>>
    %c49 = arith.constant 49 : index
    %141 = memref.load %arg1[%c49] : memref<98xf32, #tpu.memory_space<smem>>
    %142 = vector.extract_strided_slice %138 {offsets = [0, 0, 0], sizes = [1, 16, 16], strides = [1, 1, 1]} : vector<1x22x16xf32> to vector<1x16x16xf32>
    %143 = vector.broadcast %140 : f32 to vector<1x16x16xf32>
    %144 = arith.mulf %143, %142 : vector<1x16x16xf32>
    %145 = arith.addf %137, %144 : vector<1x16x16xf32>
    %146 = vector.extract_strided_slice %139 {offsets = [0, 0, 0], sizes = [1, 16, 16], strides = [1, 1, 1]} : vector<1x22x16xf32> to vector<1x16x16xf32>
    %147 = vector.broadcast %141 : f32 to vector<1x16x16xf32>
    %148 = arith.mulf %147, %146 : vector<1x16x16xf32>
    %149 = arith.addf %145, %148 : vector<1x16x16xf32>
    %c7_100 = arith.constant 7 : index
    %150 = memref.load %arg1[%c7_100] : memref<98xf32, #tpu.memory_space<smem>>
    %c56 = arith.constant 56 : index
    %151 = memref.load %arg1[%c56] : memref<98xf32, #tpu.memory_space<smem>>
    %152 = vector.extract_strided_slice %138 {offsets = [0, 1, 0], sizes = [1, 16, 16], strides = [1, 1, 1]} : vector<1x22x16xf32> to vector<1x16x16xf32>
    %153 = vector.broadcast %150 : f32 to vector<1x16x16xf32>
    %154 = arith.mulf %153, %152 : vector<1x16x16xf32>
    %155 = arith.addf %149, %154 : vector<1x16x16xf32>
    %156 = vector.extract_strided_slice %139 {offsets = [0, 1, 0], sizes = [1, 16, 16], strides = [1, 1, 1]} : vector<1x22x16xf32> to vector<1x16x16xf32>
    %157 = vector.broadcast %151 : f32 to vector<1x16x16xf32>
    %158 = arith.mulf %157, %156 : vector<1x16x16xf32>
    %159 = arith.addf %155, %158 : vector<1x16x16xf32>
    %c14_101 = arith.constant 14 : index
    %160 = memref.load %arg1[%c14_101] : memref<98xf32, #tpu.memory_space<smem>>
    %c63 = arith.constant 63 : index
    %161 = memref.load %arg1[%c63] : memref<98xf32, #tpu.memory_space<smem>>
    %162 = vector.extract_strided_slice %138 {offsets = [0, 2, 0], sizes = [1, 16, 16], strides = [1, 1, 1]} : vector<1x22x16xf32> to vector<1x16x16xf32>
    %163 = vector.broadcast %160 : f32 to vector<1x16x16xf32>
    %164 = arith.mulf %163, %162 : vector<1x16x16xf32>
    %165 = arith.addf %159, %164 : vector<1x16x16xf32>
    %166 = vector.extract_strided_slice %139 {offsets = [0, 2, 0], sizes = [1, 16, 16], strides = [1, 1, 1]} : vector<1x22x16xf32> to vector<1x16x16xf32>
    %167 = vector.broadcast %161 : f32 to vector<1x16x16xf32>
    %168 = arith.mulf %167, %166 : vector<1x16x16xf32>
    %169 = arith.addf %165, %168 : vector<1x16x16xf32>
    %c21 = arith.constant 21 : index
    %170 = memref.load %arg1[%c21] : memref<98xf32, #tpu.memory_space<smem>>
    %c70 = arith.constant 70 : index
    %171 = memref.load %arg1[%c70] : memref<98xf32, #tpu.memory_space<smem>>
    %172 = vector.extract_strided_slice %138 {offsets = [0, 3, 0], sizes = [1, 16, 16], strides = [1, 1, 1]} : vector<1x22x16xf32> to vector<1x16x16xf32>
    %173 = vector.broadcast %170 : f32 to vector<1x16x16xf32>
    %174 = arith.mulf %173, %172 : vector<1x16x16xf32>
    %175 = arith.addf %169, %174 : vector<1x16x16xf32>
    %176 = vector.extract_strided_slice %139 {offsets = [0, 3, 0], sizes = [1, 16, 16], strides = [1, 1, 1]} : vector<1x22x16xf32> to vector<1x16x16xf32>
    %177 = vector.broadcast %171 : f32 to vector<1x16x16xf32>
    %178 = arith.mulf %177, %176 : vector<1x16x16xf32>
    %179 = arith.addf %175, %178 : vector<1x16x16xf32>
    %c28 = arith.constant 28 : index
    %180 = memref.load %arg1[%c28] : memref<98xf32, #tpu.memory_space<smem>>
    %c77 = arith.constant 77 : index
    %181 = memref.load %arg1[%c77] : memref<98xf32, #tpu.memory_space<smem>>
    %182 = vector.extract_strided_slice %138 {offsets = [0, 4, 0], sizes = [1, 16, 16], strides = [1, 1, 1]} : vector<1x22x16xf32> to vector<1x16x16xf32>
    %183 = vector.broadcast %180 : f32 to vector<1x16x16xf32>
    %184 = arith.mulf %183, %182 : vector<1x16x16xf32>
    %185 = arith.addf %179, %184 : vector<1x16x16xf32>
    %186 = vector.extract_strided_slice %139 {offsets = [0, 4, 0], sizes = [1, 16, 16], strides = [1, 1, 1]} : vector<1x22x16xf32> to vector<1x16x16xf32>
    %187 = vector.broadcast %181 : f32 to vector<1x16x16xf32>
    %188 = arith.mulf %187, %186 : vector<1x16x16xf32>
    %189 = arith.addf %185, %188 : vector<1x16x16xf32>
    %c35 = arith.constant 35 : index
    %190 = memref.load %arg1[%c35] : memref<98xf32, #tpu.memory_space<smem>>
    %c84 = arith.constant 84 : index
    %191 = memref.load %arg1[%c84] : memref<98xf32, #tpu.memory_space<smem>>
    %192 = vector.extract_strided_slice %138 {offsets = [0, 5, 0], sizes = [1, 16, 16], strides = [1, 1, 1]} : vector<1x22x16xf32> to vector<1x16x16xf32>
    %193 = vector.broadcast %190 : f32 to vector<1x16x16xf32>
    %194 = arith.mulf %193, %192 : vector<1x16x16xf32>
    %195 = arith.addf %189, %194 : vector<1x16x16xf32>
    %196 = vector.extract_strided_slice %139 {offsets = [0, 5, 0], sizes = [1, 16, 16], strides = [1, 1, 1]} : vector<1x22x16xf32> to vector<1x16x16xf32>
    %197 = vector.broadcast %191 : f32 to vector<1x16x16xf32>
    %198 = arith.mulf %197, %196 : vector<1x16x16xf32>
    %199 = arith.addf %195, %198 : vector<1x16x16xf32>
    %c42 = arith.constant 42 : index
    %200 = memref.load %arg1[%c42] : memref<98xf32, #tpu.memory_space<smem>>
    %c91 = arith.constant 91 : index
    %201 = memref.load %arg1[%c91] : memref<98xf32, #tpu.memory_space<smem>>
    %202 = vector.extract_strided_slice %138 {offsets = [0, 6, 0], sizes = [1, 16, 16], strides = [1, 1, 1]} : vector<1x22x16xf32> to vector<1x16x16xf32>
    %203 = vector.broadcast %200 : f32 to vector<1x16x16xf32>
    %204 = arith.mulf %203, %202 : vector<1x16x16xf32>
    %205 = arith.addf %199, %204 : vector<1x16x16xf32>
    %206 = vector.extract_strided_slice %139 {offsets = [0, 6, 0], sizes = [1, 16, 16], strides = [1, 1, 1]} : vector<1x22x16xf32> to vector<1x16x16xf32>
    %207 = vector.broadcast %201 : f32 to vector<1x16x16xf32>
    %208 = arith.mulf %207, %206 : vector<1x16x16xf32>
    %209 = arith.addf %205, %208 : vector<1x16x16xf32>
    %c0_102 = arith.constant 0 : index
    %c0_103 = arith.constant 0 : index
    %c1 = arith.constant 1 : index
    %210 = vector.load %arg4[%c0_102, %c0_103, %c1] : memref<1x22x22xf32, #tpu.memory_space<vmem>>, vector<1x22x16xf32>
    %c0_104 = arith.constant 0 : index
    %c0_105 = arith.constant 0 : index
    %c1_106 = arith.constant 1 : index
    %211 = vector.load %arg5[%c0_104, %c0_105, %c1_106] : memref<1x22x22xf32, #tpu.memory_space<vmem>>, vector<1x22x16xf32>
    %c1_107 = arith.constant 1 : index
    %212 = memref.load %arg1[%c1_107] : memref<98xf32, #tpu.memory_space<smem>>
    %c50 = arith.constant 50 : index
    %213 = memref.load %arg1[%c50] : memref<98xf32, #tpu.memory_space<smem>>
    %214 = vector.extract_strided_slice %210 {offsets = [0, 0, 0], sizes = [1, 16, 16], strides = [1, 1, 1]} : vector<1x22x16xf32> to vector<1x16x16xf32>
    %215 = vector.broadcast %212 : f32 to vector<1x16x16xf32>
    %216 = arith.mulf %215, %214 : vector<1x16x16xf32>
    %217 = arith.addf %209, %216 : vector<1x16x16xf32>
    %218 = vector.extract_strided_slice %211 {offsets = [0, 0, 0], sizes = [1, 16, 16], strides = [1, 1, 1]} : vector<1x22x16xf32> to vector<1x16x16xf32>
    %219 = vector.broadcast %213 : f32 to vector<1x16x16xf32>
    %220 = arith.mulf %219, %218 : vector<1x16x16xf32>
    %221 = arith.addf %217, %220 : vector<1x16x16xf32>
    %c8_108 = arith.constant 8 : index
    %222 = memref.load %arg1[%c8_108] : memref<98xf32, #tpu.memory_space<smem>>
    %c57 = arith.constant 57 : index
    %223 = memref.load %arg1[%c57] : memref<98xf32, #tpu.memory_space<smem>>
    %224 = vector.extract_strided_slice %210 {offsets = [0, 1, 0], sizes = [1, 16, 16], strides = [1, 1, 1]} : vector<1x22x16xf32> to vector<1x16x16xf32>
    %225 = vector.broadcast %222 : f32 to vector<1x16x16xf32>
    %226 = arith.mulf %225, %224 : vector<1x16x16xf32>
    %227 = arith.addf %221, %226 : vector<1x16x16xf32>
    %228 = vector.extract_strided_slice %211 {offsets = [0, 1, 0], sizes = [1, 16, 16], strides = [1, 1, 1]} : vector<1x22x16xf32> to vector<1x16x16xf32>
    %229 = vector.broadcast %223 : f32 to vector<1x16x16xf32>
    %230 = arith.mulf %229, %228 : vector<1x16x16xf32>
    %231 = arith.addf %227, %230 : vector<1x16x16xf32>
    %c15_109 = arith.constant 15 : index
    %232 = memref.load %arg1[%c15_109] : memref<98xf32, #tpu.memory_space<smem>>
    %c64 = arith.constant 64 : index
    %233 = memref.load %arg1[%c64] : memref<98xf32, #tpu.memory_space<smem>>
    %234 = vector.extract_strided_slice %210 {offsets = [0, 2, 0], sizes = [1, 16, 16], strides = [1, 1, 1]} : vector<1x22x16xf32> to vector<1x16x16xf32>
    %235 = vector.broadcast %232 : f32 to vector<1x16x16xf32>
    %236 = arith.mulf %235, %234 : vector<1x16x16xf32>
    %237 = arith.addf %231, %236 : vector<1x16x16xf32>
    %238 = vector.extract_strided_slice %211 {offsets = [0, 2, 0], sizes = [1, 16, 16], strides = [1, 1, 1]} : vector<1x22x16xf32> to vector<1x16x16xf32>
    %239 = vector.broadcast %233 : f32 to vector<1x16x16xf32>
    %240 = arith.mulf %239, %238 : vector<1x16x16xf32>
    %241 = arith.addf %237, %240 : vector<1x16x16xf32>
    %c22 = arith.constant 22 : index
    %242 = memref.load %arg1[%c22] : memref<98xf32, #tpu.memory_space<smem>>
    %c71 = arith.constant 71 : index
    %243 = memref.load %arg1[%c71] : memref<98xf32, #tpu.memory_space<smem>>
    %244 = vector.extract_strided_slice %210 {offsets = [0, 3, 0], sizes = [1, 16, 16], strides = [1, 1, 1]} : vector<1x22x16xf32> to vector<1x16x16xf32>
    %245 = vector.broadcast %242 : f32 to vector<1x16x16xf32>
    %246 = arith.mulf %245, %244 : vector<1x16x16xf32>
    %247 = arith.addf %241, %246 : vector<1x16x16xf32>
    %248 = vector.extract_strided_slice %211 {offsets = [0, 3, 0], sizes = [1, 16, 16], strides = [1, 1, 1]} : vector<1x22x16xf32> to vector<1x16x16xf32>
    %249 = vector.broadcast %243 : f32 to vector<1x16x16xf32>
    %250 = arith.mulf %249, %248 : vector<1x16x16xf32>
    %251 = arith.addf %247, %250 : vector<1x16x16xf32>
    %c29 = arith.constant 29 : index
    %252 = memref.load %arg1[%c29] : memref<98xf32, #tpu.memory_space<smem>>
    %c78 = arith.constant 78 : index
    %253 = memref.load %arg1[%c78] : memref<98xf32, #tpu.memory_space<smem>>
    %254 = vector.extract_strided_slice %210 {offsets = [0, 4, 0], sizes = [1, 16, 16], strides = [1, 1, 1]} : vector<1x22x16xf32> to vector<1x16x16xf32>
    %255 = vector.broadcast %252 : f32 to vector<1x16x16xf32>
    %256 = arith.mulf %255, %254 : vector<1x16x16xf32>
    %257 = arith.addf %251, %256 : vector<1x16x16xf32>
    %258 = vector.extract_strided_slice %211 {offsets = [0, 4, 0], sizes = [1, 16, 16], strides = [1, 1, 1]} : vector<1x22x16xf32> to vector<1x16x16xf32>
    %259 = vector.broadcast %253 : f32 to vector<1x16x16xf32>
    %260 = arith.mulf %259, %258 : vector<1x16x16xf32>
    %261 = arith.addf %257, %260 : vector<1x16x16xf32>
    %c36 = arith.constant 36 : index
    %262 = memref.load %arg1[%c36] : memref<98xf32, #tpu.memory_space<smem>>
    %c85 = arith.constant 85 : index
    %263 = memref.load %arg1[%c85] : memref<98xf32, #tpu.memory_space<smem>>
    %264 = vector.extract_strided_slice %210 {offsets = [0, 5, 0], sizes = [1, 16, 16], strides = [1, 1, 1]} : vector<1x22x16xf32> to vector<1x16x16xf32>
    %265 = vector.broadcast %262 : f32 to vector<1x16x16xf32>
    %266 = arith.mulf %265, %264 : vector<1x16x16xf32>
    %267 = arith.addf %261, %266 : vector<1x16x16xf32>
    %268 = vector.extract_strided_slice %211 {offsets = [0, 5, 0], sizes = [1, 16, 16], strides = [1, 1, 1]} : vector<1x22x16xf32> to vector<1x16x16xf32>
    %269 = vector.broadcast %263 : f32 to vector<1x16x16xf32>
    %270 = arith.mulf %269, %268 : vector<1x16x16xf32>
    %271 = arith.addf %267, %270 : vector<1x16x16xf32>
    %c43 = arith.constant 43 : index
    %272 = memref.load %arg1[%c43] : memref<98xf32, #tpu.memory_space<smem>>
    %c92 = arith.constant 92 : index
    %273 = memref.load %arg1[%c92] : memref<98xf32, #tpu.memory_space<smem>>
    %274 = vector.extract_strided_slice %210 {offsets = [0, 6, 0], sizes = [1, 16, 16], strides = [1, 1, 1]} : vector<1x22x16xf32> to vector<1x16x16xf32>
    %275 = vector.broadcast %272 : f32 to vector<1x16x16xf32>
    %276 = arith.mulf %275, %274 : vector<1x16x16xf32>
    %277 = arith.addf %271, %276 : vector<1x16x16xf32>
    %278 = vector.extract_strided_slice %211 {offsets = [0, 6, 0], sizes = [1, 16, 16], strides = [1, 1, 1]} : vector<1x22x16xf32> to vector<1x16x16xf32>
    %279 = vector.broadcast %273 : f32 to vector<1x16x16xf32>
    %280 = arith.mulf %279, %278 : vector<1x16x16xf32>
    %281 = arith.addf %277, %280 : vector<1x16x16xf32>
    %c0_110 = arith.constant 0 : index
    %c0_111 = arith.constant 0 : index
    %c2 = arith.constant 2 : index
    %282 = vector.load %arg4[%c0_110, %c0_111, %c2] : memref<1x22x22xf32, #tpu.memory_space<vmem>>, vector<1x22x16xf32>
    %c0_112 = arith.constant 0 : index
    %c0_113 = arith.constant 0 : index
    %c2_114 = arith.constant 2 : index
    %283 = vector.load %arg5[%c0_112, %c0_113, %c2_114] : memref<1x22x22xf32, #tpu.memory_space<vmem>>, vector<1x22x16xf32>
    %c2_115 = arith.constant 2 : index
    %284 = memref.load %arg1[%c2_115] : memref<98xf32, #tpu.memory_space<smem>>
    %c51 = arith.constant 51 : index
    %285 = memref.load %arg1[%c51] : memref<98xf32, #tpu.memory_space<smem>>
    %286 = vector.extract_strided_slice %282 {offsets = [0, 0, 0], sizes = [1, 16, 16], strides = [1, 1, 1]} : vector<1x22x16xf32> to vector<1x16x16xf32>
    %287 = vector.broadcast %284 : f32 to vector<1x16x16xf32>
    %288 = arith.mulf %287, %286 : vector<1x16x16xf32>
    %289 = arith.addf %281, %288 : vector<1x16x16xf32>
    %290 = vector.extract_strided_slice %283 {offsets = [0, 0, 0], sizes = [1, 16, 16], strides = [1, 1, 1]} : vector<1x22x16xf32> to vector<1x16x16xf32>
    %291 = vector.broadcast %285 : f32 to vector<1x16x16xf32>
    %292 = arith.mulf %291, %290 : vector<1x16x16xf32>
    %293 = arith.addf %289, %292 : vector<1x16x16xf32>
    %c9_116 = arith.constant 9 : index
    %294 = memref.load %arg1[%c9_116] : memref<98xf32, #tpu.memory_space<smem>>
    %c58 = arith.constant 58 : index
    %295 = memref.load %arg1[%c58] : memref<98xf32, #tpu.memory_space<smem>>
    %296 = vector.extract_strided_slice %282 {offsets = [0, 1, 0], sizes = [1, 16, 16], strides = [1, 1, 1]} : vector<1x22x16xf32> to vector<1x16x16xf32>
    %297 = vector.broadcast %294 : f32 to vector<1x16x16xf32>
    %298 = arith.mulf %297, %296 : vector<1x16x16xf32>
    %299 = arith.addf %293, %298 : vector<1x16x16xf32>
    %300 = vector.extract_strided_slice %283 {offsets = [0, 1, 0], sizes = [1, 16, 16], strides = [1, 1, 1]} : vector<1x22x16xf32> to vector<1x16x16xf32>
    %301 = vector.broadcast %295 : f32 to vector<1x16x16xf32>
    %302 = arith.mulf %301, %300 : vector<1x16x16xf32>
    %303 = arith.addf %299, %302 : vector<1x16x16xf32>
    %c16_117 = arith.constant 16 : index
    %304 = memref.load %arg1[%c16_117] : memref<98xf32, #tpu.memory_space<smem>>
    %c65 = arith.constant 65 : index
    %305 = memref.load %arg1[%c65] : memref<98xf32, #tpu.memory_space<smem>>
    %306 = vector.extract_strided_slice %282 {offsets = [0, 2, 0], sizes = [1, 16, 16], strides = [1, 1, 1]} : vector<1x22x16xf32> to vector<1x16x16xf32>
    %307 = vector.broadcast %304 : f32 to vector<1x16x16xf32>
    %308 = arith.mulf %307, %306 : vector<1x16x16xf32>
    %309 = arith.addf %303, %308 : vector<1x16x16xf32>
    %310 = vector.extract_strided_slice %283 {offsets = [0, 2, 0], sizes = [1, 16, 16], strides = [1, 1, 1]} : vector<1x22x16xf32> to vector<1x16x16xf32>
    %311 = vector.broadcast %305 : f32 to vector<1x16x16xf32>
    %312 = arith.mulf %311, %310 : vector<1x16x16xf32>
    %313 = arith.addf %309, %312 : vector<1x16x16xf32>
    %c23 = arith.constant 23 : index
    %314 = memref.load %arg1[%c23] : memref<98xf32, #tpu.memory_space<smem>>
    %c72 = arith.constant 72 : index
    %315 = memref.load %arg1[%c72] : memref<98xf32, #tpu.memory_space<smem>>
    %316 = vector.extract_strided_slice %282 {offsets = [0, 3, 0], sizes = [1, 16, 16], strides = [1, 1, 1]} : vector<1x22x16xf32> to vector<1x16x16xf32>
    %317 = vector.broadcast %314 : f32 to vector<1x16x16xf32>
    %318 = arith.mulf %317, %316 : vector<1x16x16xf32>
    %319 = arith.addf %313, %318 : vector<1x16x16xf32>
    %320 = vector.extract_strided_slice %283 {offsets = [0, 3, 0], sizes = [1, 16, 16], strides = [1, 1, 1]} : vector<1x22x16xf32> to vector<1x16x16xf32>
    %321 = vector.broadcast %315 : f32 to vector<1x16x16xf32>
    %322 = arith.mulf %321, %320 : vector<1x16x16xf32>
    %323 = arith.addf %319, %322 : vector<1x16x16xf32>
    %c30 = arith.constant 30 : index
    %324 = memref.load %arg1[%c30] : memref<98xf32, #tpu.memory_space<smem>>
    %c79 = arith.constant 79 : index
    %325 = memref.load %arg1[%c79] : memref<98xf32, #tpu.memory_space<smem>>
    %326 = vector.extract_strided_slice %282 {offsets = [0, 4, 0], sizes = [1, 16, 16], strides = [1, 1, 1]} : vector<1x22x16xf32> to vector<1x16x16xf32>
    %327 = vector.broadcast %324 : f32 to vector<1x16x16xf32>
    %328 = arith.mulf %327, %326 : vector<1x16x16xf32>
    %329 = arith.addf %323, %328 : vector<1x16x16xf32>
    %330 = vector.extract_strided_slice %283 {offsets = [0, 4, 0], sizes = [1, 16, 16], strides = [1, 1, 1]} : vector<1x22x16xf32> to vector<1x16x16xf32>
    %331 = vector.broadcast %325 : f32 to vector<1x16x16xf32>
    %332 = arith.mulf %331, %330 : vector<1x16x16xf32>
    %333 = arith.addf %329, %332 : vector<1x16x16xf32>
    %c37 = arith.constant 37 : index
    %334 = memref.load %arg1[%c37] : memref<98xf32, #tpu.memory_space<smem>>
    %c86 = arith.constant 86 : index
    %335 = memref.load %arg1[%c86] : memref<98xf32, #tpu.memory_space<smem>>
    %336 = vector.extract_strided_slice %282 {offsets = [0, 5, 0], sizes = [1, 16, 16], strides = [1, 1, 1]} : vector<1x22x16xf32> to vector<1x16x16xf32>
    %337 = vector.broadcast %334 : f32 to vector<1x16x16xf32>
    %338 = arith.mulf %337, %336 : vector<1x16x16xf32>
    %339 = arith.addf %333, %338 : vector<1x16x16xf32>
    %340 = vector.extract_strided_slice %283 {offsets = [0, 5, 0], sizes = [1, 16, 16], strides = [1, 1, 1]} : vector<1x22x16xf32> to vector<1x16x16xf32>
    %341 = vector.broadcast %335 : f32 to vector<1x16x16xf32>
    %342 = arith.mulf %341, %340 : vector<1x16x16xf32>
    %343 = arith.addf %339, %342 : vector<1x16x16xf32>
    %c44 = arith.constant 44 : index
    %344 = memref.load %arg1[%c44] : memref<98xf32, #tpu.memory_space<smem>>
    %c93 = arith.constant 93 : index
    %345 = memref.load %arg1[%c93] : memref<98xf32, #tpu.memory_space<smem>>
    %346 = vector.extract_strided_slice %282 {offsets = [0, 6, 0], sizes = [1, 16, 16], strides = [1, 1, 1]} : vector<1x22x16xf32> to vector<1x16x16xf32>
    %347 = vector.broadcast %344 : f32 to vector<1x16x16xf32>
    %348 = arith.mulf %347, %346 : vector<1x16x16xf32>
    %349 = arith.addf %343, %348 : vector<1x16x16xf32>
    %350 = vector.extract_strided_slice %283 {offsets = [0, 6, 0], sizes = [1, 16, 16], strides = [1, 1, 1]} : vector<1x22x16xf32> to vector<1x16x16xf32>
    %351 = vector.broadcast %345 : f32 to vector<1x16x16xf32>
    %352 = arith.mulf %351, %350 : vector<1x16x16xf32>
    %353 = arith.addf %349, %352 : vector<1x16x16xf32>
    %c0_118 = arith.constant 0 : index
    %c0_119 = arith.constant 0 : index
    %c3_120 = arith.constant 3 : index
    %354 = vector.load %arg4[%c0_118, %c0_119, %c3_120] : memref<1x22x22xf32, #tpu.memory_space<vmem>>, vector<1x22x16xf32>
    %c0_121 = arith.constant 0 : index
    %c0_122 = arith.constant 0 : index
    %c3_123 = arith.constant 3 : index
    %355 = vector.load %arg5[%c0_121, %c0_122, %c3_123] : memref<1x22x22xf32, #tpu.memory_space<vmem>>, vector<1x22x16xf32>
    %c3_124 = arith.constant 3 : index
    %356 = memref.load %arg1[%c3_124] : memref<98xf32, #tpu.memory_space<smem>>
    %c52 = arith.constant 52 : index
    %357 = memref.load %arg1[%c52] : memref<98xf32, #tpu.memory_space<smem>>
    %358 = vector.extract_strided_slice %354 {offsets = [0, 0, 0], sizes = [1, 16, 16], strides = [1, 1, 1]} : vector<1x22x16xf32> to vector<1x16x16xf32>
    %359 = vector.broadcast %356 : f32 to vector<1x16x16xf32>
    %360 = arith.mulf %359, %358 : vector<1x16x16xf32>
    %361 = arith.addf %353, %360 : vector<1x16x16xf32>
    %362 = vector.extract_strided_slice %355 {offsets = [0, 0, 0], sizes = [1, 16, 16], strides = [1, 1, 1]} : vector<1x22x16xf32> to vector<1x16x16xf32>
    %363 = vector.broadcast %357 : f32 to vector<1x16x16xf32>
    %364 = arith.mulf %363, %362 : vector<1x16x16xf32>
    %365 = arith.addf %361, %364 : vector<1x16x16xf32>
    %c10_125 = arith.constant 10 : index
    %366 = memref.load %arg1[%c10_125] : memref<98xf32, #tpu.memory_space<smem>>
    %c59 = arith.constant 59 : index
    %367 = memref.load %arg1[%c59] : memref<98xf32, #tpu.memory_space<smem>>
    %368 = vector.extract_strided_slice %354 {offsets = [0, 1, 0], sizes = [1, 16, 16], strides = [1, 1, 1]} : vector<1x22x16xf32> to vector<1x16x16xf32>
    %369 = vector.broadcast %366 : f32 to vector<1x16x16xf32>
    %370 = arith.mulf %369, %368 : vector<1x16x16xf32>
    %371 = arith.addf %365, %370 : vector<1x16x16xf32>
    %372 = vector.extract_strided_slice %355 {offsets = [0, 1, 0], sizes = [1, 16, 16], strides = [1, 1, 1]} : vector<1x22x16xf32> to vector<1x16x16xf32>
    %373 = vector.broadcast %367 : f32 to vector<1x16x16xf32>
    %374 = arith.mulf %373, %372 : vector<1x16x16xf32>
    %375 = arith.addf %371, %374 : vector<1x16x16xf32>
    %c17_126 = arith.constant 17 : index
    %376 = memref.load %arg1[%c17_126] : memref<98xf32, #tpu.memory_space<smem>>
    %c66 = arith.constant 66 : index
    %377 = memref.load %arg1[%c66] : memref<98xf32, #tpu.memory_space<smem>>
    %378 = vector.extract_strided_slice %354 {offsets = [0, 2, 0], sizes = [1, 16, 16], strides = [1, 1, 1]} : vector<1x22x16xf32> to vector<1x16x16xf32>
    %379 = vector.broadcast %376 : f32 to vector<1x16x16xf32>
    %380 = arith.mulf %379, %378 : vector<1x16x16xf32>
    %381 = arith.addf %375, %380 : vector<1x16x16xf32>
    %382 = vector.extract_strided_slice %355 {offsets = [0, 2, 0], sizes = [1, 16, 16], strides = [1, 1, 1]} : vector<1x22x16xf32> to vector<1x16x16xf32>
    %383 = vector.broadcast %377 : f32 to vector<1x16x16xf32>
    %384 = arith.mulf %383, %382 : vector<1x16x16xf32>
    %385 = arith.addf %381, %384 : vector<1x16x16xf32>
    %c24 = arith.constant 24 : index
    %386 = memref.load %arg1[%c24] : memref<98xf32, #tpu.memory_space<smem>>
    %c73 = arith.constant 73 : index
    %387 = memref.load %arg1[%c73] : memref<98xf32, #tpu.memory_space<smem>>
    %388 = vector.extract_strided_slice %354 {offsets = [0, 3, 0], sizes = [1, 16, 16], strides = [1, 1, 1]} : vector<1x22x16xf32> to vector<1x16x16xf32>
    %389 = vector.broadcast %386 : f32 to vector<1x16x16xf32>
    %390 = arith.mulf %389, %388 : vector<1x16x16xf32>
    %391 = arith.addf %385, %390 : vector<1x16x16xf32>
    %392 = vector.extract_strided_slice %355 {offsets = [0, 3, 0], sizes = [1, 16, 16], strides = [1, 1, 1]} : vector<1x22x16xf32> to vector<1x16x16xf32>
    %393 = vector.broadcast %387 : f32 to vector<1x16x16xf32>
    %394 = arith.mulf %393, %392 : vector<1x16x16xf32>
    %395 = arith.addf %391, %394 : vector<1x16x16xf32>
    %c31 = arith.constant 31 : index
    %396 = memref.load %arg1[%c31] : memref<98xf32, #tpu.memory_space<smem>>
    %c80 = arith.constant 80 : index
    %397 = memref.load %arg1[%c80] : memref<98xf32, #tpu.memory_space<smem>>
    %398 = vector.extract_strided_slice %354 {offsets = [0, 4, 0], sizes = [1, 16, 16], strides = [1, 1, 1]} : vector<1x22x16xf32> to vector<1x16x16xf32>
    %399 = vector.broadcast %396 : f32 to vector<1x16x16xf32>
    %400 = arith.mulf %399, %398 : vector<1x16x16xf32>
    %401 = arith.addf %395, %400 : vector<1x16x16xf32>
    %402 = vector.extract_strided_slice %355 {offsets = [0, 4, 0], sizes = [1, 16, 16], strides = [1, 1, 1]} : vector<1x22x16xf32> to vector<1x16x16xf32>
    %403 = vector.broadcast %397 : f32 to vector<1x16x16xf32>
    %404 = arith.mulf %403, %402 : vector<1x16x16xf32>
    %405 = arith.addf %401, %404 : vector<1x16x16xf32>
    %c38 = arith.constant 38 : index
    %406 = memref.load %arg1[%c38] : memref<98xf32, #tpu.memory_space<smem>>
    %c87 = arith.constant 87 : index
    %407 = memref.load %arg1[%c87] : memref<98xf32, #tpu.memory_space<smem>>
    %408 = vector.extract_strided_slice %354 {offsets = [0, 5, 0], sizes = [1, 16, 16], strides = [1, 1, 1]} : vector<1x22x16xf32> to vector<1x16x16xf32>
    %409 = vector.broadcast %406 : f32 to vector<1x16x16xf32>
    %410 = arith.mulf %409, %408 : vector<1x16x16xf32>
    %411 = arith.addf %405, %410 : vector<1x16x16xf32>
    %412 = vector.extract_strided_slice %355 {offsets = [0, 5, 0], sizes = [1, 16, 16], strides = [1, 1, 1]} : vector<1x22x16xf32> to vector<1x16x16xf32>
    %413 = vector.broadcast %407 : f32 to vector<1x16x16xf32>
    %414 = arith.mulf %413, %412 : vector<1x16x16xf32>
    %415 = arith.addf %411, %414 : vector<1x16x16xf32>
    %c45 = arith.constant 45 : index
    %416 = memref.load %arg1[%c45] : memref<98xf32, #tpu.memory_space<smem>>
    %c94 = arith.constant 94 : index
    %417 = memref.load %arg1[%c94] : memref<98xf32, #tpu.memory_space<smem>>
    %418 = vector.extract_strided_slice %354 {offsets = [0, 6, 0], sizes = [1, 16, 16], strides = [1, 1, 1]} : vector<1x22x16xf32> to vector<1x16x16xf32>
    %419 = vector.broadcast %416 : f32 to vector<1x16x16xf32>
    %420 = arith.mulf %419, %418 : vector<1x16x16xf32>
    %421 = arith.addf %415, %420 : vector<1x16x16xf32>
    %422 = vector.extract_strided_slice %355 {offsets = [0, 6, 0], sizes = [1, 16, 16], strides = [1, 1, 1]} : vector<1x22x16xf32> to vector<1x16x16xf32>
    %423 = vector.broadcast %417 : f32 to vector<1x16x16xf32>
    %424 = arith.mulf %423, %422 : vector<1x16x16xf32>
    %425 = arith.addf %421, %424 : vector<1x16x16xf32>
    %c0_127 = arith.constant 0 : index
    %c0_128 = arith.constant 0 : index
    %c4_129 = arith.constant 4 : index
    %426 = vector.load %arg4[%c0_127, %c0_128, %c4_129] : memref<1x22x22xf32, #tpu.memory_space<vmem>>, vector<1x22x16xf32>
    %c0_130 = arith.constant 0 : index
    %c0_131 = arith.constant 0 : index
    %c4_132 = arith.constant 4 : index
    %427 = vector.load %arg5[%c0_130, %c0_131, %c4_132] : memref<1x22x22xf32, #tpu.memory_space<vmem>>, vector<1x22x16xf32>
    %c4_133 = arith.constant 4 : index
    %428 = memref.load %arg1[%c4_133] : memref<98xf32, #tpu.memory_space<smem>>
    %c53 = arith.constant 53 : index
    %429 = memref.load %arg1[%c53] : memref<98xf32, #tpu.memory_space<smem>>
    %430 = vector.extract_strided_slice %426 {offsets = [0, 0, 0], sizes = [1, 16, 16], strides = [1, 1, 1]} : vector<1x22x16xf32> to vector<1x16x16xf32>
    %431 = vector.broadcast %428 : f32 to vector<1x16x16xf32>
    %432 = arith.mulf %431, %430 : vector<1x16x16xf32>
    %433 = arith.addf %425, %432 : vector<1x16x16xf32>
    %434 = vector.extract_strided_slice %427 {offsets = [0, 0, 0], sizes = [1, 16, 16], strides = [1, 1, 1]} : vector<1x22x16xf32> to vector<1x16x16xf32>
    %435 = vector.broadcast %429 : f32 to vector<1x16x16xf32>
    %436 = arith.mulf %435, %434 : vector<1x16x16xf32>
    %437 = arith.addf %433, %436 : vector<1x16x16xf32>
    %c11_134 = arith.constant 11 : index
    %438 = memref.load %arg1[%c11_134] : memref<98xf32, #tpu.memory_space<smem>>
    %c60 = arith.constant 60 : index
    %439 = memref.load %arg1[%c60] : memref<98xf32, #tpu.memory_space<smem>>
    %440 = vector.extract_strided_slice %426 {offsets = [0, 1, 0], sizes = [1, 16, 16], strides = [1, 1, 1]} : vector<1x22x16xf32> to vector<1x16x16xf32>
    %441 = vector.broadcast %438 : f32 to vector<1x16x16xf32>
    %442 = arith.mulf %441, %440 : vector<1x16x16xf32>
    %443 = arith.addf %437, %442 : vector<1x16x16xf32>
    %444 = vector.extract_strided_slice %427 {offsets = [0, 1, 0], sizes = [1, 16, 16], strides = [1, 1, 1]} : vector<1x22x16xf32> to vector<1x16x16xf32>
    %445 = vector.broadcast %439 : f32 to vector<1x16x16xf32>
    %446 = arith.mulf %445, %444 : vector<1x16x16xf32>
    %447 = arith.addf %443, %446 : vector<1x16x16xf32>
    %c18_135 = arith.constant 18 : index
    %448 = memref.load %arg1[%c18_135] : memref<98xf32, #tpu.memory_space<smem>>
    %c67 = arith.constant 67 : index
    %449 = memref.load %arg1[%c67] : memref<98xf32, #tpu.memory_space<smem>>
    %450 = vector.extract_strided_slice %426 {offsets = [0, 2, 0], sizes = [1, 16, 16], strides = [1, 1, 1]} : vector<1x22x16xf32> to vector<1x16x16xf32>
    %451 = vector.broadcast %448 : f32 to vector<1x16x16xf32>
    %452 = arith.mulf %451, %450 : vector<1x16x16xf32>
    %453 = arith.addf %447, %452 : vector<1x16x16xf32>
    %454 = vector.extract_strided_slice %427 {offsets = [0, 2, 0], sizes = [1, 16, 16], strides = [1, 1, 1]} : vector<1x22x16xf32> to vector<1x16x16xf32>
    %455 = vector.broadcast %449 : f32 to vector<1x16x16xf32>
    %456 = arith.mulf %455, %454 : vector<1x16x16xf32>
    %457 = arith.addf %453, %456 : vector<1x16x16xf32>
    %c25 = arith.constant 25 : index
    %458 = memref.load %arg1[%c25] : memref<98xf32, #tpu.memory_space<smem>>
    %c74 = arith.constant 74 : index
    %459 = memref.load %arg1[%c74] : memref<98xf32, #tpu.memory_space<smem>>
    %460 = vector.extract_strided_slice %426 {offsets = [0, 3, 0], sizes = [1, 16, 16], strides = [1, 1, 1]} : vector<1x22x16xf32> to vector<1x16x16xf32>
    %461 = vector.broadcast %458 : f32 to vector<1x16x16xf32>
    %462 = arith.mulf %461, %460 : vector<1x16x16xf32>
    %463 = arith.addf %457, %462 : vector<1x16x16xf32>
    %464 = vector.extract_strided_slice %427 {offsets = [0, 3, 0], sizes = [1, 16, 16], strides = [1, 1, 1]} : vector<1x22x16xf32> to vector<1x16x16xf32>
    %465 = vector.broadcast %459 : f32 to vector<1x16x16xf32>
    %466 = arith.mulf %465, %464 : vector<1x16x16xf32>
    %467 = arith.addf %463, %466 : vector<1x16x16xf32>
    %c32 = arith.constant 32 : index
    %468 = memref.load %arg1[%c32] : memref<98xf32, #tpu.memory_space<smem>>
    %c81 = arith.constant 81 : index
    %469 = memref.load %arg1[%c81] : memref<98xf32, #tpu.memory_space<smem>>
    %470 = vector.extract_strided_slice %426 {offsets = [0, 4, 0], sizes = [1, 16, 16], strides = [1, 1, 1]} : vector<1x22x16xf32> to vector<1x16x16xf32>
    %471 = vector.broadcast %468 : f32 to vector<1x16x16xf32>
    %472 = arith.mulf %471, %470 : vector<1x16x16xf32>
    %473 = arith.addf %467, %472 : vector<1x16x16xf32>
    %474 = vector.extract_strided_slice %427 {offsets = [0, 4, 0], sizes = [1, 16, 16], strides = [1, 1, 1]} : vector<1x22x16xf32> to vector<1x16x16xf32>
    %475 = vector.broadcast %469 : f32 to vector<1x16x16xf32>
    %476 = arith.mulf %475, %474 : vector<1x16x16xf32>
    %477 = arith.addf %473, %476 : vector<1x16x16xf32>
    %c39 = arith.constant 39 : index
    %478 = memref.load %arg1[%c39] : memref<98xf32, #tpu.memory_space<smem>>
    %c88 = arith.constant 88 : index
    %479 = memref.load %arg1[%c88] : memref<98xf32, #tpu.memory_space<smem>>
    %480 = vector.extract_strided_slice %426 {offsets = [0, 5, 0], sizes = [1, 16, 16], strides = [1, 1, 1]} : vector<1x22x16xf32> to vector<1x16x16xf32>
    %481 = vector.broadcast %478 : f32 to vector<1x16x16xf32>
    %482 = arith.mulf %481, %480 : vector<1x16x16xf32>
    %483 = arith.addf %477, %482 : vector<1x16x16xf32>
    %484 = vector.extract_strided_slice %427 {offsets = [0, 5, 0], sizes = [1, 16, 16], strides = [1, 1, 1]} : vector<1x22x16xf32> to vector<1x16x16xf32>
    %485 = vector.broadcast %479 : f32 to vector<1x16x16xf32>
    %486 = arith.mulf %485, %484 : vector<1x16x16xf32>
    %487 = arith.addf %483, %486 : vector<1x16x16xf32>
    %c46 = arith.constant 46 : index
    %488 = memref.load %arg1[%c46] : memref<98xf32, #tpu.memory_space<smem>>
    %c95 = arith.constant 95 : index
    %489 = memref.load %arg1[%c95] : memref<98xf32, #tpu.memory_space<smem>>
    %490 = vector.extract_strided_slice %426 {offsets = [0, 6, 0], sizes = [1, 16, 16], strides = [1, 1, 1]} : vector<1x22x16xf32> to vector<1x16x16xf32>
    %491 = vector.broadcast %488 : f32 to vector<1x16x16xf32>
    %492 = arith.mulf %491, %490 : vector<1x16x16xf32>
    %493 = arith.addf %487, %492 : vector<1x16x16xf32>
    %494 = vector.extract_strided_slice %427 {offsets = [0, 6, 0], sizes = [1, 16, 16], strides = [1, 1, 1]} : vector<1x22x16xf32> to vector<1x16x16xf32>
    %495 = vector.broadcast %489 : f32 to vector<1x16x16xf32>
    %496 = arith.mulf %495, %494 : vector<1x16x16xf32>
    %497 = arith.addf %493, %496 : vector<1x16x16xf32>
    %c0_136 = arith.constant 0 : index
    %c0_137 = arith.constant 0 : index
    %c5_138 = arith.constant 5 : index
    %498 = vector.load %arg4[%c0_136, %c0_137, %c5_138] : memref<1x22x22xf32, #tpu.memory_space<vmem>>, vector<1x22x16xf32>
    %c0_139 = arith.constant 0 : index
    %c0_140 = arith.constant 0 : index
    %c5_141 = arith.constant 5 : index
    %499 = vector.load %arg5[%c0_139, %c0_140, %c5_141] : memref<1x22x22xf32, #tpu.memory_space<vmem>>, vector<1x22x16xf32>
    %c5_142 = arith.constant 5 : index
    %500 = memref.load %arg1[%c5_142] : memref<98xf32, #tpu.memory_space<smem>>
    %c54 = arith.constant 54 : index
    %501 = memref.load %arg1[%c54] : memref<98xf32, #tpu.memory_space<smem>>
    %502 = vector.extract_strided_slice %498 {offsets = [0, 0, 0], sizes = [1, 16, 16], strides = [1, 1, 1]} : vector<1x22x16xf32> to vector<1x16x16xf32>
    %503 = vector.broadcast %500 : f32 to vector<1x16x16xf32>
    %504 = arith.mulf %503, %502 : vector<1x16x16xf32>
    %505 = arith.addf %497, %504 : vector<1x16x16xf32>
    %506 = vector.extract_strided_slice %499 {offsets = [0, 0, 0], sizes = [1, 16, 16], strides = [1, 1, 1]} : vector<1x22x16xf32> to vector<1x16x16xf32>
    %507 = vector.broadcast %501 : f32 to vector<1x16x16xf32>
    %508 = arith.mulf %507, %506 : vector<1x16x16xf32>
    %509 = arith.addf %505, %508 : vector<1x16x16xf32>
    %c12_143 = arith.constant 12 : index
    %510 = memref.load %arg1[%c12_143] : memref<98xf32, #tpu.memory_space<smem>>
    %c61 = arith.constant 61 : index
    %511 = memref.load %arg1[%c61] : memref<98xf32, #tpu.memory_space<smem>>
    %512 = vector.extract_strided_slice %498 {offsets = [0, 1, 0], sizes = [1, 16, 16], strides = [1, 1, 1]} : vector<1x22x16xf32> to vector<1x16x16xf32>
    %513 = vector.broadcast %510 : f32 to vector<1x16x16xf32>
    %514 = arith.mulf %513, %512 : vector<1x16x16xf32>
    %515 = arith.addf %509, %514 : vector<1x16x16xf32>
    %516 = vector.extract_strided_slice %499 {offsets = [0, 1, 0], sizes = [1, 16, 16], strides = [1, 1, 1]} : vector<1x22x16xf32> to vector<1x16x16xf32>
    %517 = vector.broadcast %511 : f32 to vector<1x16x16xf32>
    %518 = arith.mulf %517, %516 : vector<1x16x16xf32>
    %519 = arith.addf %515, %518 : vector<1x16x16xf32>
    %c19 = arith.constant 19 : index
    %520 = memref.load %arg1[%c19] : memref<98xf32, #tpu.memory_space<smem>>
    %c68 = arith.constant 68 : index
    %521 = memref.load %arg1[%c68] : memref<98xf32, #tpu.memory_space<smem>>
    %522 = vector.extract_strided_slice %498 {offsets = [0, 2, 0], sizes = [1, 16, 16], strides = [1, 1, 1]} : vector<1x22x16xf32> to vector<1x16x16xf32>
    %523 = vector.broadcast %520 : f32 to vector<1x16x16xf32>
    %524 = arith.mulf %523, %522 : vector<1x16x16xf32>
    %525 = arith.addf %519, %524 : vector<1x16x16xf32>
    %526 = vector.extract_strided_slice %499 {offsets = [0, 2, 0], sizes = [1, 16, 16], strides = [1, 1, 1]} : vector<1x22x16xf32> to vector<1x16x16xf32>
    %527 = vector.broadcast %521 : f32 to vector<1x16x16xf32>
    %528 = arith.mulf %527, %526 : vector<1x16x16xf32>
    %529 = arith.addf %525, %528 : vector<1x16x16xf32>
    %c26 = arith.constant 26 : index
    %530 = memref.load %arg1[%c26] : memref<98xf32, #tpu.memory_space<smem>>
    %c75 = arith.constant 75 : index
    %531 = memref.load %arg1[%c75] : memref<98xf32, #tpu.memory_space<smem>>
    %532 = vector.extract_strided_slice %498 {offsets = [0, 3, 0], sizes = [1, 16, 16], strides = [1, 1, 1]} : vector<1x22x16xf32> to vector<1x16x16xf32>
    %533 = vector.broadcast %530 : f32 to vector<1x16x16xf32>
    %534 = arith.mulf %533, %532 : vector<1x16x16xf32>
    %535 = arith.addf %529, %534 : vector<1x16x16xf32>
    %536 = vector.extract_strided_slice %499 {offsets = [0, 3, 0], sizes = [1, 16, 16], strides = [1, 1, 1]} : vector<1x22x16xf32> to vector<1x16x16xf32>
    %537 = vector.broadcast %531 : f32 to vector<1x16x16xf32>
    %538 = arith.mulf %537, %536 : vector<1x16x16xf32>
    %539 = arith.addf %535, %538 : vector<1x16x16xf32>
    %c33 = arith.constant 33 : index
    %540 = memref.load %arg1[%c33] : memref<98xf32, #tpu.memory_space<smem>>
    %c82 = arith.constant 82 : index
    %541 = memref.load %arg1[%c82] : memref<98xf32, #tpu.memory_space<smem>>
    %542 = vector.extract_strided_slice %498 {offsets = [0, 4, 0], sizes = [1, 16, 16], strides = [1, 1, 1]} : vector<1x22x16xf32> to vector<1x16x16xf32>
    %543 = vector.broadcast %540 : f32 to vector<1x16x16xf32>
    %544 = arith.mulf %543, %542 : vector<1x16x16xf32>
    %545 = arith.addf %539, %544 : vector<1x16x16xf32>
    %546 = vector.extract_strided_slice %499 {offsets = [0, 4, 0], sizes = [1, 16, 16], strides = [1, 1, 1]} : vector<1x22x16xf32> to vector<1x16x16xf32>
    %547 = vector.broadcast %541 : f32 to vector<1x16x16xf32>
    %548 = arith.mulf %547, %546 : vector<1x16x16xf32>
    %549 = arith.addf %545, %548 : vector<1x16x16xf32>
    %c40 = arith.constant 40 : index
    %550 = memref.load %arg1[%c40] : memref<98xf32, #tpu.memory_space<smem>>
    %c89 = arith.constant 89 : index
    %551 = memref.load %arg1[%c89] : memref<98xf32, #tpu.memory_space<smem>>
    %552 = vector.extract_strided_slice %498 {offsets = [0, 5, 0], sizes = [1, 16, 16], strides = [1, 1, 1]} : vector<1x22x16xf32> to vector<1x16x16xf32>
    %553 = vector.broadcast %550 : f32 to vector<1x16x16xf32>
    %554 = arith.mulf %553, %552 : vector<1x16x16xf32>
    %555 = arith.addf %549, %554 : vector<1x16x16xf32>
    %556 = vector.extract_strided_slice %499 {offsets = [0, 5, 0], sizes = [1, 16, 16], strides = [1, 1, 1]} : vector<1x22x16xf32> to vector<1x16x16xf32>
    %557 = vector.broadcast %551 : f32 to vector<1x16x16xf32>
    %558 = arith.mulf %557, %556 : vector<1x16x16xf32>
    %559 = arith.addf %555, %558 : vector<1x16x16xf32>
    %c47 = arith.constant 47 : index
    %560 = memref.load %arg1[%c47] : memref<98xf32, #tpu.memory_space<smem>>
    %c96 = arith.constant 96 : index
    %561 = memref.load %arg1[%c96] : memref<98xf32, #tpu.memory_space<smem>>
    %562 = vector.extract_strided_slice %498 {offsets = [0, 6, 0], sizes = [1, 16, 16], strides = [1, 1, 1]} : vector<1x22x16xf32> to vector<1x16x16xf32>
    %563 = vector.broadcast %560 : f32 to vector<1x16x16xf32>
    %564 = arith.mulf %563, %562 : vector<1x16x16xf32>
    %565 = arith.addf %559, %564 : vector<1x16x16xf32>
    %566 = vector.extract_strided_slice %499 {offsets = [0, 6, 0], sizes = [1, 16, 16], strides = [1, 1, 1]} : vector<1x22x16xf32> to vector<1x16x16xf32>
    %567 = vector.broadcast %561 : f32 to vector<1x16x16xf32>
    %568 = arith.mulf %567, %566 : vector<1x16x16xf32>
    %569 = arith.addf %565, %568 : vector<1x16x16xf32>
    %c0_144 = arith.constant 0 : index
    %c0_145 = arith.constant 0 : index
    %c6_146 = arith.constant 6 : index
    %570 = vector.load %arg4[%c0_144, %c0_145, %c6_146] : memref<1x22x22xf32, #tpu.memory_space<vmem>>, vector<1x22x16xf32>
    %c0_147 = arith.constant 0 : index
    %c0_148 = arith.constant 0 : index
    %c6_149 = arith.constant 6 : index
    %571 = vector.load %arg5[%c0_147, %c0_148, %c6_149] : memref<1x22x22xf32, #tpu.memory_space<vmem>>, vector<1x22x16xf32>
    %c6_150 = arith.constant 6 : index
    %572 = memref.load %arg1[%c6_150] : memref<98xf32, #tpu.memory_space<smem>>
    %c55 = arith.constant 55 : index
    %573 = memref.load %arg1[%c55] : memref<98xf32, #tpu.memory_space<smem>>
    %574 = vector.extract_strided_slice %570 {offsets = [0, 0, 0], sizes = [1, 16, 16], strides = [1, 1, 1]} : vector<1x22x16xf32> to vector<1x16x16xf32>
    %575 = vector.broadcast %572 : f32 to vector<1x16x16xf32>
    %576 = arith.mulf %575, %574 : vector<1x16x16xf32>
    %577 = arith.addf %569, %576 : vector<1x16x16xf32>
    %578 = vector.extract_strided_slice %571 {offsets = [0, 0, 0], sizes = [1, 16, 16], strides = [1, 1, 1]} : vector<1x22x16xf32> to vector<1x16x16xf32>
    %579 = vector.broadcast %573 : f32 to vector<1x16x16xf32>
    %580 = arith.mulf %579, %578 : vector<1x16x16xf32>
    %581 = arith.addf %577, %580 : vector<1x16x16xf32>
    %c13_151 = arith.constant 13 : index
    %582 = memref.load %arg1[%c13_151] : memref<98xf32, #tpu.memory_space<smem>>
    %c62 = arith.constant 62 : index
    %583 = memref.load %arg1[%c62] : memref<98xf32, #tpu.memory_space<smem>>
    %584 = vector.extract_strided_slice %570 {offsets = [0, 1, 0], sizes = [1, 16, 16], strides = [1, 1, 1]} : vector<1x22x16xf32> to vector<1x16x16xf32>
    %585 = vector.broadcast %582 : f32 to vector<1x16x16xf32>
    %586 = arith.mulf %585, %584 : vector<1x16x16xf32>
    %587 = arith.addf %581, %586 : vector<1x16x16xf32>
    %588 = vector.extract_strided_slice %571 {offsets = [0, 1, 0], sizes = [1, 16, 16], strides = [1, 1, 1]} : vector<1x22x16xf32> to vector<1x16x16xf32>
    %589 = vector.broadcast %583 : f32 to vector<1x16x16xf32>
    %590 = arith.mulf %589, %588 : vector<1x16x16xf32>
    %591 = arith.addf %587, %590 : vector<1x16x16xf32>
    %c20 = arith.constant 20 : index
    %592 = memref.load %arg1[%c20] : memref<98xf32, #tpu.memory_space<smem>>
    %c69 = arith.constant 69 : index
    %593 = memref.load %arg1[%c69] : memref<98xf32, #tpu.memory_space<smem>>
    %594 = vector.extract_strided_slice %570 {offsets = [0, 2, 0], sizes = [1, 16, 16], strides = [1, 1, 1]} : vector<1x22x16xf32> to vector<1x16x16xf32>
    %595 = vector.broadcast %592 : f32 to vector<1x16x16xf32>
    %596 = arith.mulf %595, %594 : vector<1x16x16xf32>
    %597 = arith.addf %591, %596 : vector<1x16x16xf32>
    %598 = vector.extract_strided_slice %571 {offsets = [0, 2, 0], sizes = [1, 16, 16], strides = [1, 1, 1]} : vector<1x22x16xf32> to vector<1x16x16xf32>
    %599 = vector.broadcast %593 : f32 to vector<1x16x16xf32>
    %600 = arith.mulf %599, %598 : vector<1x16x16xf32>
    %601 = arith.addf %597, %600 : vector<1x16x16xf32>
    %c27 = arith.constant 27 : index
    %602 = memref.load %arg1[%c27] : memref<98xf32, #tpu.memory_space<smem>>
    %c76 = arith.constant 76 : index
    %603 = memref.load %arg1[%c76] : memref<98xf32, #tpu.memory_space<smem>>
    %604 = vector.extract_strided_slice %570 {offsets = [0, 3, 0], sizes = [1, 16, 16], strides = [1, 1, 1]} : vector<1x22x16xf32> to vector<1x16x16xf32>
    %605 = vector.broadcast %602 : f32 to vector<1x16x16xf32>
    %606 = arith.mulf %605, %604 : vector<1x16x16xf32>
    %607 = arith.addf %601, %606 : vector<1x16x16xf32>
    %608 = vector.extract_strided_slice %571 {offsets = [0, 3, 0], sizes = [1, 16, 16], strides = [1, 1, 1]} : vector<1x22x16xf32> to vector<1x16x16xf32>
    %609 = vector.broadcast %603 : f32 to vector<1x16x16xf32>
    %610 = arith.mulf %609, %608 : vector<1x16x16xf32>
    %611 = arith.addf %607, %610 : vector<1x16x16xf32>
    %c34 = arith.constant 34 : index
    %612 = memref.load %arg1[%c34] : memref<98xf32, #tpu.memory_space<smem>>
    %c83 = arith.constant 83 : index
    %613 = memref.load %arg1[%c83] : memref<98xf32, #tpu.memory_space<smem>>
    %614 = vector.extract_strided_slice %570 {offsets = [0, 4, 0], sizes = [1, 16, 16], strides = [1, 1, 1]} : vector<1x22x16xf32> to vector<1x16x16xf32>
    %615 = vector.broadcast %612 : f32 to vector<1x16x16xf32>
    %616 = arith.mulf %615, %614 : vector<1x16x16xf32>
    %617 = arith.addf %611, %616 : vector<1x16x16xf32>
    %618 = vector.extract_strided_slice %571 {offsets = [0, 4, 0], sizes = [1, 16, 16], strides = [1, 1, 1]} : vector<1x22x16xf32> to vector<1x16x16xf32>
    %619 = vector.broadcast %613 : f32 to vector<1x16x16xf32>
    %620 = arith.mulf %619, %618 : vector<1x16x16xf32>
    %621 = arith.addf %617, %620 : vector<1x16x16xf32>
    %c41 = arith.constant 41 : index
    %622 = memref.load %arg1[%c41] : memref<98xf32, #tpu.memory_space<smem>>
    %c90 = arith.constant 90 : index
    %623 = memref.load %arg1[%c90] : memref<98xf32, #tpu.memory_space<smem>>
    %624 = vector.extract_strided_slice %570 {offsets = [0, 5, 0], sizes = [1, 16, 16], strides = [1, 1, 1]} : vector<1x22x16xf32> to vector<1x16x16xf32>
    %625 = vector.broadcast %622 : f32 to vector<1x16x16xf32>
    %626 = arith.mulf %625, %624 : vector<1x16x16xf32>
    %627 = arith.addf %621, %626 : vector<1x16x16xf32>
    %628 = vector.extract_strided_slice %571 {offsets = [0, 5, 0], sizes = [1, 16, 16], strides = [1, 1, 1]} : vector<1x22x16xf32> to vector<1x16x16xf32>
    %629 = vector.broadcast %623 : f32 to vector<1x16x16xf32>
    %630 = arith.mulf %629, %628 : vector<1x16x16xf32>
    %631 = arith.addf %627, %630 : vector<1x16x16xf32>
    %c48 = arith.constant 48 : index
    %632 = memref.load %arg1[%c48] : memref<98xf32, #tpu.memory_space<smem>>
    %c97 = arith.constant 97 : index
    %633 = memref.load %arg1[%c97] : memref<98xf32, #tpu.memory_space<smem>>
    %634 = vector.extract_strided_slice %570 {offsets = [0, 6, 0], sizes = [1, 16, 16], strides = [1, 1, 1]} : vector<1x22x16xf32> to vector<1x16x16xf32>
    %635 = vector.broadcast %632 : f32 to vector<1x16x16xf32>
    %636 = arith.mulf %635, %634 : vector<1x16x16xf32>
    %637 = arith.addf %631, %636 : vector<1x16x16xf32>
    %638 = vector.extract_strided_slice %571 {offsets = [0, 6, 0], sizes = [1, 16, 16], strides = [1, 1, 1]} : vector<1x22x16xf32> to vector<1x16x16xf32>
    %639 = vector.broadcast %633 : f32 to vector<1x16x16xf32>
    %640 = arith.mulf %639, %638 : vector<1x16x16xf32>
    %641 = arith.addf %637, %640 : vector<1x16x16xf32>
    %642 = arith.negf %641 : vector<1x16x16xf32>
    %643 = math.exp %642 : vector<1x16x16xf32>
    %cst_152 = arith.constant 1.000000e+00 : f32
    %644 = vector.broadcast %cst_152 : f32 to vector<1x16x16xf32>
    %645 = arith.addf %644, %643 : vector<1x16x16xf32>
    %646 = arith.divf %644, %645 : vector<1x16x16xf32>
    %647 = vector.extract_strided_slice %646 {offsets = [0, 0, 0], sizes = [1, 1, 16], strides = [1, 1, 1]} : vector<1x16x16xf32> to vector<1x1x16xf32>
    %648 = vector.shape_cast %647 : vector<1x1x16xf32> to vector<1x16xf32>
    %c0_153 = arith.constant 0 : index
    %c0_154 = arith.constant 0 : index
    %649 = vector.load %arg6[%c0_153, %c0_154] : memref<1x256xf32, #tpu.memory_space<vmem>>, vector<1x16xf32>
    tpu.vector_store %arg6[%c0_153, %c0_154], %648 {strides = array<i32>} : memref<1x256xf32, #tpu.memory_space<vmem>>, vector<1x16xf32>,
    %650 = vector.extract_strided_slice %646 {offsets = [0, 1, 0], sizes = [1, 1, 16], strides = [1, 1, 1]} : vector<1x16x16xf32> to vector<1x1x16xf32>
    %651 = vector.shape_cast %650 : vector<1x1x16xf32> to vector<1x16xf32>
    %c0_155 = arith.constant 0 : index
    %c16_156 = arith.constant 16 : index
    %652 = vector.load %arg6[%c0_155, %c16_156] : memref<1x256xf32, #tpu.memory_space<vmem>>, vector<1x16xf32>
    tpu.vector_store %arg6[%c0_155, %c16_156], %651 {strides = array<i32>} : memref<1x256xf32, #tpu.memory_space<vmem>>, vector<1x16xf32>,
    %653 = vector.extract_strided_slice %646 {offsets = [0, 2, 0], sizes = [1, 1, 16], strides = [1, 1, 1]} : vector<1x16x16xf32> to vector<1x1x16xf32>
    %654 = vector.shape_cast %653 : vector<1x1x16xf32> to vector<1x16xf32>
    %c0_157 = arith.constant 0 : index
    %c32_158 = arith.constant 32 : index
    %655 = vector.load %arg6[%c0_157, %c32_158] : memref<1x256xf32, #tpu.memory_space<vmem>>, vector<1x16xf32>
    tpu.vector_store %arg6[%c0_157, %c32_158], %654 {strides = array<i32>} : memref<1x256xf32, #tpu.memory_space<vmem>>, vector<1x16xf32>,
    %656 = vector.extract_strided_slice %646 {offsets = [0, 3, 0], sizes = [1, 1, 16], strides = [1, 1, 1]} : vector<1x16x16xf32> to vector<1x1x16xf32>
    %657 = vector.shape_cast %656 : vector<1x1x16xf32> to vector<1x16xf32>
    %c0_159 = arith.constant 0 : index
    %c48_160 = arith.constant 48 : index
    %658 = vector.load %arg6[%c0_159, %c48_160] : memref<1x256xf32, #tpu.memory_space<vmem>>, vector<1x16xf32>
    tpu.vector_store %arg6[%c0_159, %c48_160], %657 {strides = array<i32>} : memref<1x256xf32, #tpu.memory_space<vmem>>, vector<1x16xf32>,
    %659 = vector.extract_strided_slice %646 {offsets = [0, 4, 0], sizes = [1, 1, 16], strides = [1, 1, 1]} : vector<1x16x16xf32> to vector<1x1x16xf32>
    %660 = vector.shape_cast %659 : vector<1x1x16xf32> to vector<1x16xf32>
    %c0_161 = arith.constant 0 : index
    %c64_162 = arith.constant 64 : index
    %661 = vector.load %arg6[%c0_161, %c64_162] : memref<1x256xf32, #tpu.memory_space<vmem>>, vector<1x16xf32>
    tpu.vector_store %arg6[%c0_161, %c64_162], %660 {strides = array<i32>} : memref<1x256xf32, #tpu.memory_space<vmem>>, vector<1x16xf32>,
    %662 = vector.extract_strided_slice %646 {offsets = [0, 5, 0], sizes = [1, 1, 16], strides = [1, 1, 1]} : vector<1x16x16xf32> to vector<1x1x16xf32>
    %663 = vector.shape_cast %662 : vector<1x1x16xf32> to vector<1x16xf32>
    %c0_163 = arith.constant 0 : index
    %c80_164 = arith.constant 80 : index
    %664 = vector.load %arg6[%c0_163, %c80_164] : memref<1x256xf32, #tpu.memory_space<vmem>>, vector<1x16xf32>
    tpu.vector_store %arg6[%c0_163, %c80_164], %663 {strides = array<i32>} : memref<1x256xf32, #tpu.memory_space<vmem>>, vector<1x16xf32>,
    %665 = vector.extract_strided_slice %646 {offsets = [0, 6, 0], sizes = [1, 1, 16], strides = [1, 1, 1]} : vector<1x16x16xf32> to vector<1x1x16xf32>
    %666 = vector.shape_cast %665 : vector<1x1x16xf32> to vector<1x16xf32>
    %c0_165 = arith.constant 0 : index
    %c96_166 = arith.constant 96 : index
    %667 = vector.load %arg6[%c0_165, %c96_166] : memref<1x256xf32, #tpu.memory_space<vmem>>, vector<1x16xf32>
    tpu.vector_store %arg6[%c0_165, %c96_166], %666 {strides = array<i32>} : memref<1x256xf32, #tpu.memory_space<vmem>>, vector<1x16xf32>,
    %668 = vector.extract_strided_slice %646 {offsets = [0, 7, 0], sizes = [1, 1, 16], strides = [1, 1, 1]} : vector<1x16x16xf32> to vector<1x1x16xf32>
    %669 = vector.shape_cast %668 : vector<1x1x16xf32> to vector<1x16xf32>
    %c0_167 = arith.constant 0 : index
    %c112 = arith.constant 112 : index
    %670 = vector.load %arg6[%c0_167, %c112] : memref<1x256xf32, #tpu.memory_space<vmem>>, vector<1x16xf32>
    tpu.vector_store %arg6[%c0_167, %c112], %669 {strides = array<i32>} : memref<1x256xf32, #tpu.memory_space<vmem>>, vector<1x16xf32>,
    %671 = vector.extract_strided_slice %646 {offsets = [0, 8, 0], sizes = [1, 1, 16], strides = [1, 1, 1]} : vector<1x16x16xf32> to vector<1x1x16xf32>
    %672 = vector.shape_cast %671 : vector<1x1x16xf32> to vector<1x16xf32>
    %c0_168 = arith.constant 0 : index
    %c128 = arith.constant 128 : index
    %673 = vector.load %arg6[%c0_168, %c128] : memref<1x256xf32, #tpu.memory_space<vmem>>, vector<1x16xf32>
    tpu.vector_store %arg6[%c0_168, %c128], %672 {strides = array<i32>} : memref<1x256xf32, #tpu.memory_space<vmem>>, vector<1x16xf32>,
    %674 = vector.extract_strided_slice %646 {offsets = [0, 9, 0], sizes = [1, 1, 16], strides = [1, 1, 1]} : vector<1x16x16xf32> to vector<1x1x16xf32>
    %675 = vector.shape_cast %674 : vector<1x1x16xf32> to vector<1x16xf32>
    %c0_169 = arith.constant 0 : index
    %c144 = arith.constant 144 : index
    %676 = vector.load %arg6[%c0_169, %c144] : memref<1x256xf32, #tpu.memory_space<vmem>>, vector<1x16xf32>
    tpu.vector_store %arg6[%c0_169, %c144], %675 {strides = array<i32>} : memref<1x256xf32, #tpu.memory_space<vmem>>, vector<1x16xf32>,
    %677 = vector.extract_strided_slice %646 {offsets = [0, 10, 0], sizes = [1, 1, 16], strides = [1, 1, 1]} : vector<1x16x16xf32> to vector<1x1x16xf32>
    %678 = vector.shape_cast %677 : vector<1x1x16xf32> to vector<1x16xf32>
    %c0_170 = arith.constant 0 : index
    %c160 = arith.constant 160 : index
    %679 = vector.load %arg6[%c0_170, %c160] : memref<1x256xf32, #tpu.memory_space<vmem>>, vector<1x16xf32>
    tpu.vector_store %arg6[%c0_170, %c160], %678 {strides = array<i32>} : memref<1x256xf32, #tpu.memory_space<vmem>>, vector<1x16xf32>,
    %680 = vector.extract_strided_slice %646 {offsets = [0, 11, 0], sizes = [1, 1, 16], strides = [1, 1, 1]} : vector<1x16x16xf32> to vector<1x1x16xf32>
    %681 = vector.shape_cast %680 : vector<1x1x16xf32> to vector<1x16xf32>
    %c0_171 = arith.constant 0 : index
    %c176 = arith.constant 176 : index
    %682 = vector.load %arg6[%c0_171, %c176] : memref<1x256xf32, #tpu.memory_space<vmem>>, vector<1x16xf32>
    tpu.vector_store %arg6[%c0_171, %c176], %681 {strides = array<i32>} : memref<1x256xf32, #tpu.memory_space<vmem>>, vector<1x16xf32>,
    %683 = vector.extract_strided_slice %646 {offsets = [0, 12, 0], sizes = [1, 1, 16], strides = [1, 1, 1]} : vector<1x16x16xf32> to vector<1x1x16xf32>
    %684 = vector.shape_cast %683 : vector<1x1x16xf32> to vector<1x16xf32>
    %c0_172 = arith.constant 0 : index
    %c192 = arith.constant 192 : index
    %685 = vector.load %arg6[%c0_172, %c192] : memref<1x256xf32, #tpu.memory_space<vmem>>, vector<1x16xf32>
    tpu.vector_store %arg6[%c0_172, %c192], %684 {strides = array<i32>} : memref<1x256xf32, #tpu.memory_space<vmem>>, vector<1x16xf32>,
    %686 = vector.extract_strided_slice %646 {offsets = [0, 13, 0], sizes = [1, 1, 16], strides = [1, 1, 1]} : vector<1x16x16xf32> to vector<1x1x16xf32>
    %687 = vector.shape_cast %686 : vector<1x1x16xf32> to vector<1x16xf32>
    %c0_173 = arith.constant 0 : index
    %c208 = arith.constant 208 : index
    %688 = vector.load %arg6[%c0_173, %c208] : memref<1x256xf32, #tpu.memory_space<vmem>>, vector<1x16xf32>
    tpu.vector_store %arg6[%c0_173, %c208], %687 {strides = array<i32>} : memref<1x256xf32, #tpu.memory_space<vmem>>, vector<1x16xf32>,
    %689 = vector.extract_strided_slice %646 {offsets = [0, 14, 0], sizes = [1, 1, 16], strides = [1, 1, 1]} : vector<1x16x16xf32> to vector<1x1x16xf32>
    %690 = vector.shape_cast %689 : vector<1x1x16xf32> to vector<1x16xf32>
    %c0_174 = arith.constant 0 : index
    %c224 = arith.constant 224 : index
    %691 = vector.load %arg6[%c0_174, %c224] : memref<1x256xf32, #tpu.memory_space<vmem>>, vector<1x16xf32>
    tpu.vector_store %arg6[%c0_174, %c224], %690 {strides = array<i32>} : memref<1x256xf32, #tpu.memory_space<vmem>>, vector<1x16xf32>,
    %692 = vector.extract_strided_slice %646 {offsets = [0, 15, 0], sizes = [1, 1, 16], strides = [1, 1, 1]} : vector<1x16x16xf32> to vector<1x1x16xf32>
    %693 = vector.shape_cast %692 : vector<1x1x16xf32> to vector<1x16xf32>
    %c0_175 = arith.constant 0 : index
    %c240 = arith.constant 240 : index
    %694 = vector.load %arg6[%c0_175, %c240] : memref<1x256xf32, #tpu.memory_space<vmem>>, vector<1x16xf32>
    tpu.vector_store %arg6[%c0_175, %c240], %693 {strides = array<i32>} : memref<1x256xf32, #tpu.memory_space<vmem>>, vector<1x16xf32>,
    %c0_176 = arith.constant 0 : index
    %c0_177 = arith.constant 0 : index
    %695 = vector.load %arg6[%c0_176, %c0_177] : memref<1x256xf32, #tpu.memory_space<vmem>>, vector<1x256xf32>
    %c0_178 = arith.constant 0 : index
    %c0_179 = arith.constant 0 : index
    %c0_180 = arith.constant 0 : index
    %696 = vector.load %arg2[%c0_178, %c0_179, %c0_180] : memref<1x4x256xf32, #tpu.memory_space<vmem>>, vector<1x4x256xf32>
    %697 = vector.shape_cast %695 : vector<1x256xf32> to vector<1x1x256xf32>
    %698 = vector.broadcast %697 : vector<1x1x256xf32> to vector<1x4x256xf32>
    %699 = arith.mulf %696, %698 : vector<1x4x256xf32>
    %c0_181 = arith.constant 0 : index
    %c0_182 = arith.constant 0 : index
    %c0_183 = arith.constant 0 : index
    %700 = vector.load %arg3[%c0_181, %c0_182, %c0_183] : memref<1x4x256xf32, #tpu.memory_space<vmem>>, vector<1x4x256xf32>
    tpu.vector_store %arg3[%c0_181, %c0_182, %c0_183], %699 {strides = array<i32>} : memref<1x4x256xf32, #tpu.memory_space<vmem>>, vector<1x4x256xf32>,
    return
  }
  func.func @transform_0(%arg0: i32) -> i32 {
    %c0_i32 = arith.constant 0 : i32
    %c0_i32_0 = arith.constant 0 : i32
    return %c0_i32 : i32
  }
  func.func @transform_1(%arg0: i32) -> (i32, i32, i32) {
    %c0_i32 = arith.constant 0 : i32
    %c0_i32_0 = arith.constant 0 : i32
    %c0_i32_1 = arith.constant 0 : i32
    return %arg0, %c0_i32, %c0_i32_0 : i32, i32, i32
  }
  func.func @transform_2(%arg0: i32) -> (i32, i32, i32) {
    %c0_i32 = arith.constant 0 : i32
    %c0_i32_0 = arith.constant 0 : i32
    %c0_i32_1 = arith.constant 0 : i32
    return %arg0, %c0_i32, %c0_i32_0 : i32, i32, i32
  }
}

</mosaic_0001>

<bundles_post_ra>
// kernel: tpu_custom_call.1
= control target key start
LH: loop header
LB: loop body
LE: loop exit
PB: predicated region body
PF: predicated region fallthrough
CT: control target
= control target key end

     0   :  { %s5336_s0 = inlined_call_operand.hbm [shape: f32[98], index: 0, kind: input, shape index: {}]   ;;  %s5337_s1 = inlined_call_operand.hbm [shape: f32[2,4,256], index: 1, kind: input, shape index: {}]   ;;  %s5338_s2 = inlined_call_operand.hbm [shape: f32[2,4,256], index: 2, kind: output, shape index: {}]  }
   0x1   :  { %5375 = sst [smem:[#allocation25_spill]] %s5336_s0 }
   0x2   :  { %5376 = sst [smem:[#allocation26_spill]] %s5337_s1 }
   0x3   :  { %7 = vsyncpa [#allocation8], 0 }
   0x4   :  { %8 = vsyncpa [#allocation6], 0 }
   0x5   :  { %10 = vsyncpa [#allocation6 + $0x1], 0 }
   0x6   :  { %11 = vsyncpa [#allocation7], 0 }
   0x7   :  { %13 = vsyncpa [#allocation7 + $0x1], 0  ;;  %s2931_s9 = smov 0   ;;  %s2933_s10 = smov 0  }
   0x8   :  { %s2935_s11 = smov 0   ;;  %s2937_s12 = smov 0  }
   0x9 LB: > { %5377 = sst [smem:[#allocation14_spill]] %s2880_s10  ;;  %s2952_s13 = sadd.s32 4294967295, %s2888_s12   ;;  %s2888_s12 = sphi %s2937_s12, %s5475_s12   ;;  %s2884_s11 = sphi %s2935_s11, %s5478_s11   ;;  %s2880_s10 = sphi %s2933_s10, %s5477_s10   ;;  %s2876_s9 = sphi %s2931_s9, %s5476_s9  }
   0xa   : > { %5378 = sst [smem:[#allocation15_spill]] %s2884_s11  ;;  %s2563_s14 = sadd.s32 4294967294, %s2888_s12  }
   0xb   : > { %5379 = sst [smem:[#allocation16_spill]] %s2888_s12  ;;  %p60_p0 = scmp.ne.s32.totalorder %s2880_s10, %s2876_s9 }
   0xc   : > { %p5339_p1 = scmp.eq.s32.totalorder %s2952_s13, 0  ;;  %p84_p2 = scmp.eq.s32.totalorder %s2952_s13, 1 }
   0xd   : > { %p90_p3 = scmp.eq.s32.totalorder %s2563_s14, 1  ;;  %p2564_p5 = scmp.ge.s32.totalorder %s2888_s12, 1 }
   0xe   : > { %p2961_p4 = por %p5339_p1, %p60_p0  ;;  %p97_p7 = scmp.lt.s32.totalorder %s2888_s12, 3 }
   0xf   : > { %p2966_p6 = por %p90_p3, %p60_p0  ;;  %s2977_s18 = sadd.s32 1, %s2888_s12  }
  0x10   : > { %s5380_s15 = scalar_select %p2961_p4, 1, 0 }
  0x11   : > { %s5381_s16 = scalar_select %p2966_p6, 1, 0 }
  0x12   : > { %p2971_p8 = pnand %p2564_p5, %p97_p7  ;;  %5384 = sst [smem:[#allocation18_spill]] %s2977_s18 }
  0x13   : > { %5382 = sst [smem:[#allocation17_spill]] %s5381_s16  ;;  %s44_s19 = ssub.s32 %s2888_s12, %s2977_s18 }
  0x14   : > { %s5383_s17 = scalar_select %p2971_p8, 1, 0 }
  0x15   : > { %p2688_p10 = pneg %p2971_p8  ;;  %s47_s20 = sadd.s32 1, %s2884_s11 }
  0x16   : > { %p45_p12 = scmp.eq.s32.totalorder %s44_s19, 0  ;;  %p54_p13 = scmp.ne.s32.totalorder %s2884_s11, %s2880_s10 }
  0x17   : > { %p2689_p11 = pnand %p2688_p10, %p5339_p1  ;;  %p55_p0 = scmp.eq.s32.totalorder %s2888_s12, 0 }
  0x18   : > { %p2701_p3 = scmp.lt.s32.totalorder %s2888_s12, 2  ;;  %s2890_s21 = smov [#allocation5]  }
  0x19   : > { %s5385_s0 = sld [smem:[#allocation25_spill]]  ;;  %p56_p5 = por %p55_p0, %p54_p13 }
  0x1a   : > { %s2994_s24 = scalar_select %p45_p12, %s2884_s11, %s47_s20  }
  0x1b   : > { %p2998_p7 = por %p84_p2, %p54_p13  ;;  %s119_s26 = sand.u32 1, %s2884_s11  }
  0x1c   : > { %5386 = sst [smem:[#allocation19_spill]] %s2994_s24  ;;  %s2678_s27 = sshll.u32 %s2888_s12, 7 }
  0x1d   : > { %s5387_s25 = scalar_select %p2998_p7, 1, 0 }
  0x1e   : > { %s2567_s28 = sshll.u32 %s119_s26, 3  ;;  %s5388_s1 = sld [smem:[#allocation26_spill]] }
  0x1f   : > { %2691 = dma.hbm_to_smem (!%p2689_p11), %s5385_s0, 16, %s2890_s21, [#allocation8]  }
  0x20   : > { %s123_s4 = scalar_lea.vmem [#allocation9], %s2567_s28  ;;  %p3009_p10 = pnand %p2701_p3, %p56_p5 }
  0x21   : > { %s131_s5 = sshll.u32 %s123_s4, 4  ;;  %s120_s7 = scalar_lea.sflag [#allocation6], %s119_s26  ;;  %s132_s5 = int_to_ptr.vmem [resolvable:$true] %s131_s5 }
  0x22   : > { %p2794_p11 = pneg %p3009_p10 }
  0x24   : > { %s3007_s3 = scalar_lea.hbm %s5388_s1, %s2678_s27  ;;  %s2797_s20 = scalar_lea.hbm %s5388_s1, 256 }
  0x25   : > { %s2792_s8 = scalar_lea.hbm %s3007_s3, 128  ;;  %p2798_p0 = scmp.lt.s32.totalorder %s3007_s3, %s5388_s1 }
  0x26   : > { %p2793_p2 = scmp.ne.s32.totalorder %s3007_s3, %s2792_s8  ;;  %p2799_p3 = scmp.lt.s32.totalorder %s2797_s20, %s2792_s8 }
  0x28   : > { %p2795_p12 = pnand %p2794_p11, %p2793_p2  ;;  %p2800_p5 = por %p2799_p3, %p2798_p0 }
  0x2a   : > { %p2796_p13 = pneg %p2795_p12 }
  0x2c   : > { %p2801_p9 = pnand %p2800_p5, %p2796_p13 }
  0x2e   : > { %2804 = shalt.err (!%p2801_p9)
}
  0x2f   : > { %s2805_s23 = scalar_lea.vmem %s132_s5, 128  ;;  %s2891_s26 = smov [#allocation9]  }
  0x30   : > { %p2806_p1 = scmp.ne.s32.totalorder %s132_s5, %s2805_s23  ;;  %s2810_s27 = sshll.u32 %s2891_s26, 4  ;;  %s2811_s27 = int_to_ptr.vmem [resolvable:$false] %s2810_s27 }
  0x31   : > { %s2812_s28 = scalar_lea.vmem %s2811_s27, 256  ;;  %p2813_p2 = scmp.lt.s32.totalorder %s132_s5, %s2811_s27 }
  0x32   : > { %p2808_p6 = pnand %p2806_p1, %p2794_p11  ;;  %p2814_p12 = scmp.lt.s32.totalorder %s2812_s28, %s2805_s23 }
  0x34   : > { %p2809_p7 = pneg %p2808_p6  ;;  %p2815_p4 = por %p2814_p12, %p2813_p2 }
  0x36   : > { %p2816_p8 = pnand %p2815_p4, %p2809_p7 }
  0x38   : > { %2819 = shalt.err (!%p2816_p8)
}
  0x39   : > { %2695 = dma.hbm_to_vmem [thread:$0]  (!%p3009_p10), %s3007_s3, 128, %s132_s5, %s120_s7  }
  0x3a   : > { %p5390_p13 = scmp.ne.s32.totalorder %s5383_s17, 0 }
  0x3c   : > { %140 = sbr.rel (%p5390_p13) target bundleno = 915 (0x393), region = 28 }
  0x41   : > { %p5391_p9 = scmp.eq.s32.totalorder %s2952_s13, 0 }
  0x43   : > { %2863 = dma.done.wait (%p5391_p9), [#allocation8], 16   ;;  %p5392_p1 = pmov %p5391_p9 }
  0x44   : > { %s3034_s29 = sand.u32 1, %s2880_s10   ;;  %p5393_p4 = scmp.ne.s32.totalorder %s5380_s15, 0 }
  0x45   : > { %2865 = vsyncadd (%p5392_p1), [#allocation8], 4294967280  ;;  %s5343_s30 = sshll.u32 %s3034_s29, 3  ;;  %s147_s4 = scalar_lea.sflag [#allocation6], %s3034_s29 }
  0x46   : > { %s3040_s3 = scalar_lea.vmem [#allocation9], %s5343_s30 }
  0x47   : > { %2867 = dma.done.wait (%p5393_p4), %s147_s4, 128  }
  0x48   : > { %2869 = vsyncadd (%p5393_p4), %s147_s4, 4294967168 }
  0x49   : > { %155 = sfence }
  0x4a   : > { %v172_v0 = vld [vmem:[%s3040_s3] sm:$0xff]  ;;  %vm176_vm0 = vcmask 1043456   ;;  %vm208_vm1 = vcmask 179200   ;;  %v2892_v3 = vmov 0.0   ;;  %s2893_s15 = smov 115   ;;  %s2894_s17 = smov 3  }
  0x4b   : > { %v177_v1 = vsel %vm176_vm0, %v172_v0, -inf  ;;  %v191_v2 = vsel %vm176_vm0, %v172_v0, 0.0  ;;  %209 = vst.msk [vmem:[#allocation2] sm:$0xff] %vm208_vm1, %v2892_v3  ;;  %210 = vst.msk [vmem:[#allocation2 + $0x8] sm:$0xff] %vm208_vm1, %v2892_v3  ;;  %v174_v10 = vcombine.high %v172_v0, %v172_v0  ;;  %s2895_s5 = smov 51   ;;  %s2896_s6 = smov 99  }
  0x4c   : > { %213 = vst.msk [vmem:[#allocation3] sm:$0xff] %vm208_vm1, %v2892_v3  ;;  %214 = vst.msk [vmem:[#allocation3 + $0x8] sm:$0xff] %vm208_vm1, %v2892_v3  ;;  %v178_v4 = vrot.slane %v177_v1, 4  ;;  %v192_v5 = vrot.slane %v191_v2, 4  ;;  %s2897_s7 = smov 83   ;;  %s2898_s8 = smov 67  }
  0x4d   : > { %v184_v15 = vsel %vm176_vm0, %v174_v10, -inf  ;;  %vm211_vm2 = vcmask 177152   ;;  %v198_v24 = vsel %vm176_vm0, %v174_v10, 0.0  ;;  %s2899_s14 = smov 19   ;;  %s2900_s19 = smov 35   ;;  %vm220_vm3 = vcmask 147480  }
  0x4e   : > { %v179_v6 = vmax.f32 %v177_v1, %v178_v4  ;;  %v193_v7 = vadd.f32 %v192_v5, %v191_v2  ;;  %v185_v18 = vrot.slane %v184_v15, 4  ;;  %212 = vst.msk [vmem:[#allocation2 + $0x10] sm:$0x3f] %vm211_vm2, %v2892_v3  ;;  %215 = vst.msk [vmem:[#allocation3 + $0x10] sm:$0x3f] %vm211_vm2, %v2892_v3  ;;  %v199_v26 = vrot.slane %v198_v24, 4 }
  0x4f   : > { %s3085_s20 = sld [smem:[#allocation5 + $0x1]]  ;;  %s5346_s22 = smov 127   ;;  %vm376_vm4 = vcmask 1046528   ;;  %vm411_vm5 = vcmask 1045504   ;;  %vm446_vm6 = vcmask 1044480   ;;  %vm515_vm7 = vcmask 1042432  }
  0x50   : > { %v180_v8 = vrot.slane %v179_v6, 2  ;;  %v194_v9 = vrot.slane %v193_v7, 2  ;;  %v186_v20 = vmax.f32 %v184_v15, %v185_v18  ;;  %v200_v27 = vadd.f32 %v199_v26, %v198_v24  ;;  %s3089_s21 = sld [smem:[#allocation5 + $0x2]]  ;;  %s5344_s23 = smov 126  }
  0x51   : > { %s3111_s26 = sld [smem:[#allocation5 + $0x32]]  ;;  %vm550_vm8 = vcmask 1041408   ;;  %s5394_s11 = smov 126  }
  0x52   : > { %v181_v11 = vmax.f32 %v179_v6, %v180_v8  ;;  %v195_v12 = vadd.f32 %v194_v9, %v193_v7  ;;  %v187_v21 = vrot.slane %v186_v20, 2  ;;  %v201_v28 = vrot.slane %v200_v27, 2  ;;  %s2589_s27 = sld [smem:[#allocation5 + $0x8]]  ;;  %p5470_p8 = scmp.ne.s32.totalorder %s5387_s25, 0 }
  0x53   : > { %s3118_s28 = sld [smem:[#allocation5 + $0x33]] }
  0x54   : > { %v182_v13 = vrot.slane %v181_v11, 1  ;;  %v196_v14 = vrot.slane %v195_v12, 1  ;;  %v188_v22 = vmax.f32 %v186_v20, %v187_v21  ;;  %v202_v29 = vadd.f32 %v201_v28, %v200_v27  ;;  %s2591_s4 = sld [smem:[#allocation5 + $0xf]] }
  0x55   : > { %v578_v43 = vstv %s3085_s20  ;;  %s2592_s20 = sld [smem:[#allocation5 + $0x40]] }
  0x56   : > { %v183_v16 = vmax.f32 %v181_v11, %v182_v13  ;;  %v197_v17 = vadd.f32 %v196_v14, %v195_v12  ;;  %v189_v23 = vrot.slane %v188_v22, 1  ;;  %v203_v30 = vrot.slane %v202_v29, 1  ;;  %s2612_s30 = sld [smem:[#allocation5 + $0x56]] }
  0x57   : > { %v858_v48 = vstv %s3089_s21  ;;  %v591_v1 = vstv %s3111_s26  ;;  %s2594_s21 = sld [smem:[#allocation5 + $0x47]] }
  0x58   : > { %227 = vrot.lane.b32.xlu1 %v183_v16, %s2893_s15  ;;  %217 = vrot.lane.b32.xlu0 %v183_v16, %s2894_s17  ;;  %v206_v19 = vmul.f32 0.25, %v197_v17  ;;  %v190_v25 = vmax.f32 %v188_v22, %v189_v23  ;;  %v204_v31 = vadd.f32 %v203_v30, %v202_v29  ;;  %v606_v6 = vstv %s2589_s27  ;;  %s2596_s26 = sld [smem:[#allocation5 + $0x4e]] }
  0x59   : > { %v871_v7 = vstv %s3118_s28  ;;  %s2598_s27 = sld [smem:[#allocation5 + $0x55]] }
  0x5a   : > { %v207_v32 = vmul.f32 0.25, %v204_v31  ;;  %v648_v13 = vstv %s2591_s4  ;;  %s2600_s28 = sld [smem:[#allocation5 + $0x5c]] }
  0x5b   : > { %s2604_s4 = sld [smem:[#allocation5 + $0x3a]] }
  0x5c   : > { %259 = vrot.lane.b32.xlu1 %v183_v16, %s2895_s5  ;;  %235 = vrot.lane.b32.xlu0 %v183_v16, %s2896_s6  ;;  %s3421_s0 = sld [smem:[#allocation5 + $0xa]] }
  0x5d   : > { %s3437_s1 = sld [smem:[#allocation5 + $0x4d]] }
  0x5e   : > { %s3439_s24 = sld [smem:[#allocation5 + $0x54]] }
  0x5f   : > { %s3463_s10 = sld [smem:[#allocation5 + $0x18]] }
  0x60   : > { %231 = vrot.lane.b32.xlu1 %v206_v19, %s2893_s15  ;;  %243 = vrot.lane.b32.xlu0 %v183_v16, %s2897_s7  ;;  %s3469_s18 = sld [smem:[#allocation5 + $0x1f]] }
  0x61   : > { %s3499_s12 = sld [smem:[#allocation5 + $0x2d]] }
  0x62   : > { %s3510_s16 = sld [smem:[#allocation5 + $0x34]] }
  0x64   : > { %239 = vrot.lane.b32.xlu1 %v206_v19, %s2896_s6  ;;  %251 = vrot.lane.b32.xlu0 %v183_v16, %s2898_s8 }
  0x68   : > { %247 = vrot.lane.b32.xlu1 %v206_v19, %s2897_s7  ;;  %223 = vrot.lane.b32.xlu0 %v206_v19, %s2894_s17 }
  0x6c   : > { %275 = vrot.lane.b32.xlu1 %v183_v16, %s2899_s14  ;;  %267 = vrot.lane.b32.xlu0 %v183_v16, %s2900_s19 }
  0x70   : > { %293 = vrot.lane.b32.xlu1 %v190_v25, %s2893_s15  ;;  %284 = vrot.lane.b32.xlu0 %v190_v25, %s2894_s17 }
  0x74   : > { %309 = vrot.lane.b32.xlu1 %v190_v25, %s2897_s7  ;;  %301 = vrot.lane.b32.xlu0 %v190_v25, %s2896_s6 }
  0x78   : > { %325 = vrot.lane.b32.xlu1 %v190_v25, %s2895_s5  ;;  %317 = vrot.lane.b32.xlu0 %v190_v25, %s2898_s8 }
  0x7c   : > { %341 = vrot.lane.b32.xlu1 %v190_v25, %s2899_s14  ;;  %333 = vrot.lane.b32.xlu0 %v190_v25, %s2900_s19 }
  0x80   : > { %263 = vrot.lane.b32.xlu1 %v206_v19, %s2895_s5  ;;  %255 = vrot.lane.b32.xlu0 %v206_v19, %s2898_s8 }
  0x84   : > { %279 = vrot.lane.b32.xlu1 %v206_v19, %s2899_s14  ;;  %271 = vrot.lane.b32.xlu0 %v206_v19, %s2900_s19 }
  0x88   : > { %297 = vrot.lane.b32.xlu1 %v207_v32, %s2893_s15  ;;  %289 = vrot.lane.b32.xlu0 %v207_v32, %s2894_s17  ;;  %s2593_s15 = sld [smem:[#allocation5 + $0x16]] }
  0x89   : > { %s2595_s17 = sld [smem:[#allocation5 + $0x1d]] }
  0x8c   : > { %313 = vrot.lane.b32.xlu1 %v207_v32, %s2897_s7  ;;  %305 = vrot.lane.b32.xlu0 %v207_v32, %s2896_s6  ;;  %s2599_s6 = sld [smem:[#allocation5 + $0x2b]] }
  0x8d   : > { %s2603_s7 = sld [smem:[#allocation5 + $0x9]] }
  0x8e   : > { %v690_v20 = vstv %s2593_s15  ;;  %s2606_s15 = sld [smem:[#allocation5 + $0x41]] }
  0x8f   : > { %v732_v28 = vstv %s2595_s17  ;;  %s2608_s17 = sld [smem:[#allocation5 + $0x48]] }
  0x90   : > { %329 = vrot.lane.b32.xlu1 %v207_v32, %s2895_s5  ;;  %321 = vrot.lane.b32.xlu0 %v207_v32, %s2898_s8  ;;  %s2597_s5 = sld [smem:[#allocation5 + $0x24]] }
  0x91   : > { %s2605_s8 = sld [smem:[#allocation5 + $0x10]] }
  0x94   : > { %345 = vrot.lane.b32.xlu1 %v207_v32, %s2899_s14  ;;  %337 = vrot.lane.b32.xlu0 %v207_v32, %s2900_s19  ;;  %s2607_s14 = sld [smem:[#allocation5 + $0x17]] }
  0x95   : > { %s2590_s19 = sld [smem:[#allocation5 + $0x39]] }
  0xca   : > { %v228_v33 = vpop.permute.xlu1 %227  ;;  %v218_v34 = vpop.permute.xlu0 %217 }
  0xcb   : > { %230 = vst.msk [vmem:[#allocation2 + $0x4] sm:$0x1] %vm220_vm3, %v228_v33  ;;  %221 = vst.msk [vmem:[#allocation2 + $0x3] sm:$0x1] %vm220_vm3, %v218_v34 }
  0xce   : > { %v260_v35 = vpop.permute.xlu1 %259  ;;  %v236_v36 = vpop.permute.xlu0 %235 }
  0xcf   : > { %262 = vst.msk [vmem:[#allocation2 + $0x8] sm:$0x1] %vm220_vm3, %v260_v35  ;;  %238 = vst.msk [vmem:[#allocation2 + $0x5] sm:$0x1] %vm220_vm3, %v236_v36 }
  0xd2   : > { %v232_v37 = vpop.permute.xlu1 %231  ;;  %v244_v38 = vpop.permute.xlu0 %243 }
  0xd3   : > { %234 = vst.msk [vmem:[#allocation3 + $0x4] sm:$0x1] %vm220_vm3, %v232_v37  ;;  %246 = vst.msk [vmem:[#allocation2 + $0x6] sm:$0x1] %vm220_vm3, %v244_v38  ;;  %v774_v37 = vstv %s2597_s5  ;;  %s3319_s5 = sld [smem:[#allocation5 + $0x1e]] }
  0xd6   : > { %v240_v39 = vpop.permute.xlu1 %239  ;;  %v252_v40 = vpop.permute.xlu0 %251 }
  0xd7   : > { %242 = vst.msk [vmem:[#allocation3 + $0x5] sm:$0x1] %vm220_vm3, %v240_v39  ;;  %254 = vst.msk [vmem:[#allocation2 + $0x7] sm:$0x1] %vm220_vm3, %v252_v40 }
  0xda   : > { %v248_v41 = vpop.permute.xlu1 %247  ;;  %v224_v42 = vpop.permute.xlu0 %223 }
  0xdb   : > { %250 = vst.msk [vmem:[#allocation3 + $0x6] sm:$0x1] %vm220_vm3, %v248_v41  ;;  %226 = vst.msk [vmem:[#allocation3 + $0x3] sm:$0x1] %vm220_vm3, %v224_v42 }
  0xde   : > { %v3094_v44 = vld [vmem:[#allocation2] sm:$0xff]  ;;  %v276_v45 = vpop.permute.xlu1 %275  ;;  %v268_v46 = vpop.permute.xlu0 %267 }
  0xdf   : > { %278 = vst.msk [vmem:[#allocation2 + $0xa] sm:$0x1] %vm220_vm3, %v276_v45  ;;  %270 = vst.msk [vmem:[#allocation2 + $0x9] sm:$0x1] %vm220_vm3, %v268_v46  ;;  %v579_v47 = vmul.f32 %v578_v43, %v3094_v44  ;;  %v859_v51 = vmul.f32 %v858_v48, %v3094_v44  ;;  %v607_v11 = vmul.f32 %v606_v6, %v3094_v44  ;;  %v816_v45 = vstv %s2599_s6  ;;  %s3328_s6 = sld [smem:[#allocation5]] }
  0xe0   : > { %v649_v19 = vmul.f32 %v648_v13, %v3094_v44  ;;  %v691_v27 = vmul.f32 %v690_v20, %v3094_v44  ;;  %v733_v35 = vmul.f32 %v732_v28, %v3094_v44 }
  0xe1   : > { %583 = vrot.lane.b32.xlu0 %v579_v47, %s5346_s22  ;;  %v613_v18 = vrot.slane %v607_v11, 1 }
  0xe2   : > { %v294_v49 = vpop.permute.xlu1 %293  ;;  %v285_v50 = vpop.permute.xlu0 %284  ;;  %v655_v26 = vrot.slane %v649_v19, 2  ;;  %v697_v34 = vrot.slane %v691_v27, 3  ;;  %v739_v42 = vrot.slane %v733_v35, 4 }
  0xe3   : > { %296 = vst.msk [vmem:[#allocation2 + $0xc] sm:$0x1] %vm220_vm3, %v294_v49  ;;  %287 = vst.msk [vmem:[#allocation2 + $0xb] sm:$0x1] %vm220_vm3, %v285_v50 }
  0xe5   : > { %863 = vrot.lane.b32.xlu0 %v859_v51, %s5344_s23 }
  0xe6   : > { %v310_v52 = vpop.permute.xlu1 %309  ;;  %v302_v53 = vpop.permute.xlu0 %301 }
  0xe7   : > { %312 = vst.msk [vmem:[#allocation2 + $0xe] sm:$0x1] %vm220_vm3, %v310_v52  ;;  %304 = vst.msk [vmem:[#allocation2 + $0xd] sm:$0x1] %vm220_vm3, %v302_v53  ;;  %v817_v52 = vmul.f32 %v816_v45, %v3094_v44 }
  0xea   : > { %v326_v54 = vpop.permute.xlu1 %325  ;;  %v318_v55 = vpop.permute.xlu0 %317 }
  0xeb   : > { %328 = vst.msk [vmem:[#allocation2 + $0x10] sm:$0x1] %vm220_vm3, %v326_v54  ;;  %320 = vst.msk [vmem:[#allocation2 + $0xf] sm:$0x1] %vm220_vm3, %v318_v55  ;;  %v886_v54 = vstv %s2603_s7  ;;  %s3332_s7 = sld [smem:[#allocation5 + $0x7]] }
  0xee   : > { %v342_v56 = vpop.permute.xlu1 %341  ;;  %v334_v57 = vpop.permute.xlu0 %333 }
  0xef   : > { %344 = vst.msk [vmem:[#allocation2 + $0x12] sm:$0x1] %vm220_vm3, %v342_v56  ;;  %336 = vst.msk [vmem:[#allocation2 + $0x11] sm:$0x1] %vm220_vm3, %v334_v57 }
  0xf2   : > { %v3113_v58 = vld [vmem:[#allocation2 + $0x8] sm:$0xff]  ;;  %v264_v59 = vpop.permute.xlu1 %263  ;;  %v256_v60 = vpop.permute.xlu0 %255 }
  0xf3   : > { %266 = vst.msk [vmem:[#allocation3 + $0x8] sm:$0x1] %vm220_vm3, %v264_v59  ;;  %258 = vst.msk [vmem:[#allocation3 + $0x7] sm:$0x1] %vm220_vm3, %v256_v60  ;;  %v580_v61 = vmul.f32 %v578_v43, %v3113_v58  ;;  %v860_v0 = vmul.f32 %v858_v48, %v3113_v58  ;;  %v3133_v8 = vmul.f32 %v606_v6, %v3113_v58 }
  0xf4   : > { %v3142_v15 = vmul.f32 %v648_v13, %v3113_v58  ;;  %v3153_v23 = vmul.f32 %v690_v20, %v3113_v58  ;;  %v3164_v31 = vmul.f32 %v732_v28, %v3113_v58  ;;  %v3178_v40 = vmul.f32 %v774_v37, %v3113_v58 }
  0xf5   : > { %585 = vrot.lane.b32.xlu1 %v580_v61, %s5346_s22  ;;  %v614_v14 = vrot.slane %v3133_v8, 1  ;;  %v775_v43 = vmul.f32 %v774_v37, %v3094_v44  ;;  %v3186_v47 = vmul.f32 %v816_v45, %v3113_v58  ;;  %v3196_v56 = vmul.f32 %v886_v54, %v3113_v58 }
  0xf6   : > { %v280_v62 = vpop.permute.xlu1 %279  ;;  %v272_v63 = vpop.permute.xlu0 %271  ;;  %v656_v22 = vrot.slane %v3142_v15, 2  ;;  %v698_v30 = vrot.slane %v3153_v23, 3  ;;  %v3166_v32 = vld [vmem:[#allocation2 + $0x10] sm:$0x3f]  ;;  %v740_v39 = vrot.slane %v3164_v31, 4  ;;  %v782_v49 = vrot.slane %v3178_v40, 5 }
  0xf7   : > { %282 = vst.msk [vmem:[#allocation3 + $0xa] sm:$0x1] %vm220_vm3, %v280_v62  ;;  %274 = vst.msk [vmem:[#allocation3 + $0x9] sm:$0x1] %vm220_vm3, %v272_v63  ;;  %v615_v21 = vsel %vm376_vm4, %v613_v18, %v614_v14  ;;  %v609_v41 = vmul.f32 %v606_v6, %v3166_v32  ;;  %v651_v51 = vmul.f32 %v648_v13, %v3166_v32  ;;  %v781_v53 = vrot.slane %v775_v43, 5 }
  0xf8   : > { %v657_v29 = vsel %vm411_vm5, %v655_v26, %v656_v22  ;;  %v699_v38 = vsel %vm446_vm6, %v697_v34, %v698_v30  ;;  %v741_v48 = vsel %vm176_vm0, %v739_v42, %v740_v39  ;;  %v824_v55 = vrot.slane %v3186_v47, 6 }
  0xf9   : > { %865 = vrot.lane.b32.xlu1 %v860_v0, %s5344_s23  ;;  %v616_v50 = vrot.slane %v609_v41, 1  ;;  %v783_v57 = vsel %vm515_vm7, %v781_v53, %v782_v49  ;;  %v658_v60 = vrot.slane %v651_v51, 2  ;;  %v693_v61 = vmul.f32 %v690_v20, %v3166_v32 }
  0xfa   : > { %v3126_v2 = vld [vmem:[#allocation3] sm:$0xff]  ;;  %v298_v3 = vpop.permute.xlu1 %297  ;;  %v290_v4 = vpop.permute.xlu0 %289  ;;  %v823_v62 = vrot.slane %v817_v52, 6  ;;  %v887_v63 = vmul.f32 %v886_v54, %v3094_v44  ;;  %v928_v0 = vstv %s2605_s8  ;;  %v710_v40 = vstv %s2594_s21  ;;  %s3338_s8 = sld [smem:[#allocation5 + $0xe]] }
  0xfb   : > { %300 = vst.msk [vmem:[#allocation3 + $0xc] sm:$0x1] %vm220_vm3, %v298_v3  ;;  %292 = vst.msk [vmem:[#allocation3 + $0xb] sm:$0x1] %vm220_vm3, %v290_v4  ;;  %v592_v5 = vmul.f32 %v591_v1, %v3126_v2  ;;  %v872_v12 = vmul.f32 %v871_v7, %v3126_v2  ;;  %v617_v59 = vsel %vm376_vm4, %v614_v14, %v616_v50  ;;  %v700_v6 = vrot.slane %v693_v61, 3  ;;  %s2610_s21 = sld [smem:[#allocation5 + $0x4f]] }
  0xfc   : > { %v3210_v3 = vmul.f32 %v928_v0, %v3113_v58  ;;  %v659_v4 = vsel %vm411_vm5, %v656_v22, %v658_v60  ;;  %v929_v8 = vmul.f32 %v928_v0, %v3094_v44  ;;  %v931_v41 = vmul.f32 %v928_v0, %v3166_v32 }
  0xfd   : > { %596 = vrot.lane.b32.xlu0 %v592_v5, %s5346_s22  ;;  %v894_v5 = vrot.slane %v3196_v56, 1  ;;  %v701_v14 = vsel %vm446_vm6, %v698_v30, %v700_v6  ;;  %v889_v30 = vmul.f32 %v886_v54, %v3166_v32  ;;  %v752_v51 = vstv %s2596_s26  ;;  %s3369_s26 = sld [smem:[#allocation5 + $0x31]] }
  0xfe   : > { %v314_v9 = vpop.permute.xlu1 %313  ;;  %v306_v10 = vpop.permute.xlu0 %305  ;;  %v936_v11 = vrot.slane %v3210_v3, 2  ;;  %v938_v50 = vrot.slane %v931_v41, 2  ;;  %v3294_v6 = vstv %s2600_s28  ;;  %s3382_s28 = sld [smem:[#allocation5 + $0x2a]] }
  0xff   : > { %316 = vst.msk [vmem:[#allocation3 + $0xe] sm:$0x1] %vm220_vm3, %v314_v9  ;;  %308 = vst.msk [vmem:[#allocation3 + $0xd] sm:$0x1] %vm220_vm3, %v306_v10  ;;  %v893_v9 = vrot.slane %v887_v63, 1  ;;  %v970_v10 = vstv %s2607_s14  ;;  %s3347_s14 = sld [smem:[#allocation5 + $0x15]] }
 0x100   : > { %v971_v18 = vmul.f32 %v970_v10, %v3094_v44  ;;  %v973_v52 = vmul.f32 %v970_v10, %v3166_v32  ;;  %v939_v60 = vsel %vm411_vm5, %v936_v11, %v938_v50 }
 0x101   : > { %876 = vrot.lane.b32.xlu0 %v872_v12, %s5344_s23  ;;  %v3222_v12 = vmul.f32 %v970_v10, %v3113_v58  ;;  %v895_v13 = vsel %vm376_vm4, %v893_v9, %v894_v5 }
 0x102   : > { %v330_v16 = vpop.permute.xlu1 %329  ;;  %v322_v17 = vpop.permute.xlu0 %321  ;;  %v977_v26 = vrot.slane %v971_v18, 3  ;;  %v980_v61 = vrot.slane %v973_v52, 3 }
 0x103   : > { %332 = vst.msk [vmem:[#allocation3 + $0x10] sm:$0x1] %vm220_vm3, %v330_v16  ;;  %324 = vst.msk [vmem:[#allocation3 + $0xf] sm:$0x1] %vm220_vm3, %v322_v17  ;;  %v777_v16 = vmul.f32 %v774_v37, %v3166_v32  ;;  %v935_v17 = vrot.slane %v929_v8, 2  ;;  %v978_v20 = vrot.slane %v3222_v12, 3  ;;  %v837_v12 = vmul.f32 %v3294_v6, %v3126_v2 }
 0x105   : > { %618 = vrot.lane.b32.xlu0 %v615_v21, %s5346_s22  ;;  %v937_v19 = vsel %vm411_vm5, %v935_v17, %v936_v11  ;;  %v626_v21 = vstv %s2590_s19  ;;  %v784_v23 = vrot.slane %v777_v16, 5  ;;  %s3354_s19 = sld [smem:[#allocation5 + $0x1c]] }
 0x106   : > { %v346_v24 = vpop.permute.xlu1 %345  ;;  %v338_v25 = vpop.permute.xlu0 %337  ;;  %v627_v27 = vmul.f32 %v626_v21, %v3126_v2 }
 0x107   : > { %348 = vst.msk [vmem:[#allocation3 + $0x12] sm:$0x1] %vm220_vm3, %v346_v24  ;;  %340 = vst.msk [vmem:[#allocation3 + $0x11] sm:$0x1] %vm220_vm3, %v338_v25  ;;  %v819_v25 = vmul.f32 %v816_v45, %v3166_v32  ;;  %v785_v31 = vsel %vm515_vm7, %v782_v49, %v784_v23  ;;  %v711_v49 = vmul.f32 %v710_v40, %v3126_v2 }
 0x108   : > { %v633_v37 = vrot.slane %v627_v27, 1 }
 0x109   : > { %660 = vrot.lane.b32.xlu0 %v657_v29, %s5346_s22  ;;  %v668_v29 = vstv %s2592_s20  ;;  %v826_v35 = vrot.slane %v819_v25, 6  ;;  %v3336_v25 = vstv %s2606_s15  ;;  %s3360_s20 = sld [smem:[#allocation5 + $0x23]] }
 0x10a   : > { %v3169_v33 = vld [vmem:[#allocation3 + $0x8] sm:$0xff]  ;;  %s3398_s15 = sld [smem:[#allocation5 + $0x2c]] }
 0x10b   : > { %v593_v36 = vmul.f32 %v591_v1, %v3169_v33  ;;  %v873_v46 = vmul.f32 %v871_v7, %v3169_v33  ;;  %v825_v1 = vsel %vm550_vm8, %v823_v62, %v824_v55  ;;  %v735_v7 = vmul.f32 %v732_v28, %v3166_v32 }
 0x10c   : > { %v3236_v24 = vmul.f32 %v626_v21, %v3169_v33  ;;  %v979_v28 = vsel %vm446_vm6, %v977_v26, %v978_v20  ;;  %v827_v43 = vsel %vm550_vm8, %v824_v55, %v826_v35  ;;  %v3275_v55 = vmul.f32 %v752_v51, %v3169_v33 }
 0x10d   : > { %702 = vrot.lane.b32.xlu0 %v699_v38, %s5346_s22  ;;  %598 = vrot.lane.b32.xlu1 %v593_v36, %s5346_s22  ;;  %v742_v15 = vrot.slane %v735_v7, 4  ;;  %v3249_v36 = vmul.f32 %v668_v29, %v3169_v33  ;;  %v669_v38 = vmul.f32 %v668_v29, %v3126_v2  ;;  %v794_v62 = vstv %s2598_s27  ;;  %s3378_s27 = sld [smem:[#allocation5 + $0x38]] }
 0x10e   : > { %v634_v34 = vrot.slane %v3236_v24, 1  ;;  %v3277_v56 = vld [vmem:[#allocation3 + $0x10] sm:$0x3f]  ;;  %v760_v0 = vrot.slane %v3275_v55, 4  ;;  %v981_v7 = vsel %vm446_vm6, %v978_v20, %v980_v61  ;;  %v3301_v8 = vmul.f32 %v3294_v6, %v3169_v33 }
 0x10f   : > { %v743_v22 = vsel %vm176_vm0, %v740_v39, %v742_v15  ;;  %v896_v39 = vrot.slane %v889_v30, 1  ;;  %v676_v45 = vrot.slane %v3249_v36, 2  ;;  %v629_v3 = vmul.f32 %v626_v21, %v3277_v56 }
 0x110   : > { %v635_v42 = vsel %vm376_vm4, %v633_v37, %v634_v34  ;;  %v3312_v15 = vstv %s2604_s4  ;;  %v844_v16 = vrot.slane %v3301_v8, 6  ;;  %v713_v21 = vmul.f32 %v710_v40, %v3277_v56  ;;  %s3389_s4 = sld [smem:[#allocation5 + $0x25]] }
 0x111   : > { %744 = vrot.lane.b32.xlu0 %v741_v48, %s5346_s22  ;;  %878 = vrot.lane.b32.xlu1 %v873_v46, %s5344_s23  ;;  %v3263_v46 = vmul.f32 %v710_v40, %v3169_v33  ;;  %v675_v48 = vrot.slane %v669_v38, 2  ;;  %v897_v53 = vsel %vm376_vm4, %v894_v5, %v896_v39  ;;  %v795_v5 = vmul.f32 %v794_v62, %v3126_v2 }
 0x112   : > { %v636_v11 = vrot.slane %v629_v3, 1  ;;  %v3317_v17 = vmul.f32 %v3312_v15, %v3169_v33  ;;  %v907_v23 = vmul.f32 %v3312_v15, %v3126_v2  ;;  %v3345_v26 = vmul.f32 %v3336_v25, %v3169_v33 }
 0x113   : > { %v677_v47 = vsel %vm411_vm5, %v675_v48, %v676_v45  ;;  %v718_v54 = vrot.slane %v3263_v46, 3  ;;  %v755_v30 = vmul.f32 %v752_v51, %v3277_v56  ;;  %v3362_v35 = vstv %s2608_s17  ;;  %s3406_s17 = sld [smem:[#allocation5 + $0x3f]] }
 0x114   : > { %v956_v36 = vrot.slane %v3345_v26, 2  ;;  %v3367_v37 = vmul.f32 %v3362_v35, %v3169_v33  ;;  %v797_v41 = vmul.f32 %v794_v62, %v3277_v56  ;;  %v839_v52 = vmul.f32 %v3294_v6, %v3277_v56 }
 0x115   : > { %786 = vrot.lane.b32.xlu0 %v783_v57, %s5346_s22  ;;  %620 = vrot.lane.b32.xlu1 %v617_v59, %s5346_s22  ;;  %v717_v57 = vrot.slane %v711_v49, 3  ;;  %v753_v59 = vmul.f32 %v752_v51, %v3126_v2  ;;  %v762_v40 = vrot.slane %v755_v30, 4 }
 0x116   : > { %v998_v50 = vrot.slane %v3367_v37, 3  ;;  %v804_v51 = vrot.slane %v797_v41, 5  ;;  %v846_v61 = vrot.slane %v839_v52, 6 }
 0x117   : > { %v719_v63 = vsel %vm446_vm6, %v717_v57, %v718_v54  ;;  %v763_v49 = vsel %vm176_vm0, %v760_v0, %v762_v40  ;;  %v3537_v40 = vstv %s3382_s28  ;;  %s4307_s28 = sld [smem:[#allocation5 + $0x27]] }
 0x119   : > { %828 = vrot.lane.b32.xlu0 %v825_v1, %s5346_s22  ;;  %662 = vrot.lane.b32.xlu1 %v659_v4, %s5346_s22  ;;  %v3288_v1 = vmul.f32 %v794_v62, %v3169_v33  ;;  %v759_v4 = vrot.slane %v753_v59, 4  ;;  %v909_v62 = vmul.f32 %v3312_v15, %v3277_v56 }
 0x11b   : > { %v761_v9 = vsel %vm176_vm0, %v759_v4, %v760_v0  ;;  %v802_v10 = vrot.slane %v3288_v1, 5  ;;  %v3446_v4 = vstv %s3389_s4  ;;  %v916_v6 = vrot.slane %v909_v62, 1  ;;  %s5395_s4 = smov 127  }
 0x11c   : > { %v1055_v8 = vmul.f32 %v3446_v4, %v3094_v44 }
 0x11d   : > { %898 = vrot.lane.b32.xlu0 %v895_v13, %s5344_s23  ;;  %704 = vrot.lane.b32.xlu1 %v701_v14, %s5346_s22  ;;  %v671_v13 = vmul.f32 %v668_v29, %v3277_v56  ;;  %v801_v14 = vrot.slane %v795_v5, 5  ;;  %v720_v29 = vrot.slane %v713_v21, 3  ;;  %v847_v5 = vsel %vm550_vm8, %v844_v16, %v846_v61 }
 0x11e   : > { %v3495_v21 = vstv %s3338_s8  ;;  %s3531_s8 = sld [smem:[#allocation5 + $0x42]]  ;;  %v3577_v61 = vstv %s3439_s24 }
 0x11f   : > { %v803_v18 = vsel %vm515_vm7, %v801_v14, %v802_v10  ;;  %v678_v20 = vrot.slane %v671_v13, 2  ;;  %v721_v39 = vsel %vm446_vm6, %v718_v54, %v720_v29  ;;  %v3414_v54 = vstv %s2610_s21  ;;  %s3431_s21 = sld [smem:[#allocation5 + $0x46]] }
 0x120   : > { %v3419_v57 = vmul.f32 %v3414_v54, %v3169_v33  ;;  %v1033_v0 = vmul.f32 %v3414_v54, %v3126_v2  ;;  %s4155_s24 = sld [smem:[#allocation5 + $0x12]] }
 0x121   : > { %940 = vrot.lane.b32.xlu0 %v937_v19, %s5344_s23  ;;  %746 = vrot.lane.b32.xlu1 %v743_v22, %s5346_s22  ;;  %v637_v19 = vsel %vm376_vm4, %v634_v34, %v636_v11  ;;  %v843_v22 = vrot.slane %v837_v12, 6  ;;  %v679_v27 = vsel %vm411_vm5, %v676_v45, %v678_v20  ;;  %v913_v34 = vrot.slane %v907_v23, 1 }
 0x122   : > { %v3387_v45 = vstv %s3319_s5  ;;  %s3412_s5 = sld [smem:[#allocation5 + $0x3]]  ;;  %v1040_v3 = vrot.slane %v3419_v57, 4  ;;  %v3467_v11 = vstv %s2612_s30  ;;  %v5353_v12 = vstv %s3328_s6 }
 0x123   : > { %v845_v24 = vsel %vm550_vm8, %v843_v22, %v844_v16  ;;  %v3396_v48 = vmul.f32 %v3387_v45, %v3113_v58  ;;  %v3477_v14 = vmul.f32 %v3467_v11, %v3169_v33  ;;  %s3487_s30 = sld [smem:[#allocation5 + $0x26]]  ;;  %v3492_v20 = vstv %s3332_s7 }
 0x124   : > { %v3502_v22 = vstv %s3347_s14  ;;  %v3505_v23 = vstv %s3354_s19  ;;  %s3521_s7 = sld [smem:[#allocation5 + $0x3b]] }
 0x125   : > { %982 = vrot.lane.b32.xlu0 %v979_v28, %s5344_s23  ;;  %788 = vrot.lane.b32.xlu1 %v785_v31, %s5346_s22  ;;  %v914_v28 = vrot.slane %v3317_v17, 1  ;;  %v949_v31 = vmul.f32 %v3336_v25, %v3126_v2  ;;  %v1020_v55 = vrot.slane %v3396_v48, 4  ;;  %v1075_v17 = vmul.f32 %v3467_v11, %v3126_v2  ;;  %s3543_s14 = sld [smem:[#allocation5 + $0x49]] }
 0x126   : > { %v1082_v29 = vrot.slane %v3477_v14, 5  ;;  %s3555_s19 = sld [smem:[#allocation5 + $0x50]] }
 0x127   : > { %v915_v38 = vsel %vm376_vm4, %v913_v34, %v914_v28  ;;  %v917_v15 = vsel %vm376_vm4, %v914_v28, %v916_v6  ;;  %v3514_v28 = vstv %s3360_s20  ;;  %v1081_v41 = vrot.slane %v1075_v17, 5  ;;  %s2636_s20 = sld [smem:[#allocation5 + $0x4a]] }
 0x128   : > { %v3625_v17 = vmul.f32 %v3492_v20, %v3113_v58 }
 0x129   : > { %638 = vrot.lane.b32.xlu0 %v635_v42, %s5346_s22  ;;  %830 = vrot.lane.b32.xlu1 %v827_v43, %s5346_s22  ;;  %v955_v42 = vrot.slane %v949_v31, 2  ;;  %v991_v43 = vmul.f32 %v3362_v35, %v3126_v2  ;;  %v3604_v6 = vstv %s3487_s30  ;;  %s4468_s30 = sld [smem:[#allocation5 + $0x36]] }
 0x12b   : > { %v957_v46 = vsel %vm411_vm5, %v955_v42, %v956_v36  ;;  %v3549_v42 = vstv %s3431_s21  ;;  %s4444_s21 = sld [smem:[#allocation5 + $0x5]] }
 0x12d   : > { %680 = vrot.lane.b32.xlu0 %v677_v47, %s5346_s22  ;;  %900 = vrot.lane.b32.xlu1 %v897_v53, %s5344_s23  ;;  %v1013_v47 = vmul.f32 %v3387_v45, %v3094_v44  ;;  %v997_v53 = vrot.slane %v991_v43, 3  ;;  %v5354_v43 = vstv %s3412_s5 }
 0x12f   : > { %v999_v59 = vsel %vm446_vm6, %v997_v53, %v998_v50 }
 0x131   : > { %722 = vrot.lane.b32.xlu0 %v719_v63, %s5346_s22  ;;  %942 = vrot.lane.b32.xlu1 %v939_v60, %s5344_s23  ;;  %v805_v60 = vsel %vm515_vm7, %v802_v10, %v804_v51  ;;  %v1019_v63 = vrot.slane %v1013_v47, 4  ;;  %v1039_v10 = vrot.slane %v1033_v0, 4  ;;  %v3592_v0 = vstv %s3463_s10  ;;  %s2903_s10 = smov 125  }
 0x133   : > { %v1021_v1 = vsel %vm176_vm0, %v1019_v63, %v1020_v55  ;;  %v1041_v13 = vsel %vm176_vm0, %v1039_v10, %v1040_v3 }
 0x135   : > { %764 = vrot.lane.b32.xlu0 %v761_v9, %s5346_s22  ;;  %984 = vrot.lane.b32.xlu1 %v981_v7, %s5344_s23  ;;  %v3457_v7 = vmul.f32 %v3446_v4, %v3113_v58  ;;  %v951_v9 = vmul.f32 %v3336_v25, %v3277_v56  ;;  %v1061_v25 = vrot.slane %v1055_v8, 5 }
 0x137   : > { %v1062_v16 = vrot.slane %v3457_v7, 5 }
 0x139   : > { %806 = vrot.lane.b32.xlu0 %v803_v18, %s5346_s22  ;;  %640 = vrot.lane.b32.xlu1 %v637_v19, %s5346_s22  ;;  %v958_v18 = vrot.slane %v951_v9, 2  ;;  %v993_v19 = vmul.f32 %v3362_v35, %v3277_v56  ;;  %v1063_v31 = vsel %vm515_vm7, %v1061_v25, %v1062_v16  ;;  %v3607_v9 = vstv %s3499_s12  ;;  %s4096_s12 = sld [smem:[#allocation5 + $0xb]] }
 0x13a   : > { %v3631_v25 = vstv %s3555_s19  ;;  %s2648_s19 = sld [smem:[#allocation5 + $0x44]] }
 0x13b   : > { %v959_v34 = vsel %vm411_vm5, %v956_v36, %v958_v18  ;;  %v1000_v35 = vrot.slane %v993_v19, 3  ;;  %v3546_v36 = vstv %s3406_s17  ;;  %v3618_v18 = vstv %s3521_s7  ;;  %s4357_s17 = sld [smem:[#allocation5 + $0x2e]] }
 0x13c   : > { %v3621_v19 = vstv %s3531_s8  ;;  %s2646_s7 = sld [smem:[#allocation5 + $0x3d]] }
 0x13d   : > { %848 = vrot.lane.b32.xlu0 %v845_v24, %s5346_s22  ;;  %682 = vrot.lane.b32.xlu1 %v679_v27, %s5346_s22  ;;  %v3508_v24 = vstv %s3398_s15  ;;  %v5355_v27 = vstv %s3369_s26  ;;  %v1001_v47 = vsel %vm446_vm6, %v998_v50, %v1000_v35  ;;  %s4331_s15 = sld [smem:[#allocation5 + $0x58]] }
 0x13e   : > { %v3519_v30 = vmul.f32 %v3508_v24, %v3113_v58  ;;  %v1097_v26 = vmul.f32 %v3508_v24, %v3094_v44  ;;  %s4507_s8 = sld [smem:[#allocation5 + $0x13]] }
 0x140   : > { %v1104_v51 = vrot.slane %v3519_v30, 6  ;;  %v1103_v37 = vrot.slane %v1097_v26, 6 }
 0x141   : > { %918 = vrot.lane.b32.xlu0 %v915_v38, %s5344_s23  ;;  %724 = vrot.lane.b32.xlu1 %v721_v39, %s5346_s22  ;;  %v1015_v38 = vmul.f32 %v3387_v45, %v3166_v32  ;;  %v3534_v39 = vstv %s3378_s27  ;;  %v3553_v45 = vstv %s3421_s0  ;;  %s3584_s0 = sld [smem:[#allocation5 + $0x57]] }
 0x142   : > { %v3643_v35 = vmul.f32 %v3534_v39, %v3169_v33  ;;  %s4281_s27 = sld [smem:[#allocation5 + $0x51]] }
 0x143   : > { %v1022_v53 = vrot.slane %v1015_v38, 4 }
 0x145   : > { %960 = vrot.lane.b32.xlu0 %v957_v46, %s5344_s23  ;;  %766 = vrot.lane.b32.xlu1 %v763_v49, %s5346_s22  ;;  %v3558_v46 = vstv %s3437_s1  ;;  %v1083_v49 = vsel %vm515_vm7, %v1081_v41, %v1082_v29  ;;  %s3597_s1 = sld [smem:[#allocation5 + $0x5e]]  ;;  %v1023_v10 = vsel %vm176_vm0, %v1020_v55, %v1022_v53  ;;  %v3628_v55 = vstv %s3543_s14  ;;  %s2905_s14 = smov 123  }
 0x146   : > { %v405_v53 = vmul.f32 %v3495_v21, %v3094_v44 }
 0x147   : > { %v3664_v57 = vstv %s3584_s0  ;;  %s2649_s0 = sld [smem:[#allocation5 + $0x1a]] }
 0x149   : > { %1002 = vrot.lane.b32.xlu0 %v999_v59, %s5344_s23  ;;  %808 = vrot.lane.b32.xlu1 %v805_v60, %s5346_s22  ;;  %s3448_s23 = sld [smem:[#allocation5 + $0x11]]  ;;  %v1035_v60 = vmul.f32 %v3414_v54, %v3277_v56  ;;  %v3595_v54 = vstv %s3469_s18 }
 0x14a   : > { %s3453_s22 = sld [smem:[#allocation5 + $0x5b]] }
 0x14b   : > { %s4128_s18 = sld [smem:[#allocation5 + $0x3c]] }
 0x14d   : > { %1024 = vrot.lane.b32.xlu0 %v1021_v1, %s5394_s11  ;;  %850 = vrot.lane.b32.xlu1 %v847_v5, %s5395_s4  ;;  %s3479_s4 = sld [smem:[#allocation5 + $0x5d]]  ;;  %v1105_v1 = vsel %vm550_vm8, %v1103_v37, %v1104_v51  ;;  %v5357_v5 = vstv %s3510_s16  ;;  %v3673_v37 = vmul.f32 %v3514_v28, %v3094_v44 }
 0x14f   : > { %v3582_v62 = vstv %s3448_s23  ;;  %s4182_s23 = sld [smem:[#allocation5 + $0x43]] }
 0x150   : > { %v3587_v50 = vstv %s3453_s22  ;;  %s2904_s22 = smov 124  }
 0x151   : > { %1044 = vrot.lane.b32.xlu0 %v1041_v13, %s5394_s11  ;;  %920 = vrot.lane.b32.xlu1 %v917_v15, %s5394_s11  ;;  %v1042_v13 = vrot.slane %v1035_v60, 4  ;;  %v1057_v15 = vmul.f32 %v3446_v4, %v3166_v32  ;;  %v358_v4 = vmul.f32 %v5353_v12, %v3094_v44  ;;  %v3659_v60 = vmul.f32 %v3502_v22, %v3094_v44 }
 0x152   : > { %v1099_v12 = vmul.f32 %v3508_v24, %v3166_v32  ;;  %v3706_v24 = vmul.f32 %v3537_v40, %v3094_v44 }
 0x153   : > { %v3565_v52 = vstv %s3479_s4  ;;  %v1043_v41 = vsel %vm176_vm0, %v1040_v3, %v1042_v13  ;;  %v1064_v26 = vrot.slane %v1057_v15, 5  ;;  %v5359_v3 = vrot.slane %v3625_v17, 1  ;;  %s2645_s4 = sld [smem:[#allocation5 + $0xc]] }
 0x154   : > { %v3572_v59 = vmul.f32 %v3565_v52, %v3169_v33  ;;  %v1117_v63 = vmul.f32 %v3565_v52, %v3126_v2  ;;  %v1139_v13 = vmul.f32 %v5354_v43, %v3094_v44  ;;  %v3684_v15 = vmul.f32 %v3553_v45, %v3113_v58 }
 0x155   : > { %1066 = vrot.lane.b32.xlu0 %v1063_v31, %s5394_s11  ;;  %962 = vrot.lane.b32.xlu1 %v959_v34, %s5394_s11  ;;  %v363_v31 = vmul.f32 %v5355_v27, %v3126_v2  ;;  %v370_v34 = vmul.f32 %v3492_v20, %v3094_v44  ;;  %v412_v43 = vrot.slane %v405_v53, 2 }
 0x156   : > { %v5356_v8 = vrot.slane %v3572_v59, 6  ;;  %v1123_v48 = vrot.slane %v1117_v63, 6  ;;  %v3676_v63 = vstv %s3597_s1  ;;  %v5361_v53 = vrot.slane %v3684_v15, 1  ;;  %s2650_s1 = sld [smem:[#allocation5 + $0x4b]] }
 0x158   : > { %v1125_v38 = vsel %vm550_vm8, %v1123_v48, %v5356_v8  ;;  %v377_v48 = vrot.slane %v370_v34, 1  ;;  %v3696_v8 = vpop.permute.xlu0 %583  ;;  %v1167_v34 = vmul.f32 %v3553_v45, %v3094_v44 }
 0x159   : > { %1086 = vrot.lane.b32.xlu0 %v1083_v49, %s5394_s11  ;;  %1004 = vrot.lane.b32.xlu1 %v1001_v47, %s5394_s11  ;;  %v1077_v49 = vmul.f32 %v3467_v11, %v3277_v56  ;;  %v387_v47 = vmul.f32 %v3534_v39, %v3126_v2  ;;  %v3669_v11 = vmul.f32 %v3505_v23, %v3094_v44 }
 0x15a   : > { %5396 = vst [vmem:[#allocation20_spill] sm:$0xff] %v3696_v8  ;;  %v379_v7 = vsel %vm376_vm4, %v377_v48, %v5359_v3  ;;  %v1106_v48 = vrot.slane %v1099_v12, 6  ;;  %v1209_v12 = vmul.f32 %v3582_v62, %v3094_v44 }
 0x15c   : > { %v1215_v30 = vrot.slane %v1209_v12, 2 }
 0x15d   : > { %1108 = vrot.lane.b32.xlu0 %v1105_v1, %s5394_s11  ;;  %1026 = vrot.lane.b32.xlu1 %v1023_v10, %s5394_s11  ;;  %v365_v1 = vadd.f32 %v363_v31, %v358_v4  ;;  %v5358_v10 = vrot.slane %v3643_v35, 1  ;;  %v393_v4 = vrot.slane %v387_v47, 1  ;;  %v3693_v31 = vmul.f32 %v3495_v21, %v3113_v58 }
 0x15e   : > { %v1152_v47 = vmul.f32 %v5357_v5, %v3126_v2  ;;  %v422_v5 = vmul.f32 %v3546_v36, %v3126_v2 }
 0x161   : > { %1128 = vrot.lane.b32.xlu0 %v1125_v38, %s5394_s11  ;;  %1046 = vrot.lane.b32.xlu1 %v1043_v41, %s5394_s11  ;;  %v1065_v38 = vsel %vm515_vm7, %v1062_v16, %v1064_v26  ;;  %v1084_v41 = vrot.slane %v1077_v49, 5  ;;  %v384_v26 = vadd.f32 %v379_v7, %v365_v1  ;;  %v395_v49 = vsel %vm376_vm4, %v393_v4, %v5358_v10 }
 0x162   : > { %v1119_v1 = vmul.f32 %v3565_v52, %v3277_v56  ;;  %v5360_v7 = vrot.slane %v3693_v31, 2  ;;  %v3729_v4 = vmul.f32 %v3546_v36, %v3169_v33  ;;  %v1187_v52 = vmul.f32 %v3618_v18, %v3126_v2 }
 0x163   : > { %v400_v14 = vadd.f32 %v395_v49, %v384_v26  ;;  %v1107_v49 = vsel %vm550_vm8, %v1104_v51, %v1106_v48 }
 0x164   : > { %v1126_v10 = vrot.slane %v1119_v1, 6  ;;  %v414_v3 = vsel %vm411_vm5, %v412_v43, %v5360_v7  ;;  %v5362_v27 = vrot.slane %v3729_v4, 2  ;;  %v1193_v51 = vrot.slane %v1187_v52, 1 }
 0x165   : > { %1143 = vrot.lane.b32.xlu0 %v1139_v13, %s2903_s10  ;;  %1068 = vrot.lane.b32.xlu1 %v1065_v38, %s5394_s11  ;;  %v1085_v13 = vsel %vm515_vm7, %v1082_v29, %v1084_v41  ;;  %v3722_v38 = vmul.f32 %v3618_v18, %v3169_v33  ;;  %v1173_v29 = vrot.slane %v1167_v34, 1  ;;  %v3740_v41 = vmul.f32 %v3592_v0, %v3094_v44 }
 0x166   : > { %v3753_v34 = vmul.f32 %v3595_v54, %v3094_v44  ;;  %v3775_v1 = vmul.f32 %v3604_v6, %v3094_v44  ;;  %v428_v43 = vrot.slane %v422_v5, 2  ;;  %v372_v7 = vmul.f32 %v3492_v20, %v3166_v32 }
 0x167   : > { %v1175_v26 = vsel %vm376_vm4, %v1173_v29, %v5361_v53  ;;  %v5363_v16 = vrot.slane %v3722_v38, 1  ;;  %v419_v29 = vadd.f32 %v414_v3, %v400_v14  ;;  %v389_v53 = vmul.f32 %v3534_v39, %v3277_v56 }
 0x168   : > { %v5399_v14 = vrot.slane %v3572_v59, 6  ;;  %v3793_v20 = vmul.f32 %v3621_v19, %v3169_v33  ;;  %v430_v39 = vsel %vm411_vm5, %v428_v43, %v5362_v27  ;;  %v5400_v59 = vstv %s3369_s26  ;;  %s4255_s26 = sld [smem:[#allocation5 + $0x20]] }
 0x169   : > { %1156 = vrot.lane.b32.xlu0 %v1152_v47, %s2903_s10  ;;  %1088 = vrot.lane.b32.xlu1 %v1085_v13, %s5394_s11  ;;  %v3745_v47 = vpop.permute.xlu0 %863  ;;  %v3749_v13 = vmul.f32 %v3582_v62, %v3113_v58  ;;  %v1195_v12 = vsel %vm376_vm4, %v1193_v51, %v5363_v16  ;;  %v364_v51 = vmul.f32 %v5400_v59, %v3169_v33  ;;  %v5401_v27 = vstv %s3328_s6  ;;  %s4221_s6 = sld [smem:[#allocation5 + $0x19]] }
 0x16a   : > { %5397 = vst [vmem:[#allocation21_spill] sm:$0xff] %v3745_v47  ;;  %v3768_v47 = vmul.f32 %v3502_v22, %v3113_v58  ;;  %v1127_v44 = vsel %vm550_vm8, %v5399_v14, %v1126_v10  ;;  %v435_v10 = vadd.f32 %v430_v39, %v419_v29  ;;  %v3808_v14 = vmul.f32 %v3549_v42, %v3169_v33 }
 0x16b   : > { %v5364_v5 = vrot.slane %v3749_v13, 2  ;;  %v1229_v43 = vmul.f32 %v3621_v19, %v3126_v2  ;;  %v359_v16 = vmul.f32 %v5401_v27, %v3113_v58  ;;  %v380_v48 = vrot.slane %v372_v7, 1 }
 0x16c   : > { %v396_v52 = vrot.slane %v389_v53, 1  ;;  %v1169_v27 = vmul.f32 %v3553_v45, %v3166_v32  ;;  %v5404_v53 = vrot.slane %v3768_v47, 3  ;;  %v5405_v7 = vrot.slane %v3659_v60, 3 }
 0x16d   : > { %1178 = vrot.lane.b32.xlu0 %v1175_v26, %s2903_s10  ;;  %1110 = vrot.lane.b32.xlu1 %v1107_v49, %s5394_s11  ;;  %v457_v49 = vmul.f32 %v3549_v42, %v3126_v2  ;;  %v1217_v29 = vsel %vm411_vm5, %v1215_v30, %v5364_v5  ;;  %v3838_v30 = vmul.f32 %v3505_v23, %v3113_v58  ;;  %v3840_v5 = vpop.permute.xlu1 %585  ;;  %v5365_v45 = vrot.slane %v3808_v14, 3 }
 0x16e   : > { %5406 = vst [vmem:[#allocation24_spill] sm:$0xff] %v3840_v5  ;;  %v366_v39 = vadd.f32 %v364_v51, %v359_v16  ;;  %v407_v60 = vmul.f32 %v3495_v21, %v3166_v32  ;;  %v1235_v8 = vrot.slane %v1229_v43, 2  ;;  %v5409_v51 = vstv %s3510_s16  ;;  %s4118_s16 = sld [smem:[#allocation5 + $0x35]] }
 0x16f   : > { %v3781_v26 = vpop.permute.xlu0 %596  ;;  %v463_v3 = vrot.slane %v457_v49, 3  ;;  %v5407_v49 = vrot.slane %v3625_v17, 1  ;;  %v5410_v21 = vrot.slane %v3793_v20, 2 }
 0x170   : > { %5398 = vst [vmem:[#allocation22_spill] sm:$0xff] %v3781_v26  ;;  %v3827_v26 = vmul.f32 %v3592_v0, %v3113_v58 }
 0x171   : > { %1198 = vrot.lane.b32.xlu0 %v1195_v12, %s2903_s10  ;;  %1130 = vrot.lane.b32.xlu1 %v1127_v44, %s5394_s11  ;;  %v5403_v12 = vstv %s3412_s5  ;;  %v1237_v43 = vsel %vm411_vm5, %v1235_v8, %v5410_v21  ;;  %v1271_v8 = vmul.f32 %v3628_v55, %v3126_v2  ;;  %s4078_s11 = sld [smem:[#allocation5 + $0x4]] }
 0x172   : > { %v1140_v44 = vmul.f32 %v5403_v12, %v3113_v58  ;;  %v449_v12 = vsel %vm446_vm6, %v5405_v7, %v5404_v53  ;;  %v381_v53 = vsel %vm376_vm4, %v5407_v49, %v380_v48  ;;  %v5408_v7 = vrot.slane %v3643_v35, 1  ;;  %s2642_s5 = sld [smem:[#allocation5 + $0x5f]] }
 0x173   : > { %v3816_v59 = vpop.permute.xlu0 %876  ;;  %v5367_v17 = vrot.slane %v3827_v26, 3  ;;  %v1176_v48 = vrot.slane %v1169_v27, 1  ;;  %v1189_v35 = vmul.f32 %v3618_v18, %v3277_v56  ;;  %v465_v27 = vsel %vm446_vm6, %v463_v3, %v5365_v45  ;;  %v3909_v45 = vld [vmem:[#allocation2 + $0x8] sm:$0xff] }
 0x174   : > { %5402 = vst [vmem:[#allocation23_spill] sm:$0xff] %v3816_v59  ;;  %v454_v59 = vadd.f32 %v449_v12, %v435_v10  ;;  %v397_v5 = vsel %vm376_vm4, %v5408_v7, %v396_v52  ;;  %v3860_v10 = vmul.f32 %v3628_v55, %v3169_v33  ;;  %v5366_v52 = vrot.slane %v3838_v30, 4 }
 0x175   : > { %1220 = vrot.lane.b32.xlu0 %v1217_v29, %s2903_s10  ;;  %1145 = vrot.lane.b32.xlu1 %v1140_v44, %s2903_s10  ;;  %v1153_v44 = vmul.f32 %v5409_v51, %v3169_v33  ;;  %v3871_v29 = vmul.f32 %v3558_v46, %v3169_v33  ;;  %v385_v12 = vadd.f32 %v381_v53, %v366_v39  ;;  %v415_v49 = vrot.slane %v407_v60, 2  ;;  %v3884_v53 = vpop.permute.xlu1 %865 }
 0x176   : > { %v491_v18 = vmul.f32 %v3558_v46, %v3126_v2  ;;  %v424_v7 = vmul.f32 %v3546_v36, %v3277_v56  ;;  %v470_v51 = vadd.f32 %v465_v27, %v454_v59  ;;  %v5411_v2 = vrot.slane %v3740_v41, 3 }
 0x177   : > { %v3853_v16 = vpop.permute.xlu0 %618  ;;  %v401_v39 = vadd.f32 %v397_v5, %v385_v12  ;;  %v5412_v36 = vrot.slane %v3684_v15, 1  ;;  %v1196_v59 = vrot.slane %v1189_v35, 1  ;;  %v1211_v60 = vmul.f32 %v3582_v62, %v3166_v32 }
 0x178   : > { %v1259_v3 = vsel %vm446_vm6, %v5411_v2, %v5367_v17  ;;  %v5413_v12 = vrot.slane %v3669_v11, 4  ;;  %v5368_v27 = vrot.slane %v3871_v29, 4  ;;  %v3913_v41 = vmul.f32 %v3909_v45, %v3514_v28 }
 0x179   : > { %1240 = vrot.lane.b32.xlu0 %v1237_v43, %s2903_s10  ;;  %1158 = vrot.lane.b32.xlu1 %v1153_v44, %s2903_s10  ;;  %v1278_v44 = vrot.slane %v3860_v10, 3  ;;  %v3891_v43 = vmul.f32 %v3595_v54, %v3113_v58  ;;  %v1177_v5 = vsel %vm376_vm4, %v5412_v36, %v1176_v48  ;;  %v1277_v15 = vrot.slane %v1271_v8, 3 }
 0x17a   : > { %v483_v58 = vsel %vm176_vm0, %v5413_v12, %v5366_v52  ;;  %v497_v62 = vrot.slane %v491_v18, 4  ;;  %v5414_v48 = vrot.slane %v3693_v31, 2  ;;  %v431_v35 = vrot.slane %v424_v7, 2 }
 0x17b   : > { %v3886_v21 = vpop.permute.xlu0 %660  ;;  %v442_v2 = vmul.f32 %v3502_v22, %v3166_v32  ;;  %v488_v36 = vadd.f32 %v483_v58, %v470_v51  ;;  %v5370_v8 = vrot.slane %v3891_v43, 4  ;;  %v5415_v31 = vrot.slane %v3722_v38, 1 }
 0x17c   : > { %v416_v11 = vsel %vm411_vm5, %v5414_v48, %v415_v49  ;;  %v1218_v49 = vrot.slane %v1211_v60, 2  ;;  %v3935_v22 = vmul.f32 %v3631_v25, %v3169_v33  ;;  %v1231_v7 = vmul.f32 %v3621_v19, %v3277_v56 }
 0x17d   : > { %1262 = vrot.lane.b32.xlu0 %v1259_v3, %s2903_s10  ;;  %1180 = vrot.lane.b32.xlu1 %v1177_v5, %s2903_s10  ;;  %v420_v12 = vadd.f32 %v416_v11, %v401_v39  ;;  %v1279_v3 = vsel %vm446_vm6, %v1277_v15, %v1278_v44  ;;  %v1197_v18 = vsel %vm376_vm4, %v5415_v31, %v1196_v59  ;;  %v5369_v39 = vrot.slane %v3913_v41, 5  ;;  %v3943_v5 = vld [vmem:[#allocation3] sm:$0xff] }
 0x17e   : > { %v499_v51 = vsel %vm176_vm0, %v497_v62, %v5368_v27  ;;  %v526_v38 = vmul.f32 %v3943_v5, %v3577_v61  ;;  %v3949_v59 = vmul.f32 %v3577_v61, %v3169_v33  ;;  %v5416_v19 = vrot.slane %v3729_v4, 2 }
 0x17f   : > { %v3922_v52 = vpop.permute.xlu1 %598  ;;  %v3924_v17 = vpop.permute.xlu0 %702  ;;  %v450_v58 = vrot.slane %v442_v2, 3  ;;  %v459_v15 = vmul.f32 %v3549_v42, %v3277_v56  ;;  %v1313_v62 = vmul.f32 %v3943_v5, %v3631_v25  ;;  %v504_v48 = vadd.f32 %v499_v51, %v488_v36 }
 0x180   : > { %v432_v60 = vsel %vm411_vm5, %v5416_v19, %v431_v35  ;;  %v3971_v35 = vmul.f32 %v3909_v45, %v3604_v6  ;;  %v5418_v42 = vrot.slane %v3749_v13, 2  ;;  %v1320_v36 = vrot.slane %v3935_v22, 4 }
 0x181   : > { %1282 = vrot.lane.b32.xlu0 %v1279_v3, %s2903_s10  ;;  %1200 = vrot.lane.b32.xlu1 %v1197_v18, %s2903_s10  ;;  %v436_v11 = vadd.f32 %v432_v60, %v420_v12  ;;  %v5417_v3 = vrot.slane %v3753_v34, 4  ;;  %v1238_v12 = vrot.slane %v1231_v7, 2  ;;  %v1253_v18 = vmul.f32 %v3592_v0, %v3166_v32 }
 0x182   : > { %v1219_v2 = vsel %vm411_vm5, %v5418_v42, %v1218_v49  ;;  %v5419_v34 = vrot.slane %v3673_v37, 5  ;;  %v532_v19 = vrot.slane %v526_v38, 5  ;;  %v533_v60 = vrot.slane %v3949_v59, 5 }
 0x183   : > { %v3960_v31 = vpop.permute.xlu1 %878  ;;  %v3962_v27 = vpop.permute.xlu0 %744  ;;  %v1301_v4 = vsel %vm176_vm0, %v5417_v3, %v5370_v8  ;;  %v3987_v13 = vmul.f32 %v3909_v45, %v3537_v40  ;;  %v5420_v49 = vrot.slane %v3768_v47, 3  ;;  %v466_v7 = vrot.slane %v459_v15, 3 }
 0x184   : > { %v518_v51 = vsel %vm515_vm7, %v5419_v34, %v5369_v39  ;;  %v477_v37 = vmul.f32 %v3505_v23, %v3166_v32  ;;  %v1319_v3 = vrot.slane %v1313_v62, 4  ;;  %v1342_v8 = vrot.slane %v3971_v35, 5 }
 0x185   : > { %1304 = vrot.lane.b32.xlu0 %v1301_v4, %s2903_s10  ;;  %1222 = vrot.lane.b32.xlu1 %v1219_v2, %s2903_s10  ;;  %v451_v0 = vsel %vm446_vm6, %v5420_v49, %v450_v58  ;;  %v523_v38 = vadd.f32 %v518_v51, %v504_v48  ;;  %v4003_v4 = vmul.f32 %v3664_v57, %v3169_v33  ;;  %v5421_v58 = vrot.slane %v3793_v20, 2 }
 0x186   : > { %v455_v42 = vadd.f32 %v451_v0, %v436_v11  ;;  %v1321_v47 = vsel %vm176_vm0, %v1319_v3, %v1320_v36  ;;  %v1260_v23 = vrot.slane %v1253_v18, 3  ;;  %v1273_v15 = vmul.f32 %v3628_v55, %v3277_v56 }
 0x187   : > { %v3996_v34 = vpop.permute.xlu1 %620  ;;  %v3998_v39 = vpop.permute.xlu0 %786  ;;  %v1239_v32 = vsel %vm411_vm5, %v5421_v58, %v1238_v12  ;;  %v552_v62 = vrot.slane %v3987_v13, 6  ;;  %v561_v48 = vmul.f32 %v3943_v5, %v3587_v50  ;;  %v4018_v11 = vmul.f32 %v3587_v50, %v3169_v33 }
 0x188   : > { %v1355_v20 = vmul.f32 %v3943_v5, %v3664_v57  ;;  %v534_v55 = vsel %vm515_vm7, %v532_v19, %v533_v60  ;;  %v5422_v2 = vrot.slane %v3808_v14, 3  ;;  %v484_v18 = vrot.slane %v477_v37, 4 }
 0x189   : > { %1324 = vrot.lane.b32.xlu0 %v1321_v47, %s2903_s10  ;;  %1242 = vrot.lane.b32.xlu1 %v1239_v32, %s2903_s10  ;;  %v493_v33 = vmul.f32 %v3558_v46, %v3277_v56  ;;  %v539_v51 = vadd.f32 %v534_v55, %v523_v38  ;;  %v1362_v47 = vrot.slane %v4003_v4, 5  ;;  %v4039_v58 = vmul.f32 %v3909_v45, %v3607_v9  ;;  %v4049_v38 = vld [vmem:[#allocation2 + $0x10] sm:$0x3f] }
 0x18a   : > { %v467_v12 = vsel %vm446_vm6, %v5422_v2, %v466_v7  ;;  %v5423_v14 = vrot.slane %v3775_v1, 5  ;;  %v5424_v46 = vrot.slane %v3827_v26, 3  ;;  %v1280_v37 = vrot.slane %v1273_v15, 3  ;;  %v4056_v2 = vld [vmem:[#allocation2] sm:$0xff] }
 0x18b   : > { %v471_v49 = vadd.f32 %v467_v12, %v455_v42  ;;  %v4032_v0 = vpop.permute.xlu1 %662  ;;  %v4034_v3 = vpop.permute.xlu0 %828  ;;  %v1295_v42 = vmul.f32 %v4049_v38, %v3595_v54  ;;  %v567_v32 = vrot.slane %v561_v48, 6  ;;  %v568_v55 = vrot.slane %v4018_v11, 6 }
 0x18c   : > { %v1343_v19 = vsel %vm515_vm7, %v5423_v14, %v1342_v8  ;;  %v1261_v7 = vsel %vm446_vm6, %v5424_v46, %v1260_v23  ;;  %v1361_v1 = vrot.slane %v1355_v20, 5  ;;  %v1377_v26 = vmul.f32 %v4056_v2, %v3607_v9 }
 0x18d   : > { %1346 = vrot.lane.b32.xlu0 %v1343_v19, %s2903_s10  ;;  %1264 = vrot.lane.b32.xlu1 %v1261_v7, %s2903_s10  ;;  %v5425_v23 = vrot.slane %v3706_v24, 6  ;;  %v5426_v54 = vrot.slane %v3838_v30, 4  ;;  %v500_v12 = vrot.slane %v493_v33, 4  ;;  %v511_v14 = vmul.f32 %v4049_v38, %v3514_v28  ;;  %v4083_v28 = vld [vmem:[#allocation3 + $0x8] sm:$0xff] }
 0x18e   : > { %v1363_v24 = vsel %vm515_vm7, %v1361_v1, %v1362_v47  ;;  %v1281_v30 = vsel %vm446_vm6, %v1278_v44, %v1280_v37  ;;  %v4087_v33 = vmul.f32 %v4083_v28, %v3676_v63  ;;  %v1383_v10 = vrot.slane %v1377_v26, 6 }
 0x18f   : > { %v553_v15 = vsel %vm550_vm8, %v5425_v23, %v552_v62  ;;  %v485_v48 = vsel %vm176_vm0, %v5426_v54, %v484_v18  ;;  %v4070_v46 = vpop.permute.xlu1 %704  ;;  %v4072_v7 = vpop.permute.xlu0 %898  ;;  %v1384_v23 = vrot.slane %v4039_v58, 6  ;;  %v1302_v18 = vrot.slane %v1295_v42, 4 }
 0x190   : > { %v558_v20 = vadd.f32 %v553_v15, %v539_v51  ;;  %v489_v19 = vadd.f32 %v485_v48, %v471_v49  ;;  %v1315_v51 = vmul.f32 %v3631_v25, %v3277_v56  ;;  %v569_v49 = vsel %vm550_vm8, %v567_v32, %v568_v55 }
 0x191   : > { %1366 = vrot.lane.b32.xlu0 %v1363_v24, %s2903_s10  ;;  %1284 = vrot.lane.b32.xlu1 %v1281_v30, %s2903_s10  ;;  %v5427_v44 = vrot.slane %v3871_v29, 4  ;;  %v519_v42 = vrot.slane %v511_v14, 5  ;;  %v528_v1 = vmul.f32 %v3577_v61, %v3277_v56  ;;  %v1397_v25 = vmul.f32 %v3943_v5, %v3676_v63 }
 0x192   : > { %v574_v15 = vadd.f32 %v569_v49, %v558_v20  ;;  %v1337_v26 = vmul.f32 %v4049_v38, %v3604_v6  ;;  %v1385_v29 = vsel %vm550_vm8, %v1383_v10, %v1384_v23  ;;  %v1404_v14 = vrot.slane %v4087_v33, 6  ;;  %v5429_v6 = vld [vmem:[#allocation20_spill] sm:$0xff] }
 0x193   : > { %v501_v37 = vsel %vm176_vm0, %v5427_v44, %v500_v12  ;;  %v4105_v54 = vpop.permute.xlu1 %746  ;;  %v4107_v48 = vpop.permute.xlu0 %940  ;;  %v5428_v12 = vrot.slane %v3891_v43, 4  ;;  %v1322_v20 = vrot.slane %v1315_v51, 4  ;;  %v5430_v30 = vrot.slane %v3913_v41, 5 }
 0x194   : > { %v505_v32 = vadd.f32 %v501_v37, %v489_v19  ;;  %v546_v19 = vmul.f32 %v4049_v38, %v3537_v40  ;;  %v589_v24 = vadd.f32 %v5429_v6, %v574_v15  ;;  %v1403_v49 = vrot.slane %v1397_v25, 6 }
 0x195   : > { %v1303_v61 = vsel %vm176_vm0, %v5428_v12, %v1302_v18  ;;  %1388 = vrot.lane.b32.xlu0 %v1385_v29, %s2903_s10  ;;  %v520_v43 = vsel %vm515_vm7, %v5430_v30, %v519_v42  ;;  %v535_v18 = vrot.slane %v528_v1, 5  ;;  %v1418_v40 = vstv %s4078_s11  ;;  %v5431_v29 = vld [vmem:[#allocation22_spill] sm:$0xff]  ;;  %s4617_s11 = sld [smem:[#allocation5 + $0x52]] }
 0x196   : > { %1306 = vrot.lane.b32.xlu1 %v1303_v61, %s2903_s10  ;;  %v524_v51 = vadd.f32 %v520_v43, %v505_v32  ;;  %v1344_v37 = vrot.slane %v1337_v26, 5  ;;  %v602_v12 = vadd.f32 %v5431_v29, %v589_v24  ;;  %v1405_v41 = vsel %vm550_vm8, %v1403_v49, %v1404_v14  ;;  %v4198_v29 = vld [vmem:[#allocation3 + $0x10] sm:$0x3f] }
 0x197   : > { %v4130_v10 = vpop.permute.xlu1 %788  ;;  %v4132_v44 = vpop.permute.xlu0 %982  ;;  %v1323_v42 = vsel %vm176_vm0, %v1320_v36, %v1322_v20  ;;  %v1357_v1 = vmul.f32 %v3664_v57, %v3277_v56  ;;  %v4147_v25 = vstv %s4096_s12  ;;  %v536_v15 = vsel %vm515_vm7, %v533_v60, %v535_v18  ;;  %s4644_s12 = sld [smem:[#allocation5 + $0x28]] }
 0x198   : > { %v554_v32 = vrot.slane %v546_v19, 6  ;;  %v563_v22 = vmul.f32 %v3587_v50, %v3277_v56  ;;  %v624_v36 = vadd.f32 %v3853_v16, %v602_v12  ;;  %v540_v57 = vadd.f32 %v536_v15, %v524_v51 }
 0x199   : > { %1408 = vrot.lane.b32.xlu0 %v1405_v41, %s2903_s10  ;;  %v1419_v20 = vmul.f32 %v4056_v2, %v1418_v40  ;;  %v4164_v59 = vmul.f32 %v3909_v45, %v4147_v25  ;;  %v1379_v60 = vmul.f32 %v4049_v38, %v3607_v9  ;;  %v1345_v50 = vsel %vm515_vm7, %v1342_v8, %v1344_v37 }
 0x19a   : > { %1326 = vrot.lane.b32.xlu1 %v1323_v42, %s2903_s10  ;;  %v1431_v16 = vstv %s4118_s16  ;;  %v1364_v19 = vrot.slane %v1357_v1, 5  ;;  %v1447_v6 = vmul.f32 %v4056_v2, %v4147_v25  ;;  %v555_v9 = vsel %vm550_vm8, %v552_v62, %v554_v32  ;;  %s4672_s16 = sld [smem:[#allocation5 + $0x59]] }
 0x19b   : > { %v4157_v26 = vpop.permute.xlu1 %830  ;;  %v639_v61 = vpop.permute.xlu0 %638  ;;  %v570_v24 = vrot.slane %v563_v22, 6  ;;  %v4180_v30 = vstv %s4128_s18  ;;  %v559_v8 = vadd.f32 %v555_v9, %v540_v57  ;;  %v1432_v18 = vmul.f32 %v3943_v5, %v1431_v16  ;;  %v5432_v57 = vld [vmem:[#allocation24_spill] sm:$0xff]  ;;  %s4714_s18 = sld [smem:[#allocation5 + $0x2f]] }
 0x19c   : > { %v644_v56 = vadd.f32 %v639_v61, %v624_v36  ;;  %v1454_v49 = vrot.slane %v4164_v59, 1  ;;  %v1386_v51 = vrot.slane %v1379_v60, 6  ;;  %v1365_v62 = vsel %vm515_vm7, %v1362_v47, %v1364_v19 }
 0x19d   : > { %1423 = vrot.lane.b32.xlu0 %v1419_v20, %s2904_s22  ;;  %v4196_v37 = vmul.f32 %v4083_v28, %v4180_v30  ;;  %v1399_v12 = vmul.f32 %v4198_v29, %v3676_v63  ;;  %v1453_v41 = vrot.slane %v1447_v6, 1  ;;  %v1467_v4 = vmul.f32 %v3943_v5, %v4180_v30 }
 0x19e   : > { %1348 = vrot.lane.b32.xlu1 %v1345_v50, %s2903_s10  ;;  %v666_v13 = vadd.f32 %v3886_v21, %v644_v56  ;;  %v571_v21 = vsel %vm550_vm8, %v568_v55, %v570_v24  ;;  %v4210_v47 = vstv %s4155_s24  ;;  %v1387_v55 = vsel %vm550_vm8, %v1384_v23, %v1386_v51  ;;  %s4741_s24 = sld [smem:[#allocation5 + $0x60]] }
 0x19f   : > { %v4184_v35 = vpop.permute.xlu1 %900  ;;  %v681_v43 = vpop.permute.xlu0 %680  ;;  %v575_v42 = vadd.f32 %v571_v21, %v559_v8  ;;  %v1455_v63 = vsel %vm376_vm4, %v1453_v41, %v1454_v49  ;;  %v4219_v32 = vmul.f32 %v3909_v45, %v4210_v47  ;;  %v1474_v22 = vrot.slane %v4196_v37, 1 }
 0x1a0   : > { %v686_v11 = vadd.f32 %v681_v43, %v666_v13  ;;  %v1406_v36 = vrot.slane %v1399_v12, 6  ;;  %v1473_v20 = vrot.slane %v1467_v4, 1  ;;  %v1489_v60 = vmul.f32 %v4056_v2, %v4210_v47 }
 0x1a1   : > { %1436 = vrot.lane.b32.xlu0 %v1432_v18, %s2904_s22  ;;  %v590_v61 = vadd.f32 %v5432_v57, %v575_v42  ;;  %v4233_v56 = vstv %s4182_s23  ;;  %v1496_v23 = vrot.slane %v4219_v32, 2  ;;  %v1420_v33 = vmul.f32 %v3909_v45, %v1418_v40  ;;  %s2659_s23 = sld [smem:[#allocation5 + $0xd]] }
 0x1a2   : > { %1368 = vrot.lane.b32.xlu1 %v1365_v62, %s2903_s10  ;;  %v4240_v19 = vmul.f32 %v4083_v28, %v4233_v56  ;;  %v708_v9 = vadd.f32 %v3924_v17, %v686_v11  ;;  %v1475_v24 = vsel %vm376_vm4, %v1473_v20, %v1474_v22  ;;  %v1407_v8 = vsel %vm550_vm8, %v1404_v14, %v1406_v36 }
 0x1a3   : > { %v4212_v1 = vpop.permute.xlu1 %942  ;;  %v723_v15 = vpop.permute.xlu0 %722  ;;  %v603_v6 = vadd.f32 %v3922_v52, %v590_v61  ;;  %v1509_v43 = vmul.f32 %v3943_v5, %v4233_v56  ;;  %v1495_v52 = vrot.slane %v1489_v60, 2  ;;  %v1449_v13 = vmul.f32 %v4049_v38, %v4147_v25 }
 0x1a4   : > { %v1516_v14 = vrot.slane %v4240_v19, 2  ;;  %v4266_v62 = vstv %s4221_s6  ;;  %v728_v12 = vadd.f32 %v723_v15, %v708_v9  ;;  %v4279_v4 = vstv %s2636_s20  ;;  %s4821_s6 = sld [smem:[#allocation5 + $0x37]] }
 0x1a5   : > { %1458 = vrot.lane.b32.xlu0 %v1455_v63, %s2904_s22  ;;  %v625_v18 = vadd.f32 %v3996_v34, %v603_v6  ;;  %v1497_v34 = vsel %vm411_vm5, %v1495_v52, %v1496_v23  ;;  %v4273_v21 = vmul.f32 %v3909_v45, %v4266_v62  ;;  %v1515_v40 = vrot.slane %v1509_v43, 2  ;;  %s4841_s20 = sld [smem:[#allocation5 + $0x3e]] }
 0x1a6   : > { %1390 = vrot.lane.b32.xlu1 %v1387_v55, %s2903_s10  ;;  %v1531_v25 = vmul.f32 %v4056_v2, %v4266_v62  ;;  %v1433_v11 = vmul.f32 %v4083_v28, %v1431_v16  ;;  %v1456_v55 = vrot.slane %v1449_v13, 1  ;;  %v1469_v36 = vmul.f32 %v4198_v29, %v4180_v30 }
 0x1a7   : > { %v4235_v50 = vpop.permute.xlu1 %984  ;;  %v765_v58 = vpop.permute.xlu0 %764  ;;  %v1517_v63 = vsel %vm411_vm5, %v1515_v40, %v1516_v14  ;;  %v750_v57 = vadd.f32 %v3962_v27, %v728_v12  ;;  %v1538_v20 = vrot.slane %v4273_v21, 3  ;;  %v4298_v60 = vmul.f32 %v4083_v28, %v4279_v4 }
 0x1a8   : > { %v1537_v6 = vrot.slane %v1531_v25, 3  ;;  %v1551_v16 = vmul.f32 %v3943_v5, %v4279_v4  ;;  %v4305_v9 = vstv %s4255_s26  ;;  %v1457_v30 = vsel %vm376_vm4, %v1454_v49, %v1456_v55  ;;  %s4864_s26 = sld [smem:[#allocation5 + $0x14]] }
 0x1a9   : > { %1478 = vrot.lane.b32.xlu0 %v1475_v24, %s2904_s22  ;;  %v1476_v24 = vrot.slane %v1469_v36, 1  ;;  %v4318_v43 = vmul.f32 %v3909_v45, %v4305_v9  ;;  %v1573_v49 = vmul.f32 %v4056_v2, %v4305_v9  ;;  %v4355_v36 = vstv %s4307_s28  ;;  %s4880_s28 = sld [smem:[#allocation5 + $0x45]] }
 0x1aa   : > { %1410 = vrot.lane.b32.xlu1 %v1407_v8, %s2903_s10  ;;  %v1491_v8 = vmul.f32 %v4049_v38, %v4210_v47  ;;  %v1557_v59 = vrot.slane %v1551_v16, 3  ;;  %v4329_v47 = vstv %s4281_s27  ;;  %s2651_s10 = sld [smem:[#allocation5 + $0x21]]  ;;  %s2906_s27 = smov 122  }
 0x1ab   : > { %v641_v17 = vpop.permute.xlu1 %640  ;;  %v4257_v51 = vpop.permute.xlu0 %806  ;;  %v4340_v40 = vmul.f32 %v4083_v28, %v4329_v47  ;;  %v1579_v55 = vrot.slane %v1573_v49, 4 }
 0x1ac   : > { %v645_v41 = vadd.f32 %v641_v17, %v625_v18  ;;  %v770_v18 = vadd.f32 %v765_v58, %v750_v57  ;;  %v1539_v17 = vsel %vm446_vm6, %v1537_v6, %v1538_v20  ;;  %v1498_v12 = vrot.slane %v1491_v8, 2 }
 0x1ad   : > { %1500 = vrot.lane.b32.xlu0 %v1497_v34, %s2904_s22  ;;  %v1511_v34 = vmul.f32 %v4198_v29, %v4233_v56  ;;  %v1593_v56 = vmul.f32 %v3943_v5, %v4329_v47  ;;  %v1600_v57 = vrot.slane %v4340_v40, 4  ;;  %v4495_v40 = vstv %s2645_s4  ;;  %s4992_s4 = sld [smem:[#allocation5 + $0x29]] }
 0x1ae   : > { %1425 = vrot.lane.b32.xlu1 %v1420_v33, %s2904_s22  ;;  %v667_v61 = vadd.f32 %v4032_v0, %v645_v41  ;;  %v1558_v33 = vrot.slane %v4298_v60, 3  ;;  %v1580_v41 = vrot.slane %v4318_v43, 4  ;;  %v792_v25 = vadd.f32 %v3998_v39, %v770_v18 }
 0x1af   : > { %v683_v42 = vpop.permute.xlu1 %682  ;;  %v4283_v15 = vpop.permute.xlu0 %848  ;;  %v1499_v37 = vsel %vm411_vm5, %v1496_v23, %v1498_v12  ;;  %v1599_v32 = vrot.slane %v1593_v56, 4  ;;  %v1615_v23 = vmul.f32 %v4056_v2, %v4355_v36 }
 0x1b0   : > { %v687_v52 = vadd.f32 %v683_v42, %v667_v61  ;;  %v1533_v61 = vmul.f32 %v4049_v38, %v4266_v62  ;;  %v812_v6 = vadd.f32 %v4257_v51, %v792_v25  ;;  %v4382_v62 = vstv %s4331_s15  ;;  %s4912_s15 = sld [smem:[#allocation5 + $0x1b]] }
 0x1b1   : > { %1520 = vrot.lane.b32.xlu0 %v1517_v63, %s2904_s22  ;;  %v1477_v63 = vsel %vm376_vm4, %v1474_v22, %v1476_v24  ;;  %v1518_v22 = vrot.slane %v1511_v34, 2  ;;  %v4375_v24 = vmul.f32 %v3909_v45, %v4355_v36  ;;  %v1601_v18 = vsel %vm176_vm0, %v1599_v32, %v1600_v57  ;;  %v5433_v32 = vld [vmem:[#allocation21_spill] sm:$0xff] }
 0x1b2   : > { %1438 = vrot.lane.b32.xlu1 %v1433_v11, %s2904_s22  ;;  %v709_v42 = vadd.f32 %v4070_v46, %v687_v52  ;;  %v1559_v11 = vsel %vm446_vm6, %v1557_v59, %v1558_v33  ;;  %v1540_v52 = vrot.slane %v1533_v61, 3  ;;  %v834_v59 = vadd.f32 %v4034_v3, %v812_v6 }
 0x1b3   : > { %v725_v27 = vpop.permute.xlu1 %724  ;;  %v4309_v0 = vpop.permute.xlu0 %918  ;;  %v1519_v8 = vsel %vm411_vm5, %v1516_v14, %v1518_v22  ;;  %v1622_v12 = vrot.slane %v4375_v24, 5  ;;  %v4401_v34 = vmul.f32 %v4083_v28, %v4382_v62  ;;  %v1621_v19 = vrot.slane %v1615_v23, 5 }
 0x1b4   : > { %v729_v16 = vadd.f32 %v725_v27, %v709_v42  ;;  %v1635_v14 = vmul.f32 %v3943_v5, %v4382_v62  ;;  %v4408_v25 = vstv %s4357_s17  ;;  %v854_v56 = vadd.f32 %v4283_v15, %v834_v59  ;;  %s4935_s17 = sld [smem:[#allocation5 + $0x4c]] }
 0x1b5   : > { %1542 = vrot.lane.b32.xlu0 %v1539_v17, %s2904_s22  ;;  %v1553_v17 = vmul.f32 %v4198_v29, %v4279_v4  ;;  %v1642_v22 = vrot.slane %v4401_v34, 5 }
 0x1b6   : > { %1460 = vrot.lane.b32.xlu1 %v1457_v30, %s2904_s22  ;;  %v1581_v30 = vsel %vm176_vm0, %v1579_v55, %v1580_v41  ;;  %v751_v49 = vadd.f32 %v4105_v54, %v729_v16  ;;  %v1541_v54 = vsel %vm446_vm6, %v1538_v20, %v1540_v52  ;;  %v1641_v21 = vrot.slane %v1635_v14, 5 }
 0x1b7   : > { %v767_v58 = vpop.permute.xlu1 %766  ;;  %v4333_v13 = vpop.permute.xlu0 %960  ;;  %v1560_v42 = vrot.slane %v1553_v17, 3  ;;  %v1657_v20 = vmul.f32 %v4056_v2, %v4408_v25  ;;  %v869_v23 = vadd.f32 %v5433_v32, %v854_v56  ;;  %v1698_v56 = vstv %s4444_s21  ;;  %s4978_s21 = sld [smem:[#allocation5 + $0x53]] }
 0x1b8   : > { %v771_v55 = vadd.f32 %v767_v58, %v751_v49  ;;  %v1617_v49 = vmul.f32 %v4049_v38, %v4355_v36 }
 0x1b9   : > { %1562 = vrot.lane.b32.xlu0 %v1559_v11, %s2904_s22  ;;  %v4421_v11 = vmul.f32 %v3909_v45, %v4408_v25  ;;  %v1561_v58 = vsel %vm446_vm6, %v1558_v33, %v1560_v42  ;;  %v1663_v33 = vrot.slane %v1657_v20, 6 }
 0x1ba   : > { %1480 = vrot.lane.b32.xlu1 %v1477_v63, %s2904_s22  ;;  %v1575_v63 = vmul.f32 %v4049_v38, %v4305_v9  ;;  %v4432_v9 = vstv %s2642_s5  ;;  %s4945_s5 = sld [smem:[#allocation5 + $0x22]] }
 0x1bb   : > { %v4359_v39 = vpop.permute.xlu1 %808  ;;  %v4361_v46 = vpop.permute.xlu0 %1002  ;;  %v1664_v16 = vrot.slane %v4421_v11, 6  ;;  %v4453_v60 = vmul.f32 %v4083_v28, %v4432_v9 }
 0x1bc   : > { %v1582_v6 = vrot.slane %v1575_v63, 4 }
 0x1bd   : > { %1584 = vrot.lane.b32.xlu0 %v1581_v30, %s2904_s22  ;;  %v1595_v30 = vmul.f32 %v4198_v29, %v4329_v47  ;;  %v1677_v47 = vmul.f32 %v3943_v5, %v4432_v9  ;;  %v1665_v42 = vsel %vm550_vm8, %v1663_v33, %v1664_v16  ;;  %v1684_v63 = vrot.slane %v4453_v60, 6 }
 0x1be   : > { %1502 = vrot.lane.b32.xlu1 %v1499_v37, %s2904_s22  ;;  %v1623_v37 = vsel %vm515_vm7, %v1621_v19, %v1622_v12  ;;  %v1583_v17 = vsel %vm176_vm0, %v1580_v41, %v1582_v6  ;;  %v5434_v19 = vld [vmem:[#allocation23_spill] sm:$0xff]  ;;  %v4522_v33 = vstv %s2646_s7  ;;  %s5043_s7 = sld [smem:[#allocation5 + $0x30]] }
 0x1bf   : > { %v4384_v51 = vpop.permute.xlu1 %850  ;;  %v4386_v27 = vpop.permute.xlu0 %1024  ;;  %v1602_v59 = vrot.slane %v1595_v30, 4  ;;  %v882_v14 = vadd.f32 %v5434_v19, %v869_v23  ;;  %v1683_v43 = vrot.slane %v1677_v47, 6  ;;  %v1659_v30 = vmul.f32 %v4049_v38, %v4408_v25 }
 0x1c0   : > { %v1727_v25 = vmul.f32 %v4056_v2, %v4495_v40  ;;  %v1679_v47 = vmul.f32 %v4198_v29, %v4432_v9  ;;  %v1747_v9 = vmul.f32 %v3943_v5, %v4522_v33 }
 0x1c1   : > { %1604 = vrot.lane.b32.xlu0 %v1601_v18, %s2904_s22  ;;  %v1643_v18 = vsel %vm515_vm7, %v1641_v21, %v1642_v22  ;;  %v1685_v20 = vsel %vm550_vm8, %v1683_v43, %v1684_v63  ;;  %v1768_v43 = vstv %s4507_s8  ;;  %s2670_s8 = sld [smem:[#allocation5 + $0x61]] }
 0x1c2   : > { %1522 = vrot.lane.b32.xlu1 %v1519_v8, %s2904_s22  ;;  %v793_v8 = vadd.f32 %v4130_v10, %v771_v55  ;;  %v1637_v55 = vmul.f32 %v4198_v29, %v4382_v62  ;;  %v1711_v62 = vstv %s4468_s30  ;;  %v1686_v34 = vrot.slane %v1679_v47, 6  ;;  %s5020_s30 = sld [smem:[#allocation5 + $0x5a]] }
 0x1c3   : > { %v4410_v4 = vpop.permute.xlu1 %920  ;;  %v4412_v3 = vpop.permute.xlu0 %1044  ;;  %v1712_v24 = vmul.f32 %v3943_v5, %v1711_v62  ;;  %v1753_v11 = vrot.slane %v1747_v9, 1  ;;  %v4615_v9 = vstv %s2650_s1  ;;  %s2911_s1 = smov 48  }
 0x1c5   : > { %1626 = vrot.lane.b32.xlu0 %v1623_v37, %s2904_s22  ;;  %v904_v37 = vadd.f32 %v4072_v7, %v882_v14  ;;  %v1699_v7 = vmul.f32 %v4056_v2, %v1698_v56 }
 0x1c6   : > { %1544 = vrot.lane.b32.xlu1 %v1541_v54, %s2904_s22  ;;  %v813_v54 = vadd.f32 %v4359_v39, %v793_v8  ;;  %v1603_v39 = vsel %vm176_vm0, %v1600_v57, %v1602_v59 }
 0x1c7   : > { %v4434_v61 = vpop.permute.xlu1 %962  ;;  %v4436_v15 = vpop.permute.xlu0 %1066  ;;  %v924_v32 = vadd.f32 %v4309_v0, %v904_v37 }
 0x1c8   : > { %v835_v21 = vadd.f32 %v4157_v26, %v813_v54  ;;  %v1644_v26 = vrot.slane %v1637_v55, 5  ;;  %v1733_v54 = vrot.slane %v1727_v25, 1  ;;  %v1700_v25 = vmul.f32 %v3909_v45, %v1698_v56 }
 0x1c9   : > { %1646 = vrot.lane.b32.xlu0 %v1643_v18, %s2904_s22  ;;  %v4516_v18 = vmul.f32 %v3909_v45, %v4495_v40  ;;  %v946_v59 = vadd.f32 %v4107_v48, %v924_v32 }
 0x1ca   : > { %1564 = vrot.lane.b32.xlu1 %v1561_v58, %s2904_s22  ;;  %v1624_v58 = vrot.slane %v1617_v49, 5  ;;  %v855_v23 = vadd.f32 %v4384_v51, %v835_v21  ;;  %v1645_v19 = vsel %vm515_vm7, %v1642_v22, %v1644_v26  ;;  %v4562_v21 = vmul.f32 %v3909_v45, %v1768_v43 }
 0x1cb   : > { %v4459_v52 = vpop.permute.xlu1 %1004  ;;  %v4461_v10 = vpop.permute.xlu0 %1086  ;;  %v1734_v14 = vrot.slane %v4516_v18, 1 }
 0x1cc   : > { %v1625_v8 = vsel %vm515_vm7, %v1622_v12, %v1624_v58  ;;  %v1666_v12 = vrot.slane %v1659_v30, 6  ;;  %v870_v49 = vadd.f32 %v3884_v53, %v855_v23  ;;  %v1776_v32 = vrot.slane %v4562_v21, 2 }
 0x1cd   : > { %1668 = vrot.lane.b32.xlu0 %v1665_v42, %s2904_s22  ;;  %v1735_v37 = vsel %vm376_vm4, %v1733_v54, %v1734_v14  ;;  %v1713_v54 = vmul.f32 %v4083_v28, %v1711_v62  ;;  %v1831_v62 = vmul.f32 %v3943_v5, %v4615_v9 }
 0x1ce   : > { %1586 = vrot.lane.b32.xlu1 %v1583_v17, %s2904_s22  ;;  %v4535_v17 = vmul.f32 %v4083_v28, %v4522_v33  ;;  %v1667_v53 = vsel %vm550_vm8, %v1664_v16, %v1666_v12  ;;  %v883_v55 = vadd.f32 %v3960_v31, %v870_v49  ;;  %v1769_v16 = vmul.f32 %v4056_v2, %v1768_v43 }
 0x1cf   : > { %v4478_v41 = vpop.permute.xlu1 %1026  ;;  %v4480_v36 = vpop.permute.xlu0 %1108  ;;  %v1687_v31 = vsel %vm550_vm8, %v1684_v63, %v1686_v34  ;;  %v1749_v34 = vmul.f32 %v4198_v29, %v4522_v33  ;;  %v1837_v18 = vrot.slane %v1831_v62, 3 }
 0x1d0   : > { %v1754_v22 = vrot.slane %v4535_v17, 1  ;;  %v905_v30 = vadd.f32 %v4184_v35, %v883_v55  ;;  %v1775_v60 = vrot.slane %v1769_v16, 2 }
 0x1d1   : > { %1688 = vrot.lane.b32.xlu0 %v1685_v20, %s2904_s22 }
 0x1d2   : > { %1606 = vrot.lane.b32.xlu1 %v1603_v39, %s2904_s22  ;;  %v966_v39 = vadd.f32 %v4333_v13, %v946_v59  ;;  %v1755_v58 = vsel %vm376_vm4, %v1753_v11, %v1754_v22  ;;  %v925_v59 = vadd.f32 %v4410_v4, %v905_v30  ;;  %v1777_v49 = vsel %vm411_vm5, %v1775_v60, %v1776_v32 }
 0x1d3   : > { %v4497_v57 = vpop.permute.xlu1 %1046  ;;  %v4499_v6 = vpop.permute.xlu0 %1128  ;;  %v1771_v60 = vmul.f32 %v4049_v38, %v1768_v43  ;;  %v4670_v43 = vstv %s4617_s11  ;;  %s2913_s11 = smov 96  }
 0x1d4   : > { %v988_v26 = vadd.f32 %v4132_v44, %v966_v39  ;;  %v4630_v39 = vmul.f32 %v4083_v28, %v4615_v9 }
 0x1d5   : > { %1703 = vrot.lane.b32.xlu0 %v1699_v7, %s2905_s14  ;;  %v4577_v7 = vstv %s2648_s19  ;;  %s2909_s19 = smov 32  }
 0x1d6   : > { %1628 = vrot.lane.b32.xlu1 %v1625_v8, %s2904_s22  ;;  %v4584_v23 = vmul.f32 %v4083_v28, %v4577_v7  ;;  %v1789_v63 = vmul.f32 %v3943_v5, %v4577_v7  ;;  %v4590_v8 = vstv %s2649_s0  ;;  %v1008_v47 = vadd.f32 %v4361_v46, %v988_v26  ;;  %s2910_s0 = smov 64  }
 0x1d7   : > { %v4524_v0 = vpop.permute.xlu1 %1068  ;;  %v4526_v51 = vpop.permute.xlu0 %1143  ;;  %v4603_v12 = vmul.f32 %v3909_v45, %v4590_v8  ;;  %v1756_v26 = vrot.slane %v1749_v34, 1  ;;  %v1838_v30 = vrot.slane %v4630_v39, 3 }
 0x1d8   : > { %v1795_v56 = vrot.slane %v1789_v63, 2  ;;  %v1030_v55 = vadd.f32 %v4386_v27, %v1008_v47 }
 0x1d9   : > { %1716 = vrot.lane.b32.xlu0 %v1712_v24, %s2905_s14  ;;  %v1729_v24 = vmul.f32 %v4049_v38, %v4495_v40  ;;  %v1811_v40 = vmul.f32 %v4056_v2, %v4590_v8  ;;  %v1818_v16 = vrot.slane %v4603_v12, 3 }
 0x1da   : > { %1648 = vrot.lane.b32.xlu1 %v1645_v19, %s2904_s22  ;;  %v1796_v19 = vrot.slane %v4584_v23, 2  ;;  %v1050_v63 = vadd.f32 %v4412_v3, %v1030_v55  ;;  %v4691_v55 = vmul.f32 %v4083_v28, %v4670_v43 }
 0x1db   : > { %v4547_v42 = vpop.permute.xlu1 %1088  ;;  %v4549_v48 = vpop.permute.xlu0 %1156  ;;  %v1817_v33 = vrot.slane %v1811_v40, 3  ;;  %v1791_v40 = vmul.f32 %v4198_v29, %v4577_v7  ;;  %v1873_v7 = vmul.f32 %v3943_v5, %v4670_v43 }
 0x1dc   : > { %v1797_v11 = vsel %vm411_vm5, %v1795_v56, %v1796_v19  ;;  %v1778_v56 = vrot.slane %v1771_v60, 2 }
 0x1dd   : > { %1738 = vrot.lane.b32.xlu0 %v1735_v37, %s2905_s14  ;;  %v947_v37 = vadd.f32 %v4212_v1, %v925_v59  ;;  %v1798_v62 = vrot.slane %v1791_v40, 2  ;;  %v1879_v60 = vrot.slane %v1873_v7, 4  ;;  %v4772_v7 = vld [vmem:[#allocation2 + $0x8] sm:$0xff] }
 0x1de   : > { %1670 = vrot.lane.b32.xlu1 %v1667_v53, %s2904_s22  ;;  %v1736_v53 = vrot.slane %v1729_v24, 1  ;;  %v1819_v24 = vsel %vm446_vm6, %v1817_v33, %v1818_v16  ;;  %v1813_v33 = vmul.f32 %v4049_v38, %v4590_v8 }
 0x1df   : > { %v4567_v20 = vpop.permute.xlu1 %1110  ;;  %v4569_v13 = vpop.permute.xlu0 %1178 }
 0x1e1   : > { %1758 = vrot.lane.b32.xlu0 %v1755_v58, %s2905_s14  ;;  %v1737_v58 = vsel %vm376_vm4, %v1734_v14, %v1736_v53  ;;  %v1072_v14 = vadd.f32 %v4436_v15, %v1050_v63  ;;  %v1839_v15 = vsel %vm446_vm6, %v1837_v18, %v1838_v30 }
 0x1e2   : > { %1690 = vrot.lane.b32.xlu1 %v1687_v31, %s2904_s22  ;;  %v4642_v31 = vstv %s2651_s10  ;;  %s4797_s22 = sld [smem:[#allocation5 + $0x6]]  ;;  %s2912_s10 = smov 80  }
 0x1e3   : > { %v4592_v44 = vpop.permute.xlu1 %1130  ;;  %v4594_v35 = vpop.permute.xlu0 %1198  ;;  %v4662_v47 = vmul.f32 %v3909_v45, %v4642_v31  ;;  %v1853_v3 = vmul.f32 %v4056_v2, %v4642_v31  ;;  %v1092_v53 = vadd.f32 %v4461_v10, %v1072_v14 }
 0x1e5   : > { %1780 = vrot.lane.b32.xlu0 %v1777_v49, %s2905_s14  ;;  %v1757_v49 = vsel %vm376_vm4, %v1754_v22, %v1756_v26  ;;  %v1860_v34 = vrot.slane %v4662_v47, 4  ;;  %v1114_v17 = vadd.f32 %v4480_v36, %v1092_v53  ;;  %v1859_v22 = vrot.slane %v1853_v3, 4 }
 0x1e6   : > { %1705 = vrot.lane.b32.xlu1 %v1700_v25, %s2905_s14  ;;  %v967_v25 = vadd.f32 %v4434_v61, %v947_v37  ;;  %v4699_v37 = vstv %s4644_s12  ;;  %v1799_v3 = vsel %vm411_vm5, %v1796_v19, %v1798_v62  ;;  %v1855_v53 = vmul.f32 %v4049_v38, %v4642_v31  ;;  %s2914_s12 = smov 112  }
 0x1e7   : > { %v4619_v46 = vpop.permute.xlu1 %1145  ;;  %v4621_v4 = vpop.permute.xlu0 %1220  ;;  %v4712_v36 = vmul.f32 %v3909_v45, %v4699_v37  ;;  %v1134_v26 = vadd.f32 %v4499_v6, %v1114_v17  ;;  %v1861_v21 = vsel %vm176_vm0, %v1859_v22, %v1860_v34  ;;  %v1895_v45 = vmul.f32 %v4056_v2, %v4699_v37 }
 0x1e8   : > { %v4730_v6 = vstv %s4672_s16  ;;  %v4765_v17 = vstv %s4714_s18  ;;  %s2679_s16 = sshll.u32 %s2952_s13, 7  ;;  %s5469_s18 = sshll.u32 %s3034_s29, 3 }
 0x1e9   : > { %1800 = vrot.lane.b32.xlu0 %v1797_v11, %s2905_s14  ;;  %v1779_v11 = vsel %vm411_vm5, %v1776_v32, %v1778_v56  ;;  %v1880_v32 = vrot.slane %v4691_v55, 4  ;;  %v1149_v8 = vadd.f32 %v4526_v51, %v1134_v26  ;;  %v1902_v18 = vrot.slane %v4712_v36, 5 }
 0x1ea   : > { %1718 = vrot.lane.b32.xlu1 %v1713_v54, %s2905_s14  ;;  %v989_v54 = vadd.f32 %v4235_v50, %v967_v25  ;;  %v4739_v14 = vmul.f32 %v4083_v28, %v4730_v6  ;;  %v4776_v12 = vmul.f32 %v4772_v7, %v4765_v17  ;;  %v1862_v26 = vrot.slane %v1855_v53, 4 }
 0x1eb   : > { %v4646_v1 = vpop.permute.xlu1 %1158  ;;  %v4648_v27 = vpop.permute.xlu0 %1240 }
 0x1ed   : > { %1822 = vrot.lane.b32.xlu0 %v1819_v24, %s2905_s14  ;;  %v1820_v24 = vrot.slane %v1813_v33, 3 }
 0x1ee   : > { %1740 = vrot.lane.b32.xlu1 %v1737_v58, %s2905_s14  ;;  %v1009_v58 = vadd.f32 %v4459_v52, %v989_v54  ;;  %v1833_v52 = vmul.f32 %v4198_v29, %v4615_v9  ;;  %v1162_v9 = vadd.f32 %v4549_v48, %v1149_v8  ;;  %v1922_v54 = vrot.slane %v4739_v14, 5 }
 0x1ef   : > { %v4674_v61 = vpop.permute.xlu1 %1180  ;;  %v4676_v59 = vpop.permute.xlu0 %1262  ;;  %v1821_v19 = vsel %vm446_vm6, %v1818_v16, %v1820_v24 }
 0x1f0   : > { %v1031_v51 = vadd.f32 %v4478_v41, %v1009_v58  ;;  %v1184_v56 = vadd.f32 %v4569_v13, %v1162_v9  ;;  %v1901_v41 = vrot.slane %v1895_v45, 5  ;;  %v1840_v40 = vrot.slane %v1833_v52, 3  ;;  %v4810_v52 = vld [vmem:[#allocation3] sm:$0xff] }
 0x1f1   : > { %1842 = vrot.lane.b32.xlu0 %v1839_v15, %s2905_s14  ;;  %v1915_v15 = vmul.f32 %v3943_v5, %v4730_v6 }
 0x1f2   : > { %1760 = vrot.lane.b32.xlu1 %v1757_v49, %s2905_s14  ;;  %v1881_v49 = vsel %vm176_vm0, %v1879_v60, %v1880_v32  ;;  %v1051_v5 = vadd.f32 %v4497_v57, %v1031_v51  ;;  %v1204_v13 = vadd.f32 %v4594_v35, %v1184_v56  ;;  %v1903_v22 = vsel %vm515_vm7, %v1901_v41, %v1902_v18 }
 0x1f3   : > { %v4701_v50 = vpop.permute.xlu1 %1200  ;;  %v4703_v10 = vpop.permute.xlu0 %1282  ;;  %v1921_v16 = vrot.slane %v1915_v15, 5  ;;  %v1841_v31 = vsel %vm446_vm6, %v1838_v30, %v1840_v40  ;;  %v1944_v30 = vrot.slane %v4776_v12, 6  ;;  %v1978_v15 = vstv %s4797_s22 }
 0x1f4   : > { %v1073_v57 = vadd.f32 %v4524_v0, %v1051_v5  ;;  %v1226_v35 = vadd.f32 %v4621_v4, %v1204_v13  ;;  %v1875_v0 = vmul.f32 %v4198_v29, %v4670_v43  ;;  %v1917_v56 = vmul.f32 %v4198_v29, %v4730_v6  ;;  %v4856_v5 = vld [vmem:[#allocation2 + $0x10] sm:$0x3f] }
 0x1f5   : > { %1864 = vrot.lane.b32.xlu0 %v1861_v21, %s2905_s14  ;;  %v1923_v58 = vsel %vm515_vm7, %v1921_v16, %v1922_v54  ;;  %v4795_v21 = vstv %s4741_s24  ;;  %v1939_v13 = vmul.f32 %v4856_v5, %v4765_v17  ;;  %s171_s24 = scalar_lea.vmem [#allocation10], %s5469_s18 }
 0x1f6   : > { %1782 = vrot.lane.b32.xlu1 %v1779_v11, %s2905_s14  ;;  %v1937_v11 = vmul.f32 %v4056_v2, %v4765_v17  ;;  %v1093_v4 = vadd.f32 %v4547_v42, %v1073_v57  ;;  %v1246_v39 = vadd.f32 %v4648_v27, %v1226_v35  ;;  %v4804_v45 = vmul.f32 %v4083_v28, %v4795_v21  ;;  %v4872_v17 = vld [vmem:[#allocation2] sm:$0xff]  ;;  %s2481_s22 = sshll.u32 %s171_s24, 4  ;;  %s2482_s22 = int_to_ptr.vmem [resolvable:$true] %s2481_s22 }
 0x1f7   : > { %v4732_v63 = vpop.permute.xlu1 %1222  ;;  %v4734_v25 = vpop.permute.xlu0 %1304  ;;  %v1957_v42 = vmul.f32 %v4810_v52, %v4795_v21  ;;  %v1863_v28 = vsel %vm176_vm0, %v1860_v34, %v1862_v26  ;;  %v1882_v51 = vrot.slane %v1875_v0, 4  ;;  %v1924_v57 = vrot.slane %v1917_v56, 5 }
 0x1f8   : > { %v1115_v43 = vadd.f32 %v4567_v20, %v1093_v4  ;;  %v1268_v8 = vadd.f32 %v4676_v59, %v1246_v39  ;;  %v1943_v60 = vrot.slane %v1937_v11, 6  ;;  %v1897_v20 = vmul.f32 %v4049_v38, %v4699_v37 }
 0x1f9   : > { %1884 = vrot.lane.b32.xlu0 %v1881_v49, %s2905_s14  ;;  %v1964_v49 = vrot.slane %v4804_v45, 6  ;;  %v1963_v34 = vrot.slane %v1957_v42, 6  ;;  %v1959_v26 = vmul.f32 %v4198_v29, %v4795_v21  ;;  %v4886_v0 = vstv %s4841_s20  ;;  %s2479_s20 = scalar_lea.hbm %s5338_s2, %s2679_s16 }
 0x1fa   : > { %1802 = vrot.lane.b32.xlu1 %v1799_v3, %s2905_s14  ;;  %v1135_v59 = vadd.f32 %v4592_v44, %v1115_v43  ;;  %v1288_v9 = vadd.f32 %v4703_v10, %v1268_v8  ;;  %v1945_v3 = vsel %vm550_vm8, %v1943_v60, %v1944_v30  ;;  %v1883_v10 = vsel %vm176_vm0, %v1880_v32, %v1882_v51  ;;  %v4892_v43 = vld [vmem:[#allocation3 + $0x8] sm:$0xff] }
 0x1fb   : > { %v4756_v48 = vpop.permute.xlu1 %1242  ;;  %v1325_v23 = vpop.permute.xlu0 %1324  ;;  %v1904_v40 = vrot.slane %v1897_v20, 5  ;;  %v1925_v39 = vsel %vm515_vm7, %v1922_v54, %v1924_v57  ;;  %v4896_v8 = vmul.f32 %v4892_v43, %v4886_v0  ;;  %v2027_v42 = vmul.f32 %v4810_v52, %v4886_v0 }
 0x1fc   : > { %v1150_v47 = vadd.f32 %v4619_v46, %v1135_v59  ;;  %v1310_v38 = vadd.f32 %v4734_v25, %v1288_v9  ;;  %v1965_v25 = vsel %vm550_vm8, %v1963_v34, %v1964_v49  ;;  %v1966_v51 = vrot.slane %v1959_v26, 6 }
 0x1fd   : > { %1906 = vrot.lane.b32.xlu0 %v1903_v22, %s2905_s14  ;;  %v4910_v20 = vstv %s4864_s26  ;;  %v2034_v9 = vrot.slane %v4896_v8, 1  ;;  %s2467_s26 = scalar_lea.sflag [#allocation7], %s3034_s29 }
 0x1fe   : > { %1824 = vrot.lane.b32.xlu1 %v1821_v19, %s2905_s14  ;;  %v1163_v46 = vadd.f32 %v4646_v1, %v1150_v47  ;;  %v1330_v41 = vadd.f32 %v1325_v23, %v1310_v38  ;;  %v4850_v19 = vstv %s2659_s23  ;;  %v1979_v1 = vmul.f32 %v4056_v2, %v1978_v15 }
 0x1ff   : > { %v4787_v62 = vpop.permute.xlu1 %1264  ;;  %v1347_v33 = vpop.permute.xlu0 %1346  ;;  %v1991_v23 = vstv %s4821_s6  ;;  %v4862_v22 = vmul.f32 %v4772_v7, %v4850_v19  ;;  %v1905_v2 = vsel %vm515_vm7, %v1902_v18, %v1904_v40  ;;  %v2007_v35 = vmul.f32 %v4872_v17, %v4850_v19 }
 0x200   : > { %v1185_v55 = vadd.f32 %v4674_v61, %v1163_v46  ;;  %v1352_v32 = vadd.f32 %v1347_v33, %v1330_v41  ;;  %v1992_v36 = vmul.f32 %v4810_v52, %v1991_v23  ;;  %v1946_v33 = vrot.slane %v1939_v13, 6 }
 0x201   : > { %1926 = vrot.lane.b32.xlu0 %v1923_v58, %s2905_s14  ;;  %v2014_v58 = vrot.slane %v4862_v22, 1  ;;  %v2013_v21 = vrot.slane %v2007_v35, 1  ;;  %v2049_v47 = vmul.f32 %v4872_v17, %v4910_v20  ;;  %v4926_v38 = vstv %s4880_s28  ;;  %s2915_s28 = smov [#allocation10]  }
 0x202   : > { %1844 = vrot.lane.b32.xlu1 %v1841_v31, %s2905_s14  ;;  %v1205_v61 = vadd.f32 %v4701_v50, %v1185_v55  ;;  %v2069_v45 = vmul.f32 %v4810_v52, %v4926_v38 }
 0x203   : > { %v4814_v27 = vpop.permute.xlu1 %1284  ;;  %v1367_v24 = vpop.permute.xlu0 %1366 }
 0x204   : > { %v1372_v16 = vadd.f32 %v1367_v24, %v1352_v32  ;;  %v1227_v31 = vadd.f32 %v4732_v63, %v1205_v61  ;;  %v1947_v24 = vsel %vm550_vm8, %v1944_v30, %v1946_v33  ;;  %v2033_v30 = vrot.slane %v2027_v42, 1 }
 0x205   : > { %1948 = vrot.lane.b32.xlu0 %v1945_v3, %s2905_s14  ;;  %v4918_v3 = vmul.f32 %v4772_v7, %v4910_v20  ;;  %v1980_v32 = vmul.f32 %v4772_v7, %v1978_v15  ;;  %v2075_v15 = vrot.slane %v2069_v45, 2  ;;  %v4976_v33 = vstv %s4935_s17 }
 0x206   : > { %1866 = vrot.lane.b32.xlu1 %v1863_v28, %s2905_s14  ;;  %v1247_v4 = vadd.f32 %v4756_v48, %v1227_v31  ;;  %v2015_v28 = vsel %vm376_vm4, %v2013_v21, %v2014_v58  ;;  %v2035_v46 = vsel %vm376_vm4, %v2033_v30, %v2034_v9 }
 0x207   : > { %v1389_v44 = vpop.permute.xlu0 %1388  ;;  %v2056_v41 = vrot.slane %v4918_v3, 2 }
 0x208   : > { %v4833_v37 = vpop.permute.xlu1 %1306  ;;  %v1394_v50 = vadd.f32 %v1389_v44, %v1372_v16  ;;  %v1269_v60 = vadd.f32 %v4787_v62, %v1247_v4  ;;  %v1967_v44 = vsel %vm550_vm8, %v1964_v49, %v1966_v51 }
 0x209   : > { %1968 = vrot.lane.b32.xlu0 %v1965_v25, %s2905_s14  ;;  %v2055_v25 = vrot.slane %v2049_v47, 2 }
 0x20a   : > { %1886 = vrot.lane.b32.xlu1 %v1883_v10, %s2905_s14  ;;  %v1289_v62 = vadd.f32 %v4814_v27, %v1269_v60  ;;  %v4933_v10 = vmul.f32 %v4892_v43, %v4926_v38 }
 0x20b   : > { %v1409_v53 = vpop.permute.xlu0 %1408  ;;  %v2057_v16 = vsel %vm411_vm5, %v2055_v25, %v2056_v41  ;;  %v5032_v25 = vstv %s4992_s4 }
 0x20c   : > { %v1327_v6 = vpop.permute.xlu1 %1326  ;;  %v1414_v63 = vadd.f32 %v1409_v53, %v1394_v50  ;;  %v1311_v12 = vadd.f32 %v4833_v37, %v1289_v62  ;;  %v2009_v53 = vmul.f32 %v4856_v5, %v4850_v19  ;;  %v1993_v19 = vmul.f32 %v4892_v43, %v1991_v23 }
 0x20d   : > { %1983 = vrot.lane.b32.xlu0 %v1979_v1, %s2906_s27  ;;  %v4954_v1 = vstv %s4912_s15 }
 0x20e   : > { %1908 = vrot.lane.b32.xlu1 %v1905_v2, %s2905_s14  ;;  %v1331_v37 = vadd.f32 %v1327_v6, %v1311_v12  ;;  %v2076_v6 = vrot.slane %v4933_v10, 2  ;;  %v4961_v2 = vmul.f32 %v4772_v7, %v4954_v1  ;;  %v2091_v35 = vmul.f32 %v4872_v17, %v4954_v1 }
 0x20f   : > { %v1424_v11 = vpop.permute.xlu0 %1423 }
 0x210   : > { %v1349_v18 = vpop.permute.xlu1 %1348  ;;  %v1429_v48 = vadd.f32 %v1424_v11, %v1414_v63  ;;  %v2029_v11 = vmul.f32 %v4198_v29, %v4886_v0  ;;  %v2098_v4 = vrot.slane %v4961_v2, 3  ;;  %v4983_v63 = vmul.f32 %v4892_v43, %v4976_v33 }
 0x211   : > { %1996 = vrot.lane.b32.xlu0 %v1992_v36, %s2906_s27  ;;  %v1353_v49 = vadd.f32 %v1349_v18, %v1331_v37  ;;  %v2077_v36 = vsel %vm411_vm5, %v2075_v15, %v2076_v6  ;;  %v2016_v18 = vrot.slane %v2009_v53, 1  ;;  %v2097_v21 = vrot.slane %v2091_v35, 3 }
 0x212   : > { %1928 = vrot.lane.b32.xlu1 %v1925_v39, %s2905_s14  ;;  %v2111_v29 = vmul.f32 %v4810_v52, %v4976_v33  ;;  %v4990_v0 = vstv %s4945_s5  ;;  %v2152_v37 = vstv %s4978_s21  ;;  %v2093_v53 = vmul.f32 %v4856_v5, %v4954_v1 }
 0x213   : > { %v1437_v54 = vpop.permute.xlu0 %1436  ;;  %v2017_v42 = vsel %vm376_vm4, %v2014_v58, %v2016_v18  ;;  %v2099_v62 = vsel %vm446_vm6, %v2097_v21, %v2098_v4  ;;  %v2133_v58 = vmul.f32 %v4872_v17, %v4990_v0  ;;  %v2194_v18 = vstv %s5020_s30 }
 0x214   : > { %v1369_v14 = vpop.permute.xlu1 %1368  ;;  %v1442_v59 = vadd.f32 %v1437_v54, %v1429_v48  ;;  %v2051_v54 = vmul.f32 %v4856_v5, %v4910_v20  ;;  %v2117_v22 = vrot.slane %v2111_v29, 3  ;;  %v5011_v20 = vld [vmem:[#allocation3 + $0x10] sm:$0x3f] }
 0x215   : > { %2018 = vrot.lane.b32.xlu0 %v2015_v28, %s2906_s27  ;;  %v1373_v13 = vadd.f32 %v1369_v14, %v1353_v49  ;;  %v2036_v14 = vrot.slane %v2029_v11, 1  ;;  %v2071_v12 = vmul.f32 %v5011_v20, %v4926_v38  ;;  %v5026_v38 = vmul.f32 %v4892_v43, %v2152_v37 }
 0x216   : > { %1950 = vrot.lane.b32.xlu1 %v1947_v24, %s2905_s14  ;;  %v5001_v24 = vmul.f32 %v4772_v7, %v4990_v0  ;;  %v2139_v8 = vrot.slane %v2133_v58, 4  ;;  %v2153_v49 = vmul.f32 %v4810_v52, %v2152_v37 }
 0x217   : > { %v1459_v34 = vpop.permute.xlu0 %1458  ;;  %v2160_v3 = vrot.slane %v5026_v38, 4 }
 0x218   : > { %v1391_v27 = vpop.permute.xlu1 %1390  ;;  %v1464_v56 = vadd.f32 %v1459_v34, %v1442_v59  ;;  %v2118_v59 = vrot.slane %v4983_v63, 3  ;;  %v2058_v34 = vrot.slane %v2051_v54, 2 }
 0x219   : > { %2038 = vrot.lane.b32.xlu0 %v2035_v46, %s2906_s27  ;;  %v1395_v57 = vadd.f32 %v1391_v27, %v1373_v13  ;;  %v2037_v27 = vsel %vm376_vm4, %v2034_v9, %v2036_v14  ;;  %v2078_v9 = vrot.slane %v2071_v12, 2  ;;  %v5041_v13 = vmul.f32 %v4772_v7, %v5032_v25 }
 0x21a   : > { %1970 = vrot.lane.b32.xlu1 %v1967_v44, %s2905_s14  ;;  %v2140_v44 = vrot.slane %v5001_v24, 4  ;;  %v2119_v45 = vsel %vm446_vm6, %v2117_v22, %v2118_v59  ;;  %v2216_v14 = vstv %s5043_s7  ;;  %s2908_s14 = smov 16  }
 0x21b   : > { %v1479_v55 = vpop.permute.xlu0 %1478  ;;  %v2079_v1 = vsel %vm411_vm5, %v2076_v6, %v2078_v9  ;;  %v5064_v6 = vmul.f32 %v4892_v43, %v2194_v18 }
 0x21c   : > { %v1411_v40 = vpop.permute.xlu1 %1410  ;;  %v1484_v61 = vadd.f32 %v1479_v55, %v1464_v56  ;;  %v2141_v15 = vsel %vm176_vm0, %v2139_v8, %v2140_v44 }
 0x21d   : > { %2060 = vrot.lane.b32.xlu0 %v2057_v16, %s2906_s27  ;;  %v1415_v26 = vadd.f32 %v1411_v40, %v1395_v57  ;;  %v2159_v57 = vrot.slane %v2153_v49, 4 }
 0x21e   : > { %1985 = vrot.lane.b32.xlu1 %v1980_v32, %s2906_s27  ;;  %v2059_v32 = vsel %vm411_vm5, %v2056_v41, %v2058_v34  ;;  %v2175_v41 = vmul.f32 %v4872_v17, %v5032_v25 }
 0x21f   : > { %v1501_v50 = vpop.permute.xlu0 %1500  ;;  %v2161_v10 = vsel %vm176_vm0, %v2159_v57, %v2160_v3 }
 0x220   : > { %v1426_v31 = vpop.permute.xlu1 %1425  ;;  %v1506_v23 = vadd.f32 %v1501_v50, %v1484_v61  ;;  %v2182_v50 = vrot.slane %v5041_v13, 5 }
 0x221   : > { %2080 = vrot.lane.b32.xlu0 %v2077_v36, %s2906_s27  ;;  %v1430_v39 = vadd.f32 %v1426_v31, %v1415_v26  ;;  %v2100_v31 = vrot.slane %v2093_v53, 3  ;;  %v2113_v36 = vmul.f32 %v5011_v20, %v4976_v33  ;;  %v2135_v33 = vmul.f32 %v4856_v5, %v4990_v0 }
 0x222   : > { %1998 = vrot.lane.b32.xlu1 %v1993_v19, %s2906_s27 }
 0x223   : > { %v1521_v48 = vpop.permute.xlu0 %1520  ;;  %v2142_v12 = vrot.slane %v2135_v33, 4 }
 0x224   : > { %v1439_v60 = vpop.permute.xlu1 %1438  ;;  %v1526_v51 = vadd.f32 %v1521_v48, %v1506_v23  ;;  %v2181_v23 = vrot.slane %v2175_v41, 5 }
 0x225   : > { %v1443_v28 = vadd.f32 %v1439_v60, %v1430_v39  ;;  %2102 = vrot.lane.b32.xlu0 %v2099_v62, %s2906_s27  ;;  %v2195_v39 = vmul.f32 %v4810_v52, %v2194_v18  ;;  %v2101_v60 = vsel %vm446_vm6, %v2098_v4, %v2100_v31  ;;  %v2218_v62 = vmul.f32 %v4772_v7, %v2216_v14 }
 0x226   : > { %2020 = vrot.lane.b32.xlu1 %v2017_v42, %s2906_s27  ;;  %v2183_v48 = vsel %vm515_vm7, %v2181_v23, %v2182_v50  ;;  %v2120_v42 = vrot.slane %v2113_v36, 3  ;;  %v2217_v4 = vmul.f32 %v4872_v17, %v2216_v14 }
 0x227   : > { %v1543_v47 = vpop.permute.xlu0 %1542  ;;  %v2201_v2 = vrot.slane %v2195_v39, 5  ;;  %v2224_v34 = vrot.slane %v2218_v62, 6 }
 0x228   : > { %v1461_v30 = vpop.permute.xlu1 %1460  ;;  %v1548_v46 = vadd.f32 %v1543_v47, %v1526_v51  ;;  %v2202_v51 = vrot.slane %v5064_v6, 5  ;;  %v2121_v58 = vsel %vm446_vm6, %v2118_v59, %v2120_v42  ;;  %v2236_v47 = vstv %s2670_s8 }
 0x229   : > { %v1465_v56 = vadd.f32 %v1461_v30, %v1443_v28  ;;  %2122 = vrot.lane.b32.xlu0 %v2119_v45, %s2906_s27  ;;  %v2155_v30 = vmul.f32 %v5011_v20, %v2152_v37  ;;  %v2223_v17 = vrot.slane %v2217_v4, 6  ;;  %v2143_v59 = vsel %vm176_vm0, %v2140_v44, %v2142_v12 }
 0x22a   : > { %2040 = vrot.lane.b32.xlu1 %v2037_v27, %s2906_s27  ;;  %v2203_v7 = vsel %vm515_vm7, %v2201_v2, %v2202_v51  ;;  %v2239_v31 = vmul.f32 %v5011_v20, %v2236_v47 }
 0x22b   : > { %v1563_v55 = vpop.permute.xlu0 %1562  ;;  %v2162_v37 = vrot.slane %v2155_v30, 4  ;;  %v2225_v9 = vsel %vm550_vm8, %v2223_v17, %v2224_v34 }
 0x22c   : > { %v1481_v40 = vpop.permute.xlu1 %1480  ;;  %v1568_v16 = vadd.f32 %v1563_v55, %v1548_v46  ;;  %v2237_v46 = vmul.f32 %v4810_v52, %v2236_v47 }
 0x22d   : > { %v1485_v61 = vadd.f32 %v1481_v40, %v1465_v56  ;;  %2144 = vrot.lane.b32.xlu0 %v2141_v15, %s2906_s27  ;;  %v2238_v56 = vmul.f32 %v4892_v43, %v2236_v47  ;;  %v2177_v43 = vmul.f32 %v4856_v5, %v5032_v25  ;;  %v2163_v24 = vsel %vm176_vm0, %v2160_v3, %v2162_v37 }
 0x22e   : > { %2062 = vrot.lane.b32.xlu1 %v2059_v32, %s2906_s27  ;;  %v2243_v40 = vrot.slane %v2237_v46, 6  ;;  %v2219_v3 = vmul.f32 %v4856_v5, %v2216_v14 }
 0x22f   : > { %v1585_v35 = vpop.permute.xlu0 %1584  ;;  %v2244_v49 = vrot.slane %v2238_v56, 6  ;;  %v2184_v53 = vrot.slane %v2177_v43, 5 }
 0x230   : > { %v1503_v19 = vpop.permute.xlu1 %1502  ;;  %v1590_v26 = vadd.f32 %v1585_v35, %v1568_v16  ;;  %v2226_v35 = vrot.slane %v2219_v3, 6 }
 0x231   : > { %v1507_v11 = vadd.f32 %v1503_v19, %v1485_v61  ;;  %2164 = vrot.lane.b32.xlu0 %v2161_v10, %s2906_s27  ;;  %v2245_v32 = vsel %vm550_vm8, %v2243_v40, %v2244_v49  ;;  %v2197_v61 = vmul.f32 %v5011_v20, %v2194_v18  ;;  %v2185_v41 = vsel %vm515_vm7, %v2182_v50, %v2184_v53 }
 0x232   : > { %2082 = vrot.lane.b32.xlu1 %v2079_v1, %s2906_s27  ;;  %v2227_v13 = vsel %vm550_vm8, %v2224_v34, %v2226_v35 }
 0x233   : > { %v1605_v29 = vpop.permute.xlu0 %1604  ;;  %v2204_v38 = vrot.slane %v2197_v61, 5 }
 0x234   : > { %v1523_v21 = vpop.permute.xlu1 %1522  ;;  %v5078_v28 = vadd.f32 %v1605_v29, %v1590_v26 }
 0x235   : > { %v1527_v54 = vadd.f32 %v1523_v21, %v1507_v11  ;;  %2186 = vrot.lane.b32.xlu0 %v2183_v48, %s2906_s27  ;;  %v2205_v19 = vsel %vm515_vm7, %v2202_v51, %v2204_v38  ;;  %v2246_v11 = vrot.slane %v2239_v31, 6 }
 0x236   : > { %2104 = vrot.lane.b32.xlu1 %v2101_v60, %s2906_s27 }
 0x237   : > { %v5085_v22 = vpop.permute.xlu0 %1626  ;;  %v2247_v26 = vsel %vm550_vm8, %v2244_v49, %v2246_v11 }
 0x238   : > { %v1545_v0 = vpop.permute.xlu1 %1544 }
 0x239   : > { %v1549_v27 = vadd.f32 %v1545_v0, %v1527_v54  ;;  %2206 = vrot.lane.b32.xlu0 %v2203_v7, %s2906_s27 }
 0x23a   : > { %2124 = vrot.lane.b32.xlu1 %v2121_v58, %s2906_s27  ;;  %v1632_v58 = vadd.f32 %v5085_v22, %v5078_v28 }
 0x23b   : > { %v1647_v45 = vpop.permute.xlu0 %1646 }
 0x23c   : > { %v1565_v63 = vpop.permute.xlu1 %1564  ;;  %v1652_v47 = vadd.f32 %v1647_v45, %v1632_v58 }
 0x23d   : > { %v1569_v8 = vadd.f32 %v1565_v63, %v1549_v27  ;;  %2228 = vrot.lane.b32.xlu0 %v2225_v9, %s2906_s27 }
 0x23e   : > { %2146 = vrot.lane.b32.xlu1 %v2143_v59, %s2906_s27 }
 0x23f   : > { %v1669_v55 = vpop.permute.xlu0 %1668 }
 0x240   : > { %v1587_v52 = vpop.permute.xlu1 %1586  ;;  %v1674_v27 = vadd.f32 %v1669_v55, %v1652_v47 }
 0x241   : > { %v1591_v44 = vadd.f32 %v1587_v52, %v1569_v8  ;;  %2248 = vrot.lane.b32.xlu0 %v2245_v32, %s2906_s27 }
 0x242   : > { %2166 = vrot.lane.b32.xlu1 %v2163_v24, %s2906_s27 }
 0x243   : > { %v1689_v16 = vpop.permute.xlu0 %1688 }
 0x244   : > { %v1607_v25 = vpop.permute.xlu1 %1606  ;;  %v1694_v56 = vadd.f32 %v1689_v16, %v1674_v27 }
 0x245   : > { %v1611_v15 = vadd.f32 %v1607_v25, %v1591_v44 }
 0x246   : > { %2188 = vrot.lane.b32.xlu1 %v2185_v41, %s2906_s27 }
 0x247   : > { %v1704_v57 = vpop.permute.xlu0 %1703 }
 0x248   : > { %v1629_v1 = vpop.permute.xlu1 %1628  ;;  %v1709_v17 = vadd.f32 %v1704_v57, %v1694_v56 }
 0x249   : > { %v1633_v43 = vadd.f32 %v1629_v1, %v1611_v15 }
 0x24a   : > { %2208 = vrot.lane.b32.xlu1 %v2205_v19, %s2906_s27 }
 0x24b   : > { %v1717_v18 = vpop.permute.xlu0 %1716 }
 0x24c   : > { %v1649_v36 = vpop.permute.xlu1 %1648  ;;  %v1722_v59 = vadd.f32 %v1717_v18, %v1709_v17 }
 0x24d   : > { %v1653_v28 = vadd.f32 %v1649_v36, %v1633_v43 }
 0x24e   : > { %2230 = vrot.lane.b32.xlu1 %v2227_v13, %s2906_s27 }
 0x24f   : > { %v1739_v5 = vpop.permute.xlu0 %1738 }
 0x250   : > { %v1671_v50 = vpop.permute.xlu1 %1670  ;;  %v1744_v37 = vadd.f32 %v1739_v5, %v1722_v59 }
 0x251   : > { %v1675_v44 = vadd.f32 %v1671_v50, %v1653_v28 }
 0x252   : > { %2250 = vrot.lane.b32.xlu1 %v2247_v26, %s2906_s27  ;;  %s2820_s27 = scalar_lea.vmem %s2482_s22, 128 }
 0x253   : > { %v1759_v6 = vpop.permute.xlu0 %1758  ;;  %p2821_p6 = scmp.ne.s32.totalorder %s2482_s22, %s2820_s27 }
 0x254   : > { %v1691_v10 = vpop.permute.xlu1 %1690  ;;  %v1764_v49 = vadd.f32 %v1759_v6, %v1744_v37 }
 0x255   : > { %v1695_v53 = vadd.f32 %v1691_v10, %v1675_v44  ;;  %p2822_p7 = pnand %p2821_p6, %p5470_p8 }
 0x257   : > { %v1781_v39 = vpop.permute.xlu0 %1780  ;;  %p2823_p10 = pneg %p2822_p7 }
 0x258   : > { %v1706_v23 = vpop.permute.xlu1 %1705  ;;  %v1786_v40 = vadd.f32 %v1781_v39, %v1764_v49 }
 0x259   : > { %v1710_v25 = vadd.f32 %v1706_v23, %v1695_v53 }
 0x25b   : > { %v1801_v33 = vpop.permute.xlu0 %1800 }
 0x25c   : > { %v1719_v20 = vpop.permute.xlu1 %1718  ;;  %v1806_v22 = vadd.f32 %v1801_v33, %v1786_v40 }
 0x25d   : > { %v1723_v3 = vadd.f32 %v1719_v20, %v1710_v25 }
 0x25f   : > { %v1823_v29 = vpop.permute.xlu0 %1822 }
 0x260   : > { %v1741_v21 = vpop.permute.xlu1 %1740  ;;  %v1828_v45 = vadd.f32 %v1823_v29, %v1806_v22 }
 0x261   : > { %v1745_v19 = vadd.f32 %v1741_v21, %v1723_v3 }
 0x263   : > { %v1843_v48 = vpop.permute.xlu0 %1842 }
 0x264   : > { %v1761_v60 = vpop.permute.xlu1 %1760  ;;  %v1848_v61 = vadd.f32 %v1843_v48, %v1828_v45 }
 0x265   : > { %v1765_v31 = vadd.f32 %v1761_v60, %v1745_v19 }
 0x267   : > { %v1865_v14 = vpop.permute.xlu0 %1864 }
 0x268   : > { %v1783_v42 = vpop.permute.xlu1 %1782  ;;  %v1870_v16 = vadd.f32 %v1865_v14, %v1848_v61 }
 0x269   : > { %v1787_v36 = vadd.f32 %v1783_v42, %v1765_v31 }
 0x26b   : > { %v1885_v51 = vpop.permute.xlu0 %1884 }
 0x26c   : > { %v1803_v54 = vpop.permute.xlu1 %1802  ;;  %v1890_v57 = vadd.f32 %v1885_v51, %v1870_v16 }
 0x26d   : > { %v1807_v5 = vadd.f32 %v1803_v54, %v1787_v36  ;;  %v2268_v36 = vlaneseq }
 0x26f   : > { %v1907_v2 = vpop.permute.xlu0 %1906  ;;  %vm5130_vm9 = vcmp.lt.s32.totalorder %v2268_v36, 16  ;;  %vm5139_vm10 = vcmp.ge.s32.totalorder %v2268_v36, 16  ;;  %vm5144_vm11 = vcmp.lt.s32.totalorder %v2268_v36, 32  ;;  %vm5153_vm13 = vcmp.ge.s32.totalorder %v2268_v36, 32 }
 0x270   : > { %v1825_v62 = vpop.permute.xlu1 %1824  ;;  %v1912_v35 = vadd.f32 %v1907_v2, %v1890_v57  ;;  %vm2301_vm12 = vmand %vm5139_vm10, %vm5144_vm11  ;;  %vm5158_vm14 = vcmp.lt.s32.totalorder %v2268_v36, 48  ;;  %vm5177_vm0 = vcmp.ge.s32.totalorder %v2268_v36, 48  ;;  %vm5182_vm1 = vcmp.lt.s32.totalorder %v2268_v36, 64 }
 0x271   : > { %v1829_v10 = vadd.f32 %v1825_v62, %v1807_v5  ;;  %v5126_v5 = vshrl.u32 %v2268_v36, 7  ;;  %vm5371_vm15 = vmand %vm5153_vm13, %vm5158_vm14  ;;  %vm5187_vm2 = vcmp.ge.s32.totalorder %v2268_v36, 64  ;;  %vm5192_vm3 = vcmp.lt.s32.totalorder %v2268_v36, 80 }
 0x272   : > { %vm5373_vm4 = vmand %vm5177_vm0, %vm5182_vm1  ;;  %vm5205_vm6 = vcmp.ge.s32.totalorder %v2268_v36, 80  ;;  %vm5210_vm7 = vcmp.lt.s32.totalorder %v2268_v36, 96 }
 0x273   : > { %v1927_v0 = vpop.permute.xlu0 %1926  ;;  %vm5372_vm5 = vmand %vm5187_vm2, %vm5192_vm3 }
 0x274   : > { %v1845_v4 = vpop.permute.xlu1 %1844  ;;  %v1932_v18 = vadd.f32 %v1927_v0, %v1912_v35  ;;  %vm2354_vm8 = vmand %vm5205_vm6, %vm5210_vm7 }
 0x275   : > { %v1849_v33 = vadd.f32 %v1845_v4, %v1829_v10  ;;  %vm5465_vm10 = vmand %vm5153_vm13, %vm5158_vm14 }
 0x277   : > { %v1949_v30 = vpop.permute.xlu0 %1948 }
 0x278   : > { %v1867_v12 = vpop.permute.xlu1 %1866  ;;  %v1954_v13 = vadd.f32 %v1949_v30, %v1932_v18 }
 0x279   : > { %v1871_v20 = vadd.f32 %v1867_v12, %v1849_v33 }
 0x27b   : > { %v1969_v34 = vpop.permute.xlu0 %1968 }
 0x27c   : > { %v1887_v7 = vpop.permute.xlu1 %1886  ;;  %v1974_v26 = vadd.f32 %v1969_v34, %v1954_v13  ;;  %v2907_v13 = vmov 1966171168  }
 0x27d   : > { %v1891_v51 = vadd.f32 %v1887_v7, %v1871_v20 }
 0x27f   : > { %v1984_v63 = vpop.permute.xlu0 %1983 }
 0x280   : > { %v1909_v46 = vpop.permute.xlu1 %1908  ;;  %v1989_v6 = vadd.f32 %v1984_v63, %v1974_v26 }
 0x281   : > { %v1913_v60 = vadd.f32 %v1909_v46, %v1891_v51 }
 0x283   : > { %v1997_v9 = vpop.permute.xlu0 %1996 }
 0x284   : > { %v1929_v8 = vpop.permute.xlu1 %1928  ;;  %v2002_v29 = vadd.f32 %v1997_v9, %v1989_v6 }
 0x285   : > { %v1933_v30 = vadd.f32 %v1929_v8, %v1913_v60 }
 0x287   : > { %v2019_v24 = vpop.permute.xlu0 %2018 }
 0x288   : > { %v1951_v52 = vpop.permute.xlu1 %1950  ;;  %v2024_v48 = vadd.f32 %v2019_v24, %v2002_v29 }
 0x289   : > { %v1955_v54 = vadd.f32 %v1951_v52, %v1933_v30 }
 0x28b   : > { %v2039_v32 = vpop.permute.xlu0 %2038 }
 0x28c   : > { %v1971_v55 = vpop.permute.xlu1 %1970  ;;  %v2044_v2 = vadd.f32 %v2039_v32, %v2024_v48 }
 0x28d   : > { %v1975_v56 = vadd.f32 %v1971_v55, %v1955_v54 }
 0x28f   : > { %v2061_v38 = vpop.permute.xlu0 %2060 }
 0x290   : > { %v1986_v41 = vpop.permute.xlu1 %1985  ;;  %v2066_v0 = vadd.f32 %v2061_v38, %v2044_v2 }
 0x291   : > { %v1990_v4 = vadd.f32 %v1986_v41, %v1975_v56 }
 0x293   : > { %v2081_v1 = vpop.permute.xlu0 %2080 }
 0x294   : > { %v1999_v15 = vpop.permute.xlu1 %1998  ;;  %v2086_v47 = vadd.f32 %v2081_v1, %v2066_v0 }
 0x295   : > { %v2003_v37 = vadd.f32 %v1999_v15, %v1990_v4 }
 0x297   : > { %v2103_v50 = vpop.permute.xlu0 %2102 }
 0x298   : > { %v2021_v11 = vpop.permute.xlu1 %2020  ;;  %v2108_v27 = vadd.f32 %v2103_v50, %v2086_v47 }
 0x299   : > { %v2025_v7 = vadd.f32 %v2021_v11, %v2003_v37  ;;  %v2275_v11 = vunpack.c.l.s4 %v2907_v13  ;;  %v2456_v13 = vsub.s32 0, %v5126_v5 }
 0x29b   : > { %v2123_v39 = vpop.permute.xlu0 %2122  ;;  %v2276_v50 = vunpack.c.0.s8 %v2275_v11  ;;  %v2460_v11 = vsub.s32 1, %v5126_v5 }
 0x29c   : > { %v2041_v23 = vpop.permute.xlu1 %2040  ;;  %v2128_v17 = vadd.f32 %v2123_v39, %v2108_v27 }
 0x29d   : > { %v2045_v40 = vadd.f32 %v2041_v23, %v2025_v7  ;;  %v2279_v26 = vsub.s32 %v2276_v50, %v5126_v5 }
 0x29f   : > { %v2145_v14 = vpop.permute.xlu0 %2144 }
 0x2a0   : > { %v2063_v21 = vpop.permute.xlu1 %2062  ;;  %v2150_v63 = vadd.f32 %v2145_v14, %v2128_v17 }
 0x2a1   : > { %v2067_v8 = vadd.f32 %v2063_v21, %v2045_v40 }
 0x2a3   : > { %v2165_v58 = vpop.permute.xlu0 %2164 }
 0x2a4   : > { %v2083_v42 = vpop.permute.xlu1 %2082  ;;  %v2170_v9 = vadd.f32 %v2165_v58, %v2150_v63 }
 0x2a5   : > { %v2087_v44 = vadd.f32 %v2083_v42, %v2067_v8 }
 0x2a7   : > { %v2187_v34 = vpop.permute.xlu0 %2186 }
 0x2a8   : > { %v2105_v62 = vpop.permute.xlu1 %2104  ;;  %v2192_v49 = vadd.f32 %v2187_v34, %v2170_v9 }
 0x2a9   : > { %v2109_v55 = vadd.f32 %v2105_v62, %v2087_v44 }
 0x2ab   : > { %v2207_v59 = vpop.permute.xlu0 %2206 }
 0x2ac   : > { %v2125_v12 = vpop.permute.xlu1 %2124  ;;  %v2212_v24 = vadd.f32 %v2207_v59, %v2192_v49 }
 0x2ad   : > { %v2129_v61 = vadd.f32 %v2125_v12, %v2109_v55 }
 0x2af   : > { %v2229_v43 = vpop.permute.xlu0 %2228 }
 0x2b0   : > { %v2147_v46 = vpop.permute.xlu1 %2146  ;;  %v2234_v28 = vadd.f32 %v2229_v43, %v2212_v24 }
 0x2b1   : > { %v2151_v25 = vadd.f32 %v2147_v46, %v2129_v61 }
 0x2b3   : > { %v2249_v22 = vpop.permute.xlu0 %2248 }
 0x2b4   : > { %v2167_v52 = vpop.permute.xlu1 %2166  ;;  %v2254_v45 = vadd.f32 %v2249_v22, %v2234_v28 }
 0x2b5   : > { %v2171_v41 = vadd.f32 %v2167_v52, %v2151_v25 }
 0x2b6   : > { %v2671_v32 = vmul.f32 -1.442695, %v2254_v45  ;;  %v5451_v45 = vmov 0 }
 0x2b7   : > { %v5452_v45 = vsel %vm5192_vm3, 4294967295, %v5451_v45  ;;  %vm5258_vm3 = vcmp.lt.s32.totalorder %v2268_v36, 128 }
 0x2b8   : > { %v2189_v53 = vpop.permute.xlu1 %2188  ;;  %2761 = vpow2.f32 %v2671_v32  ;;  %vm5467_vm13 = vnez %v5452_v45 }
 0x2b9   : > { %v2193_v38 = vadd.f32 %v2189_v53, %v2171_v41  ;;  %vm5468_vm14 = vmand %vm5187_vm2, %vm5467_vm13 }
 0x2bc   : > { %v2209_v16 = vpop.permute.xlu1 %2208 }
 0x2bd   : > { %v2213_v57 = vadd.f32 %v2209_v16, %v2193_v38 }
 0x2c0   : > { %v2231_v3 = vpop.permute.xlu1 %2230 }
 0x2c1   : > { %v2235_v19 = vadd.f32 %v2231_v3, %v2213_v57 }
 0x2c4   : > { %v2251_v35 = vpop.permute.xlu1 %2250 }
 0x2c5   : > { %v2255_v15 = vadd.f32 %v2251_v35, %v2235_v19  ;;  %v2762_v1 = vpop.eup %2761 }
 0x2c6   : > { %v2262_v31 = vadd.f32 1.0, %v2762_v1 }
 0x2c7   : > { %v2672_v18 = vmul.f32 -1.442695, %v2255_v15 }
 0x2c8   : > { %2763 = vrcp.f32 %v2262_v31 }
 0x2c9   : > { %2765 = vpow2.f32 %v2672_v18 }
 0x2d5   : > { %v2764_v6 = vpop.eup %2763 }
 0x2d6   : > { %v2766_v23 = vpop.eup %2765  ;;  %v2280_v39 = vrot.slane %v2764_v6, %v2279_v26  ;;  %2272 = vst.msk [vmem:[#allocation4] sm:$0x1] %vm5130_vm9, %v2764_v6  ;;  %v2319_v21 = vcombine.high %v2764_v6, %v2764_v6  ;;  %v2452_v6 = vld [vmem:[%s3040_s3] sm:$0xff]  ;;  %s2824_s3 = sshll.u32 %s2915_s28, 4  ;;  %s2825_s3 = int_to_ptr.vmem [resolvable:$false] %s2824_s3 }
 0x2d7   : > { %v2263_v33 = vadd.f32 1.0, %v2766_v23  ;;  %s2826_s13 = scalar_lea.vmem %s2825_s3, 256  ;;  %p2827_p11 = scmp.lt.s32.totalorder %s2482_s22, %s2825_s3 }
 0x2d8   : > { %v2281_v29 = vcombine.high %v2280_v39, %v2280_v39  ;;  %v2288_v48 = vrot.slane %v2280_v39, %v2279_v26  ;;  %v2326_v51 = vrot.slane %v2319_v21, %v2279_v26  ;;  %p2828_p0 = scmp.lt.s32.totalorder %s2826_s13, %s2820_s27 }
 0x2d9   : > { %2767 = vrcp.f32 %v2263_v33 }
 0x2da   : > { %v2295_v20 = vrot.slane %v2281_v29, %v2279_v26  ;;  %v2303_v14 = vcombine.high %v2288_v48, %v2288_v48  ;;  %v2333_v2 = vrot.slane %v2326_v51, %v2279_v26  ;;  %v2341_v42 = vcombine.high %v2326_v51, %v2326_v51  ;;  %p2829_p3 = por %p2828_p0, %p2827_p11 }
 0x2dc   : > { %2296 = vrot.lane.b32.xlu0 %v2295_v20, %s2908_s14  ;;  %v2311_v0 = vcombine.high %v2295_v20, %v2295_v20  ;;  %v2348_v47 = vrot.slane %v2341_v42, %v2279_v26  ;;  %v2356_v34 = vcombine.high %v2333_v2, %v2333_v2  ;;  %p2830_p5 = pnand %p2829_p3, %p2823_p10 }
 0x2de   : > { %v2364_v4 = vcombine.high %v2348_v47, %v2348_v47 }
 0x2e0   : > { %2304 = vrot.lane.b32.xlu0 %v2303_v14, %s2909_s19 }
 0x2e4   : > { %2334 = vrot.lane.b32.xlu0 %v2333_v2, %s2910_s0 }
 0x2e6   : > { %v2768_v60 = vpop.eup %2767 }
 0x2e7   : > { %v2380_v58 = vrot.slane %v2768_v60, %v2279_v26  ;;  %2372 = vst.msk [vmem:[#allocation4 + $0x1] sm:$0x1] %vm5130_vm9, %v2768_v60  ;;  %v2410_v62 = vcombine.high %v2768_v60, %v2768_v60  ;;  %vm5229_vm9 = vcmp.ge.s32.totalorder %v2268_v36, 96 }
 0x2e8   : > { %2312 = vrot.lane.b32.xlu0 %v2311_v0, %s2911_s1 }
 0x2e9   : > { %v2381_v30 = vcombine.high %v2380_v58, %v2380_v58  ;;  %v2388_v27 = vrot.slane %v2380_v58, %v2279_v26  ;;  %v2417_v17 = vrot.slane %v2410_v62, %v2279_v26 }
 0x2eb   : > { %v2395_v54 = vrot.slane %v2381_v30, %v2279_v26  ;;  %v2400_v56 = vcombine.high %v2388_v27, %v2388_v27  ;;  %v2424_v63 = vrot.slane %v2417_v17, %v2279_v26  ;;  %v2429_v59 = vcombine.high %v2417_v17, %v2417_v17 }
 0x2ec   : > { %2349 = vrot.lane.b32.xlu0 %v2348_v47, %s2912_s10 }
 0x2ed   : > { %2396 = vrot.lane.b32.xlu1 %v2395_v54, %s2908_s14  ;;  %v2405_v12 = vcombine.high %v2395_v54, %v2395_v54  ;;  %v2436_v37 = vrot.slane %v2429_v59, %v2279_v26  ;;  %v2441_v9 = vcombine.high %v2424_v63, %v2424_v63 }
 0x2ef   : > { %v2446_v7 = vcombine.high %v2436_v37, %v2436_v37 }
 0x2f0   : > { %2357 = vrot.lane.b32.xlu0 %v2356_v34, %s2913_s11 }
 0x2f1   : > { %2401 = vrot.lane.b32.xlu1 %v2400_v56, %s2909_s19 }
 0x2f4   : > { %2365 = vrot.lane.b32.xlu0 %v2364_v4, %s2914_s12 }
 0x2f5   : > { %2425 = vrot.lane.b32.xlu1 %v2424_v63, %s2910_s0 }
 0x2f9   : > { %2406 = vrot.lane.b32.xlu1 %v2405_v12, %s2911_s1 }
 0x2fd   : > { %2437 = vrot.lane.b32.xlu1 %v2436_v37, %s2912_s10 }
 0x301   : > { %2442 = vrot.lane.b32.xlu1 %v2441_v9, %s2913_s11 }
 0x305   : > { %2447 = vrot.lane.b32.xlu1 %v2446_v7, %s2914_s12 }
 0x34e   : > { %v2297_v24 = vpop.permute.xlu0 %2296 }
 0x34f   : > { %2302 = vst.msk [vmem:[#allocation4] sm:$0x1] %vm2301_vm12, %v2297_v24 }
 0x352   : > { %v2305_v8 = vpop.permute.xlu0 %2304 }
 0x353   : > { %2310 = vst.msk [vmem:[#allocation4] sm:$0x1] %vm5371_vm15, %v2305_v8  ;;  %vm5234_vm15 = vcmp.lt.s32.totalorder %v2268_v36, 112 }
 0x356   : > { %v2335_v22 = vpop.permute.xlu0 %2334 }
 0x35a   : > { %v2313_v53 = vpop.permute.xlu0 %2312 }
 0x35b   : > { %2318 = vst.msk [vmem:[#allocation4] sm:$0x1] %vm5373_vm4, %v2313_v53  ;;  %vm5253_vm4 = vcmp.ge.s32.totalorder %v2268_v36, 112 }
 0x35c   : > { %2340 = vst.msk [vmem:[#allocation4] sm:$0x1] %vm5372_vm5, %v2335_v22  ;;  %vm2362_vm5 = vmand %vm5229_vm9, %vm5234_vm15 }
 0x35d   : > { %vm2370_vm11 = vmand %vm5253_vm4, %vm5258_vm3 }
 0x35e   : > { %v2350_v16 = vpop.permute.xlu0 %2349 }
 0x35f   : > { %v2397_v41 = vpop.permute.xlu1 %2396  ;;  %2355 = vst.msk [vmem:[#allocation4] sm:$0x1] %vm2354_vm8, %v2350_v16 }
 0x360   : > { %2399 = vst.msk [vmem:[#allocation4 + $0x1] sm:$0x1] %vm2301_vm12, %v2397_v41  ;;  %vm5466_vm12 = vmand %vm5177_vm0, %vm5182_vm1 }
 0x362   : > { %v2358_v57 = vpop.permute.xlu0 %2357 }
 0x363   : > { %v2402_v19 = vpop.permute.xlu1 %2401  ;;  %2363 = vst.msk [vmem:[#allocation4] sm:$0x1] %vm2362_vm5, %v2358_v57 }
 0x364   : > { %2404 = vst.msk [vmem:[#allocation4 + $0x1] sm:$0x1] %vm5465_vm10, %v2402_v19 }
 0x366   : > { %v2366_v35 = vpop.permute.xlu0 %2365 }
 0x367   : > { %v2426_v15 = vpop.permute.xlu1 %2425  ;;  %2371 = vst.msk [vmem:[#allocation4] sm:$0x1] %vm2370_vm11, %v2366_v35 }
 0x36b   : > { %v2407_v1 = vpop.permute.xlu1 %2406 }
 0x36c   : > { %2409 = vst.msk [vmem:[#allocation4 + $0x1] sm:$0x1] %vm5466_vm12, %v2407_v1 }
 0x36d   : > { %2428 = vst.msk [vmem:[#allocation4 + $0x1] sm:$0x1] %vm5468_vm14, %v2426_v15 }
 0x36f   : > { %v2438_v31 = vpop.permute.xlu1 %2437 }
 0x370   : > { %2440 = vst.msk [vmem:[#allocation4 + $0x1] sm:$0x1] %vm2354_vm8, %v2438_v31 }
 0x373   : > { %v2443_v18 = vpop.permute.xlu1 %2442 }
 0x374   : > { %2445 = vst.msk [vmem:[#allocation4 + $0x1] sm:$0x1] %vm2362_vm5, %v2443_v18 }
 0x377   : > { %v2448_v36 = vpop.permute.xlu1 %2447 }
 0x378   : > { %2450 = vst.msk [vmem:[#allocation4 + $0x1] sm:$0x1] %vm2370_vm11, %v2448_v36 }
 0x37f   : > { %v2451_v50 = vld [vmem:[#allocation4] sm:$0x3] }
 0x380   : > { %v2457_v26 = vrot.slane %v2451_v50, %v2456_v13  ;;  %v2461_v10 = vrot.slane %v2451_v50, %v2460_v11 }
 0x382   : > { %v2462_v23 = vcombine.low %v2457_v26, %v2461_v10 }
 0x384   : > { %v2464_v39 = vmul.f32 %v2462_v23, %v2452_v6 }
 0x386   : > { %2465 = vst [vmem:[%s171_s24] sm:$0xff] %v2464_v39 }
 0x387   : > { %2833 = shalt.err (!%p2830_p5)
}
 0x388   : > { %s2834_s15 = scalar_lea.hbm %s2479_s20, 128  ;;  %s2838_s5 = scalar_lea.hbm %s5338_s2, 256 }
 0x389   : > { %p2835_p2 = scmp.ne.s32.totalorder %s2479_s20, %s2834_s15  ;;  %p2839_p9 = scmp.lt.s32.totalorder %s2479_s20, %s5338_s2 }
 0x38a   : > { %p2840_p1 = scmp.lt.s32.totalorder %s2838_s5, %s2834_s15 }
 0x38b   : > { %p2836_p12 = pnand %p2835_p2, %p5470_p8 }
 0x38c   : > { %p2841_p4 = por %p2840_p1, %p2839_p9 }
 0x38d   : > { %p2837_p13 = pneg %p2836_p12 }
 0x38f   : > { %p2842_p6 = pnand %p2841_p4, %p2837_p13 }
 0x391   : > { %2845 = shalt.err (!%p2842_p6)
}
 0x392   : > { %2686 = dma.vmem_to_hbm [thread:$0]  (%p5470_p8), %s2482_s22, 128, %s2479_s20, %s2467_s26  }
 0x393 PF: > { %s5471_s30 = sld [smem:[#allocation17_spill]]  ;;  %s2493_s8 = sand.u32 1, %s2876_s9  }
 0x394   : > { %s5472_s7 = sld [smem:[#allocation16_spill]]  ;;  %s2494_s14 = scalar_lea.sflag [#allocation7], %s2493_s8 }
 0x399   : > { %p5473_p7 = scmp.ne.s32.totalorder %s5471_s30, 0 }
 0x39a   : > { %p5474_p10 = scmp.ge.s32.totalorder %s5472_s7, 2 }
 0x39c   : > { %p2697_p11 = pnand %p5474_p10, %p5473_p7 }
 0x39e   : > { %p2698_p0 = pneg %p2697_p11 }
 0x3a0   : > { %2871 = dma.done.wait (%p2698_p0), %s2494_s14, 128  }
 0x3a1   : > { %2873 = vsyncadd (%p2698_p0), %s2494_s14, 4294967168  ;;  %s5475_s12 = sld [smem:[#allocation18_spill]] }
 0x3a2   : > { %s5476_s9 = sld [smem:[#allocation14_spill]] }
 0x3a3   : > { %s5477_s10 = sld [smem:[#allocation15_spill]] }
 0x3a4   : > { %s5478_s11 = sld [smem:[#allocation19_spill]] }
 0x3a7   : > { %p16_p3 = scmp.ge.s32.totalorder %s5475_s12, 4  }
 0x3a9   :  { %18 = sbr.rel (!%p16_p3) target bundleno = 9 (0x9), region = 78 }
 0x3ae   :  { %2499 = vsyncpa [#allocation6], 1 }
 0x3af   :  { %2501 = vsyncpa [#allocation6 + $0x1], 1 }
 0x3b0   :  { %2502 = vsyncpa [#allocation7], 1 }
 0x3b1   :  { %2504 = vsyncpa [#allocation7 + $0x1], 1 }
 0x3b2   :  { %2505 = vsyncpa [#allocation8], 1 }
 0x3b3   :  { %2507 = vsyncpa [#allocation8 + $0x1], 1 }

</bundles_post_ra>
